<compile_context>
chip_gen: v7x
topology: tpu7x:2x2x1
jax: 0.10.0
libtpu: 0.0.40
codegen_flags: <defaults>
</compile_context>

<pallas_src>
import math
import functools

import jax
import jax.numpy as jnp
from jax import lax
from jax.experimental import pallas as pl
from jax.experimental.pallas import tpu as pltpu

# ---- module constants (shrunk for a small runnable example; structure unchanged) ----
ENV_CNN_FILTERS = 32            # original: 128
ENV_CNN_KERNELS = 4
ENV_HIDDEN_SIZE = ENV_CNN_FILTERS * ENV_CNN_KERNELS   # 128 (original: 512)
NHEAD = 2
DIM_FEEDFORWARD = 256           # original: 2048
NLAYERS = 2
LN_EPS = 1e-5
PE_MAX_LEN = 5000

MXU_DTYPE = jnp.bfloat16        # matmul operand dtype; accumulation stays f32
VMEM_LIMIT_BYTES = 32 * 1024 * 1024   # explicit budget, safe on v5e/v6e/v7x


# ----------------------------- in-kernel helpers -------------------------------------
def _layernorm_f32(z, g, b, eps):
    mean = jnp.mean(z, axis=-1, keepdims=True)
    zc = z - mean
    var = jnp.mean(zc * zc, axis=-1, keepdims=True)
    inv = lax.rsqrt(var + eps)
    return zc * inv * g + b


# ----------------------------- fused kernels ------------------------------------------
def _attn_block_kernel(*refs, nheads, sm_scale, pre_scale, has_pe, eps):
    """One full self-attention block for a single batch element.

    refs (inputs): x [S, D], (pe [1, D] if has_pe), wqkv [D, 3D] bf16,
                   bqkv [1, 3D], wout [D, D] bf16, bout [1, D],
                   ln_g [1, D], ln_b [1, D], bias [1, S]
    refs (output): o [S, D]
    """
    if has_pe:
        (x_ref, pe_ref, wqkv_ref, bqkv_ref, wout_ref, bout_ref,
         g_ref, beta_ref, bias_ref, o_ref) = refs
    else:
        (x_ref, wqkv_ref, bqkv_ref, wout_ref, bout_ref,
         g_ref, beta_ref, bias_ref, o_ref) = refs

    x = x_ref[...].astype(jnp.float32)                    # [S, D]
    if has_pe:
        # src = fromencoder * sqrt(d_model) + pe[:B] (broadcast over sequence axis)
        x = x * pre_scale + pe_ref[...]

    S, D = x.shape
    Dh = D // nheads

    # qkv projection (bf16 MXU inputs, f32 accumulation)
    qkv = jnp.dot(x.astype(MXU_DTYPE), wqkv_ref[...],
                  preferred_element_type=jnp.float32) + bqkv_ref[...]   # [S, 3D] f32

    bias = bias_ref[...]                                   # [1, S] additive key bias
    head_outs = []
    for h in range(nheads):                                # static unroll (nheads=2)
        qh = qkv[:, h * Dh:(h + 1) * Dh].astype(MXU_DTYPE)
        kh = qkv[:, D + h * Dh:D + (h + 1) * Dh].astype(MXU_DTYPE)
        vh = qkv[:, 2 * D + h * Dh:2 * D + (h + 1) * Dh].astype(MXU_DTYPE)
        s = lax.dot_general(qh, kh, (((1,), (1,)), ((), ())),
                            preferred_element_type=jnp.float32) * sm_scale  # [S, S]
        s = s + bias                                       # broadcast over query rows
        m = jnp.max(s, axis=-1, keepdims=True)
        p = jnp.exp(s - m)
        denom = jnp.sum(p, axis=-1, keepdims=True)
        p = p * pl.reciprocal(denom, approx=True)          # EUP slot, VALU-free
        head_outs.append(jnp.dot(p.astype(MXU_DTYPE), vh,
                                 preferred_element_type=jnp.float32))   # [S, Dh]

    attn = jnp.concatenate(head_outs, axis=-1)             # [S, D] (lane-dense)
    sa = jnp.dot(attn.astype(MXU_DTYPE), wout_ref[...],
                 preferred_element_type=jnp.float32) + bout_ref[...]

    z = x + sa                                             # post-norm residual (f32)
    o_ref[...] = _layernorm_f32(z, g_ref[...], beta_ref[...], eps).astype(o_ref.dtype)


def _ffn_block_kernel(x_ref, w1_ref, b1_ref, w2_ref, b2_ref, g_ref, beta_ref,
                      o_ref, *, eps):
    """Fused feed-forward block for one M-tile: LN(x + W2 relu(W1 x + b1) + b2)."""
    x = x_ref[...].astype(jnp.float32)                     # [tm, D]
    h = jnp.dot(x.astype(MXU_DTYPE), w1_ref[...],
                preferred_element_type=jnp.float32) + b1_ref[...]       # [tm, F]
    h = jnp.maximum(h, 0.0)                                # ReLU
    ff = jnp.dot(h.astype(MXU_DTYPE), w2_ref[...],
                 preferred_element_type=jnp.float32) + b2_ref[...]      # [tm, D]
    z = x + ff
    o_ref[...] = _layernorm_f32(z, g_ref[...], beta_ref[...], eps).astype(o_ref.dtype)


# ----------------------------- pallas_call wrappers ------------------------------------
def _const_spec(shape):
    """Untiled spec: same block every grid step -> stays resident in VMEM."""
    return pl.BlockSpec(shape, lambda *_: (0,) * len(shape))


def attention_block(x, bias, lp, *, pe=None, pre_scale=1.0):
    """x: [B, S, D]; bias: [B, 1, S] additive key-padding bias; pe: [B, 1, D] or None."""
    B, S, D = x.shape
    x_spec = pl.BlockSpec((None, S, D), lambda b: (b, 0, 0))
    bias_spec = pl.BlockSpec((None, 1, S), lambda b: (b, 0, 0))

    has_pe = pe is not None
    in_specs = [x_spec]
    args = [x]
    if has_pe:
        in_specs.append(pl.BlockSpec((None, 1, D), lambda b: (b, 0, 0)))
        args.append(pe)
    in_specs += [_const_spec((D, 3 * D)), _const_spec((1, 3 * D)),
                 _const_spec((D, D)), _const_spec((1, D)),
                 _const_spec((1, D)), _const_spec((1, D)), bias_spec]
    args += [lp["wqkv"], lp["bqkv"], lp["wout"], lp["bout"],
             lp["ln1_g"], lp["ln1_b"], bias]

    kernel = functools.partial(
        _attn_block_kernel, nheads=NHEAD,
        sm_scale=1.0 / math.sqrt(D // NHEAD),
        pre_scale=pre_scale, has_pe=has_pe, eps=LN_EPS)

    return pl.pallas_call(
        kernel,
        out_shape=jax.ShapeDtypeStruct((B, S, D), x.dtype),
        grid=(B,),
        in_specs=in_specs,
        out_specs=x_spec,
        compiler_params=pltpu.CompilerParams(
            dimension_semantics=("parallel",),        # shards over 2 TCs on v7x
            vmem_limit_bytes=VMEM_LIMIT_BYTES),
    )(*args)


def _choose_m_tile(M):
    # Largest power-of-two row tile (<=512, >=8 for sublane alignment) that divides M
    # and still leaves >=2 grid steps for megacore sharding.
    for t in (512, 256, 128, 64, 32, 16, 8):
        if M % t == 0 and M // t >= 2:
            return t
    return M


def ffn_block(x2d, lp):
    """x2d: [M, D] with M = B*S."""
    M, D = x2d.shape
    F = lp["w1"].shape[1]
    tm = _choose_m_tile(M)
    row_spec = pl.BlockSpec((tm, D), lambda i: (i, 0))

    return pl.pallas_call(
        functools.partial(_ffn_block_kernel, eps=LN_EPS),
        out_shape=jax.ShapeDtypeStruct((M, D), x2d.dtype),
        grid=(M // tm,),
        in_specs=[row_spec,
                  _const_spec((D, F)), _const_spec((1, F)),
                  _const_spec((F, D)), _const_spec((1, D)),
                  _const_spec((1, D)), _const_spec((1, D))],
        out_specs=row_spec,
        compiler_params=pltpu.CompilerParams(
            dimension_semantics=("parallel",),
            vmem_limit_bytes=VMEM_LIMIT_BYTES),
    )(x2d, lp["w1"], lp["b1"], lp["w2"], lp["b2"], lp["ln2_g"], lp["ln2_b"])


# ----------------------------- parameters / buffers ------------------------------------
def make_positional_encoding(max_len, d_model):
    position = jnp.arange(max_len, dtype=jnp.float32)[:, None]
    div_term = jnp.exp(jnp.arange(0, d_model, 2, dtype=jnp.float32)
                       * (-math.log(10000.0) / d_model))
    pe = jnp.zeros((max_len, 1, d_model), jnp.float32)
    pe = pe.at[:, 0, 0::2].set(jnp.sin(position * div_term))
    pe = pe.at[:, 0, 1::2].set(jnp.cos(position * div_term))
    return pe


def init_params(key):
    """Weights stored pre-transposed to [in_features, out_features] (K-major) and
    cast once to bf16 (MXU-native); biases / LN params stay f32 (kept as [1, N] rows).
    If porting from PyTorch, transpose nn.Linear weights once here."""
    D, F = ENV_HIDDEN_SIZE, DIM_FEEDFORWARD
    params = []
    for _ in range(NLAYERS):
        key, *ks = jax.random.split(key, 9)
        params.append(dict(
            wqkv=(jax.random.normal(ks[0], (D, 3 * D), jnp.float32) * 0.02).astype(MXU_DTYPE),
            bqkv=(jax.random.normal(ks[1], (3 * D,), jnp.float32) * 0.02)[None, :],
            wout=(jax.random.normal(ks[2], (D, D), jnp.float32) * 0.02).astype(MXU_DTYPE),
            bout=(jax.random.normal(ks[3], (D,), jnp.float32) * 0.02)[None, :],
            w1=(jax.random.normal(ks[4], (D, F), jnp.float32) * 0.02).astype(MXU_DTYPE),
            b1=(jax.random.normal(ks[5], (F,), jnp.float32) * 0.02)[None, :],
            w2=(jax.random.normal(ks[6], (F, D), jnp.float32) * 0.02).astype(MXU_DTYPE),
            b2=(jax.random.normal(ks[7], (D,), jnp.float32) * 0.02)[None, :],
            ln1_g=jnp.ones((1, D), jnp.float32), ln1_b=jnp.zeros((1, D), jnp.float32),
            ln2_g=jnp.ones((1, D), jnp.float32), ln2_b=jnp.zeros((1, D), jnp.float32),
        ))
    return params


# ----------------------------- Middle.forward ------------------------------------------
@jax.jit
def middle_forward(fromencoder, input_masking, params, pe):
    """fromencoder: [B, S, D] float32; input_masking: [B, S] bool (True = pad)."""
    B, S, D = fromencoder.shape

    # key_padding_mask -> additive logit bias [B, 1, S]
    bias = jnp.where(input_masking, jnp.float32(-1e30), jnp.float32(0.0))[:, None, :]
    # PositionalEncoding quirk of the original batch_first code: pe indexed by batch,
    # broadcast over the sequence axis (done inside the first attention kernel).
    pe_b = pe[:B]                                           # [B, 1, D]

    x = fromencoder
    for li, lp in enumerate(params):
        if li == 0:
            x = attention_block(x, bias, lp, pe=pe_b,
                                pre_scale=math.sqrt(ENV_HIDDEN_SIZE))
        else:
            x = attention_block(x, bias, lp)
        x = ffn_block(x.reshape(B * S, D), lp).reshape(B, S, D)
    return x


# ----------------------------- main -----------------------------------------------------
if __name__ == "__main__":
    key = jax.random.PRNGKey(0)
    k_x, k_p = jax.random.split(key)

    B, S, D = 2, 8, ENV_HIDDEN_SIZE
    fromencoder = jax.random.normal(k_x, (B, S, D), jnp.float32)
    # True = padded key position (ignore).  Pad the last 2 positions of batch 1.
    input_masking = jnp.zeros((B, S), dtype=bool).at[1, S - 2:].set(True)

    params = init_params(k_p)
    pe = make_positional_encoding(PE_MAX_LEN, D)

    out = middle_forward(fromencoder, input_masking, params, pe)
    out = jax.block_until_ready(out)

    assert out.shape == (B, S, D)
    assert bool(jnp.all(jnp.isfinite(out)))
    print("KERNEL_OK")
</pallas_src>

<mosaic_0001>
module attributes {stable_mosaic.version = 11 : i64} {
  func.func @_attn_block_kernel(%arg0: i32, %arg1: memref<1x8x128xf32, #tpu.memory_space<vmem>>, %arg2: memref<1x1x128xf32, #tpu.memory_space<vmem>>, %arg3: memref<128x384xbf16, #tpu.memory_space<vmem>>, %arg4: memref<1x384xf32, #tpu.memory_space<vmem>>, %arg5: memref<128x128xbf16, #tpu.memory_space<vmem>>, %arg6: memref<1x128xf32, #tpu.memory_space<vmem>>, %arg7: memref<1x128xf32, #tpu.memory_space<vmem>>, %arg8: memref<1x128xf32, #tpu.memory_space<vmem>>, %arg9: memref<1x1x8xf32, #tpu.memory_space<vmem>>, %arg10: memref<1x8x128xf32, #tpu.memory_space<vmem>>) attributes {dimension_semantics = [#tpu.dimension_semantics<parallel>], iteration_bounds = array<i64: 2>, scalar_prefetch = 0 : i64, scratch_operands = 0 : i64, tpu.core_type = #tpu.core_type<tc>, window_params = [{transform_indices = @transform_0, window_bounds = array<i64: 1, 8, 128>}, {transform_indices = @transform_1, window_bounds = array<i64: 1, 1, 128>}, {pipeline_mode = #tpu.pipeline_mode<synchronous>, transform_indices = @transform_2, window_bounds = array<i64: 128, 384>}, {pipeline_mode = #tpu.pipeline_mode<synchronous>, transform_indices = @transform_3, window_bounds = array<i64: 1, 384>}, {pipeline_mode = #tpu.pipeline_mode<synchronous>, transform_indices = @transform_4, window_bounds = array<i64: 128, 128>}, {pipeline_mode = #tpu.pipeline_mode<synchronous>, transform_indices = @transform_5, window_bounds = array<i64: 1, 128>}, {pipeline_mode = #tpu.pipeline_mode<synchronous>, transform_indices = @transform_6, window_bounds = array<i64: 1, 128>}, {pipeline_mode = #tpu.pipeline_mode<synchronous>, transform_indices = @transform_7, window_bounds = array<i64: 1, 128>}, {transform_indices = @transform_8, window_bounds = array<i64: 1, 1, 8>}, {transform_indices = @transform_9, window_bounds = array<i64: 1, 8, 128>}]} {
    %c0 = arith.constant 0 : index
    %c0_0 = arith.constant 0 : index
    %c0_1 = arith.constant 0 : index
    %0 = vector.load %arg1[%c0, %c0_0, %c0_1] : memref<1x8x128xf32, #tpu.memory_space<vmem>>, vector<1x8x128xf32>
    %1 = vector.shape_cast %0 : vector<1x8x128xf32> to vector<8x128xf32>
    %cst = arith.constant 11.3137083 : f32
    %2 = vector.broadcast %cst : f32 to vector<8x128xf32>
    %3 = arith.mulf %1, %2 : vector<8x128xf32>
    %c0_2 = arith.constant 0 : index
    %c0_3 = arith.constant 0 : index
    %c0_4 = arith.constant 0 : index
    %4 = vector.load %arg2[%c0_2, %c0_3, %c0_4] : memref<1x1x128xf32, #tpu.memory_space<vmem>>, vector<1x1x128xf32>
    %5 = vector.shape_cast %4 : vector<1x1x128xf32> to vector<1x128xf32>
    %6 = vector.broadcast %5 : vector<1x128xf32> to vector<8x128xf32>
    %7 = arith.addf %3, %6 : vector<8x128xf32>
    %8 = arith.truncf %7 : vector<8x128xf32> to vector<8x128xbf16>
    %c0_5 = arith.constant 0 : index
    %c0_6 = arith.constant 0 : index
    %9 = vector.load %arg3[%c0_5, %c0_6] : memref<128x384xbf16, #tpu.memory_space<vmem>>, vector<128x384xbf16>
    %cst_7 = arith.constant dense<0.000000e+00> : vector<8x384xf32>
    %10 = tpu.matmul %8, %9, %cst_7 {dimension_numbers = #tpu.dot_dimension_numbers<[1], [0], [0], [1], [0, 0, 1, 1], [], []>} : vector<8x128xbf16>, vector<128x384xbf16>, vector<8x384xf32> -> vector<8x384xf32>
    %c0_8 = arith.constant 0 : index
    %c0_9 = arith.constant 0 : index
    %11 = vector.load %arg4[%c0_8, %c0_9] : memref<1x384xf32, #tpu.memory_space<vmem>>, vector<1x384xf32>
    %12 = vector.broadcast %11 : vector<1x384xf32> to vector<8x384xf32>
    %13 = arith.addf %10, %12 : vector<8x384xf32>
    %c0_10 = arith.constant 0 : index
    %c0_11 = arith.constant 0 : index
    %c0_12 = arith.constant 0 : index
    %14 = vector.load %arg9[%c0_10, %c0_11, %c0_12] : memref<1x1x8xf32, #tpu.memory_space<vmem>>, vector<1x1x8xf32>
    %15 = vector.shape_cast %14 : vector<1x1x8xf32> to vector<1x8xf32>
    %16 = vector.extract_strided_slice %13 {offsets = [0, 0], sizes = [8, 64], strides = [1, 1]} : vector<8x384xf32> to vector<8x64xf32>
    %17 = arith.truncf %16 : vector<8x64xf32> to vector<8x64xbf16>
    %18 = vector.extract_strided_slice %13 {offsets = [0, 128], sizes = [8, 64], strides = [1, 1]} : vector<8x384xf32> to vector<8x64xf32>
    %19 = arith.truncf %18 : vector<8x64xf32> to vector<8x64xbf16>
    %20 = vector.extract_strided_slice %13 {offsets = [0, 256], sizes = [8, 64], strides = [1, 1]} : vector<8x384xf32> to vector<8x64xf32>
    %21 = arith.truncf %20 : vector<8x64xf32> to vector<8x64xbf16>
    %cst_13 = arith.constant dense<0.000000e+00> : vector<8x8xf32>
    %22 = tpu.matmul %17, %19, %cst_13 {dimension_numbers = #tpu.dot_dimension_numbers<[1], [1], [0], [0], [0, 0, 1, 0], [], []>} : vector<8x64xbf16>, vector<8x64xbf16>, vector<8x8xf32> -> vector<8x8xf32>
    %cst_14 = arith.constant 1.250000e-01 : f32
    %23 = vector.broadcast %cst_14 : f32 to vector<8x8xf32>
    %24 = arith.mulf %22, %23 : vector<8x8xf32>
    %25 = vector.broadcast %15 : vector<1x8xf32> to vector<8x8xf32>
    %26 = arith.addf %24, %25 : vector<8x8xf32>
    %cst_15 = arith.constant dense<0xFF800000> : vector<8xf32>
    %27 = vector.multi_reduction <maximumf>, %26, %cst_15 [1] : vector<8x8xf32> to vector<8xf32>
    %28 = vector.shape_cast %27 : vector<8xf32> to vector<8x1xf32>
    %29 = vector.broadcast %28 : vector<8x1xf32> to vector<8x8xf32>
    %30 = arith.subf %26, %29 : vector<8x8xf32>
    %31 = math.exp %30 : vector<8x8xf32>
    %cst_16 = arith.constant dense<0.000000e+00> : vector<8xf32>
    %32 = vector.multi_reduction <add>, %31, %cst_16 [1] : vector<8x8xf32> to vector<8xf32>
    %33 = vector.shape_cast %32 : vector<8xf32> to vector<8x1xf32>
    %34 = tpu.reciprocal %33 {approx = true} : vector<8x1xf32> -> vector<8x1xf32>
    %35 = vector.broadcast %34 : vector<8x1xf32> to vector<8x8xf32>
    %36 = arith.mulf %31, %35 : vector<8x8xf32>
    %37 = arith.truncf %36 : vector<8x8xf32> to vector<8x8xbf16>
    %cst_17 = arith.constant dense<0.000000e+00> : vector<8x64xf32>
    %38 = tpu.matmul %37, %21, %cst_17 {dimension_numbers = #tpu.dot_dimension_numbers<[1], [0], [0], [1], [0, 0, 1, 1], [], []>} : vector<8x8xbf16>, vector<8x64xbf16>, vector<8x64xf32> -> vector<8x64xf32>
    %39 = vector.extract_strided_slice %13 {offsets = [0, 64], sizes = [8, 64], strides = [1, 1]} : vector<8x384xf32> to vector<8x64xf32>
    %40 = arith.truncf %39 : vector<8x64xf32> to vector<8x64xbf16>
    %41 = vector.extract_strided_slice %13 {offsets = [0, 192], sizes = [8, 64], strides = [1, 1]} : vector<8x384xf32> to vector<8x64xf32>
    %42 = arith.truncf %41 : vector<8x64xf32> to vector<8x64xbf16>
    %43 = vector.extract_strided_slice %13 {offsets = [0, 320], sizes = [8, 64], strides = [1, 1]} : vector<8x384xf32> to vector<8x64xf32>
    %44 = arith.truncf %43 : vector<8x64xf32> to vector<8x64xbf16>
    %cst_18 = arith.constant dense<0.000000e+00> : vector<8x8xf32>
    %45 = tpu.matmul %40, %42, %cst_18 {dimension_numbers = #tpu.dot_dimension_numbers<[1], [1], [0], [0], [0, 0, 1, 0], [], []>} : vector<8x64xbf16>, vector<8x64xbf16>, vector<8x8xf32> -> vector<8x8xf32>
    %cst_19 = arith.constant 1.250000e-01 : f32
    %46 = vector.broadcast %cst_19 : f32 to vector<8x8xf32>
    %47 = arith.mulf %45, %46 : vector<8x8xf32>
    %48 = vector.broadcast %15 : vector<1x8xf32> to vector<8x8xf32>
    %49 = arith.addf %47, %48 : vector<8x8xf32>
    %cst_20 = arith.constant dense<0xFF800000> : vector<8xf32>
    %50 = vector.multi_reduction <maximumf>, %49, %cst_20 [1] : vector<8x8xf32> to vector<8xf32>
    %51 = vector.shape_cast %50 : vector<8xf32> to vector<8x1xf32>
    %52 = vector.broadcast %51 : vector<8x1xf32> to vector<8x8xf32>
    %53 = arith.subf %49, %52 : vector<8x8xf32>
    %54 = math.exp %53 : vector<8x8xf32>
    %cst_21 = arith.constant dense<0.000000e+00> : vector<8xf32>
    %55 = vector.multi_reduction <add>, %54, %cst_21 [1] : vector<8x8xf32> to vector<8xf32>
    %56 = vector.shape_cast %55 : vector<8xf32> to vector<8x1xf32>
    %57 = tpu.reciprocal %56 {approx = true} : vector<8x1xf32> -> vector<8x1xf32>
    %58 = vector.broadcast %57 : vector<8x1xf32> to vector<8x8xf32>
    %59 = arith.mulf %54, %58 : vector<8x8xf32>
    %60 = arith.truncf %59 : vector<8x8xf32> to vector<8x8xbf16>
    %cst_22 = arith.constant dense<0.000000e+00> : vector<8x64xf32>
    %61 = tpu.matmul %60, %44, %cst_22 {dimension_numbers = #tpu.dot_dimension_numbers<[1], [0], [0], [1], [0, 0, 1, 1], [], []>} : vector<8x8xbf16>, vector<8x64xbf16>, vector<8x64xf32> -> vector<8x64xf32>
    %62 = tpu.concatenate %38, %61 in 1 : vector<8x64xf32>, vector<8x64xf32> -> vector<8x128xf32>
    %63 = arith.truncf %62 : vector<8x128xf32> to vector<8x128xbf16>
    %c0_23 = arith.constant 0 : index
    %c0_24 = arith.constant 0 : index
    %64 = vector.load %arg5[%c0_23, %c0_24] : memref<128x128xbf16, #tpu.memory_space<vmem>>, vector<128x128xbf16>
    %cst_25 = arith.constant dense<0.000000e+00> : vector<8x128xf32>
    %65 = tpu.matmul %63, %64, %cst_25 {dimension_numbers = #tpu.dot_dimension_numbers<[1], [0], [0], [1], [0, 0, 1, 1], [], []>} : vector<8x128xbf16>, vector<128x128xbf16>, vector<8x128xf32> -> vector<8x128xf32>
    %c0_26 = arith.constant 0 : index
    %c0_27 = arith.constant 0 : index
    %66 = vector.load %arg6[%c0_26, %c0_27] : memref<1x128xf32, #tpu.memory_space<vmem>>, vector<1x128xf32>
    %67 = vector.broadcast %66 : vector<1x128xf32> to vector<8x128xf32>
    %68 = arith.addf %65, %67 : vector<8x128xf32>
    %69 = arith.addf %7, %68 : vector<8x128xf32>
    %c0_28 = arith.constant 0 : index
    %c0_29 = arith.constant 0 : index
    %70 = vector.load %arg7[%c0_28, %c0_29] : memref<1x128xf32, #tpu.memory_space<vmem>>, vector<1x128xf32>
    %c0_30 = arith.constant 0 : index
    %c0_31 = arith.constant 0 : index
    %71 = vector.load %arg8[%c0_30, %c0_31] : memref<1x128xf32, #tpu.memory_space<vmem>>, vector<1x128xf32>
    %cst_32 = arith.constant dense<0.000000e+00> : vector<8xf32>
    %72 = vector.multi_reduction <add>, %69, %cst_32 [1] : vector<8x128xf32> to vector<8xf32>
    %73 = vector.shape_cast %72 : vector<8xf32> to vector<8x1xf32>
    %cst_33 = arith.constant 1.280000e+02 : f32
    %74 = vector.broadcast %cst_33 : f32 to vector<8x1xf32>
    %75 = arith.divf %73, %74 : vector<8x1xf32>
    %76 = vector.broadcast %75 : vector<8x1xf32> to vector<8x128xf32>
    %77 = arith.subf %69, %76 : vector<8x128xf32>
    %78 = arith.mulf %77, %77 : vector<8x128xf32>
    %cst_34 = arith.constant dense<0.000000e+00> : vector<8xf32>
    %79 = vector.multi_reduction <add>, %78, %cst_34 [1] : vector<8x128xf32> to vector<8xf32>
    %80 = vector.shape_cast %79 : vector<8xf32> to vector<8x1xf32>
    %cst_35 = arith.constant 1.280000e+02 : f32
    %81 = vector.broadcast %cst_35 : f32 to vector<8x1xf32>
    %82 = arith.divf %80, %81 : vector<8x1xf32>
    %cst_36 = arith.constant 9.99999974E-6 : f32
    %83 = vector.broadcast %cst_36 : f32 to vector<8x1xf32>
    %84 = arith.addf %82, %83 : vector<8x1xf32>
    %85 = math.rsqrt %84 : vector<8x1xf32>
    %86 = vector.broadcast %85 : vector<8x1xf32> to vector<8x128xf32>
    %87 = arith.mulf %77, %86 : vector<8x128xf32>
    %88 = vector.broadcast %70 : vector<1x128xf32> to vector<8x128xf32>
    %89 = arith.mulf %87, %88 : vector<8x128xf32>
    %90 = vector.broadcast %71 : vector<1x128xf32> to vector<8x128xf32>
    %91 = arith.addf %89, %90 : vector<8x128xf32>
    %c0_37 = arith.constant 0 : index
    %c0_38 = arith.constant 0 : index
    %c0_39 = arith.constant 0 : index
    %92 = vector.load %arg10[%c0_37, %c0_38, %c0_39] : memref<1x8x128xf32, #tpu.memory_space<vmem>>, vector<1x8x128xf32>
    %93 = vector.shape_cast %92 : vector<1x8x128xf32> to vector<8x128xf32>
    %94 = vector.shape_cast %91 : vector<8x128xf32> to vector<1x8x128xf32>
    tpu.vector_store %arg10[%c0_37, %c0_38, %c0_39], %94 {strides = array<i32>} : memref<1x8x128xf32, #tpu.memory_space<vmem>>, vector<1x8x128xf32>,
    return
  }
  func.func @transform_0(%arg0: i32) -> (i32, i32, i32) {
    %c0_i32 = arith.constant 0 : i32
    %c0_i32_0 = arith.constant 0 : i32
    %c0_i32_1 = arith.constant 0 : i32
    return %arg0, %c0_i32, %c0_i32_0 : i32, i32, i32
  }
  func.func @transform_1(%arg0: i32) -> (i32, i32, i32) {
    %c0_i32 = arith.constant 0 : i32
    %c0_i32_0 = arith.constant 0 : i32
    %c0_i32_1 = arith.constant 0 : i32
    return %arg0, %c0_i32, %c0_i32_0 : i32, i32, i32
  }
  func.func @transform_2(%arg0: i32) -> (i32, i32) {
    %c0_i32 = arith.constant 0 : i32
    %c0_i32_0 = arith.constant 0 : i32
    %c0_i32_1 = arith.constant 0 : i32
    return %c0_i32, %c0_i32_0 : i32, i32
  }
  func.func @transform_3(%arg0: i32) -> (i32, i32) {
    %c0_i32 = arith.constant 0 : i32
    %c0_i32_0 = arith.constant 0 : i32
    %c0_i32_1 = arith.constant 0 : i32
    return %c0_i32, %c0_i32_0 : i32, i32
  }
  func.func @transform_4(%arg0: i32) -> (i32, i32) {
    %c0_i32 = arith.constant 0 : i32
    %c0_i32_0 = arith.constant 0 : i32
    %c0_i32_1 = arith.constant 0 : i32
    return %c0_i32, %c0_i32_0 : i32, i32
  }
  func.func @transform_5(%arg0: i32) -> (i32, i32) {
    %c0_i32 = arith.constant 0 : i32
    %c0_i32_0 = arith.constant 0 : i32
    %c0_i32_1 = arith.constant 0 : i32
    return %c0_i32, %c0_i32_0 : i32, i32
  }
  func.func @transform_6(%arg0: i32) -> (i32, i32) {
    %c0_i32 = arith.constant 0 : i32
    %c0_i32_0 = arith.constant 0 : i32
    %c0_i32_1 = arith.constant 0 : i32
    return %c0_i32, %c0_i32_0 : i32, i32
  }
  func.func @transform_7(%arg0: i32) -> (i32, i32) {
    %c0_i32 = arith.constant 0 : i32
    %c0_i32_0 = arith.constant 0 : i32
    %c0_i32_1 = arith.constant 0 : i32
    return %c0_i32, %c0_i32_0 : i32, i32
  }
  func.func @transform_8(%arg0: i32) -> (i32, i32, i32) {
    %c0_i32 = arith.constant 0 : i32
    %c0_i32_0 = arith.constant 0 : i32
    %c0_i32_1 = arith.constant 0 : i32
    return %arg0, %c0_i32, %c0_i32_0 : i32, i32, i32
  }
  func.func @transform_9(%arg0: i32) -> (i32, i32, i32) {
    %c0_i32 = arith.constant 0 : i32
    %c0_i32_0 = arith.constant 0 : i32
    %c0_i32_1 = arith.constant 0 : i32
    return %arg0, %c0_i32, %c0_i32_0 : i32, i32, i32
  }
}

module attributes {stable_mosaic.version = 11 : i64} {
  func.func @_ffn_block_kernel(%arg0: i32, %arg1: memref<8x128xf32, #tpu.memory_space<vmem>>, %arg2: memref<128x256xbf16, #tpu.memory_space<vmem>>, %arg3: memref<1x256xf32, #tpu.memory_space<vmem>>, %arg4: memref<256x128xbf16, #tpu.memory_space<vmem>>, %arg5: memref<1x128xf32, #tpu.memory_space<vmem>>, %arg6: memref<1x128xf32, #tpu.memory_space<vmem>>, %arg7: memref<1x128xf32, #tpu.memory_space<vmem>>, %arg8: memref<8x128xf32, #tpu.memory_space<vmem>>) attributes {dimension_semantics = [#tpu.dimension_semantics<parallel>], iteration_bounds = array<i64: 2>, scalar_prefetch = 0 : i64, scratch_operands = 0 : i64, tpu.core_type = #tpu.core_type<tc>, window_params = [{transform_indices = @transform_0, window_bounds = array<i64: 8, 128>}, {pipeline_mode = #tpu.pipeline_mode<synchronous>, transform_indices = @transform_1, window_bounds = array<i64: 128, 256>}, {pipeline_mode = #tpu.pipeline_mode<synchronous>, transform_indices = @transform_2, window_bounds = array<i64: 1, 256>}, {pipeline_mode = #tpu.pipeline_mode<synchronous>, transform_indices = @transform_3, window_bounds = array<i64: 256, 128>}, {pipeline_mode = #tpu.pipeline_mode<synchronous>, transform_indices = @transform_4, window_bounds = array<i64: 1, 128>}, {pipeline_mode = #tpu.pipeline_mode<synchronous>, transform_indices = @transform_5, window_bounds = array<i64: 1, 128>}, {pipeline_mode = #tpu.pipeline_mode<synchronous>, transform_indices = @transform_6, window_bounds = array<i64: 1, 128>}, {transform_indices = @transform_7, window_bounds = array<i64: 8, 128>}]} {
    %c0 = arith.constant 0 : index
    %c0_0 = arith.constant 0 : index
    %0 = vector.load %arg1[%c0, %c0_0] : memref<8x128xf32, #tpu.memory_space<vmem>>, vector<8x128xf32>
    %1 = arith.truncf %0 : vector<8x128xf32> to vector<8x128xbf16>
    %c0_1 = arith.constant 0 : index
    %c0_2 = arith.constant 0 : index
    %2 = vector.load %arg2[%c0_1, %c0_2] : memref<128x256xbf16, #tpu.memory_space<vmem>>, vector<128x256xbf16>
    %cst = arith.constant dense<0.000000e+00> : vector<8x256xf32>
    %3 = tpu.matmul %1, %2, %cst {dimension_numbers = #tpu.dot_dimension_numbers<[1], [0], [0], [1], [0, 0, 1, 1], [], []>} : vector<8x128xbf16>, vector<128x256xbf16>, vector<8x256xf32> -> vector<8x256xf32>
    %c0_3 = arith.constant 0 : index
    %c0_4 = arith.constant 0 : index
    %4 = vector.load %arg3[%c0_3, %c0_4] : memref<1x256xf32, #tpu.memory_space<vmem>>, vector<1x256xf32>
    %5 = vector.broadcast %4 : vector<1x256xf32> to vector<8x256xf32>
    %6 = arith.addf %3, %5 : vector<8x256xf32>
    %cst_5 = arith.constant 0.000000e+00 : f32
    %7 = vector.broadcast %cst_5 : f32 to vector<8x256xf32>
    %8 = arith.maximumf %6, %7 : vector<8x256xf32>
    %9 = arith.truncf %8 : vector<8x256xf32> to vector<8x256xbf16>
    %c0_6 = arith.constant 0 : index
    %c0_7 = arith.constant 0 : index
    %10 = vector.load %arg4[%c0_6, %c0_7] : memref<256x128xbf16, #tpu.memory_space<vmem>>, vector<256x128xbf16>
    %cst_8 = arith.constant dense<0.000000e+00> : vector<8x128xf32>
    %11 = tpu.matmul %9, %10, %cst_8 {dimension_numbers = #tpu.dot_dimension_numbers<[1], [0], [0], [1], [0, 0, 1, 1], [], []>} : vector<8x256xbf16>, vector<256x128xbf16>, vector<8x128xf32> -> vector<8x128xf32>
    %c0_9 = arith.constant 0 : index
    %c0_10 = arith.constant 0 : index
    %12 = vector.load %arg5[%c0_9, %c0_10] : memref<1x128xf32, #tpu.memory_space<vmem>>, vector<1x128xf32>
    %13 = vector.broadcast %12 : vector<1x128xf32> to vector<8x128xf32>
    %14 = arith.addf %11, %13 : vector<8x128xf32>
    %15 = arith.addf %0, %14 : vector<8x128xf32>
    %c0_11 = arith.constant 0 : index
    %c0_12 = arith.constant 0 : index
    %16 = vector.load %arg6[%c0_11, %c0_12] : memref<1x128xf32, #tpu.memory_space<vmem>>, vector<1x128xf32>
    %c0_13 = arith.constant 0 : index
    %c0_14 = arith.constant 0 : index
    %17 = vector.load %arg7[%c0_13, %c0_14] : memref<1x128xf32, #tpu.memory_space<vmem>>, vector<1x128xf32>
    %cst_15 = arith.constant dense<0.000000e+00> : vector<8xf32>
    %18 = vector.multi_reduction <add>, %15, %cst_15 [1] : vector<8x128xf32> to vector<8xf32>
    %19 = vector.shape_cast %18 : vector<8xf32> to vector<8x1xf32>
    %cst_16 = arith.constant 1.280000e+02 : f32
    %20 = vector.broadcast %cst_16 : f32 to vector<8x1xf32>
    %21 = arith.divf %19, %20 : vector<8x1xf32>
    %22 = vector.broadcast %21 : vector<8x1xf32> to vector<8x128xf32>
    %23 = arith.subf %15, %22 : vector<8x128xf32>
    %24 = arith.mulf %23, %23 : vector<8x128xf32>
    %cst_17 = arith.constant dense<0.000000e+00> : vector<8xf32>
    %25 = vector.multi_reduction <add>, %24, %cst_17 [1] : vector<8x128xf32> to vector<8xf32>
    %26 = vector.shape_cast %25 : vector<8xf32> to vector<8x1xf32>
    %cst_18 = arith.constant 1.280000e+02 : f32
    %27 = vector.broadcast %cst_18 : f32 to vector<8x1xf32>
    %28 = arith.divf %26, %27 : vector<8x1xf32>
    %cst_19 = arith.constant 9.99999974E-6 : f32
    %29 = vector.broadcast %cst_19 : f32 to vector<8x1xf32>
    %30 = arith.addf %28, %29 : vector<8x1xf32>
    %31 = math.rsqrt %30 : vector<8x1xf32>
    %32 = vector.broadcast %31 : vector<8x1xf32> to vector<8x128xf32>
    %33 = arith.mulf %23, %32 : vector<8x128xf32>
    %34 = vector.broadcast %16 : vector<1x128xf32> to vector<8x128xf32>
    %35 = arith.mulf %33, %34 : vector<8x128xf32>
    %36 = vector.broadcast %17 : vector<1x128xf32> to vector<8x128xf32>
    %37 = arith.addf %35, %36 : vector<8x128xf32>
    %c0_20 = arith.constant 0 : index
    %c0_21 = arith.constant 0 : index
    %38 = vector.load %arg8[%c0_20, %c0_21] : memref<8x128xf32, #tpu.memory_space<vmem>>, vector<8x128xf32>
    tpu.vector_store %arg8[%c0_20, %c0_21], %37 {strides = array<i32>} : memref<8x128xf32, #tpu.memory_space<vmem>>, vector<8x128xf32>,
    return
  }
  func.func @transform_0(%arg0: i32) -> (i32, i32) {
    %c0_i32 = arith.constant 0 : i32
    %c0_i32_0 = arith.constant 0 : i32
    return %arg0, %c0_i32 : i32, i32
  }
  func.func @transform_1(%arg0: i32) -> (i32, i32) {
    %c0_i32 = arith.constant 0 : i32
    %c0_i32_0 = arith.constant 0 : i32
    %c0_i32_1 = arith.constant 0 : i32
    return %c0_i32, %c0_i32_0 : i32, i32
  }
  func.func @transform_2(%arg0: i32) -> (i32, i32) {
    %c0_i32 = arith.constant 0 : i32
    %c0_i32_0 = arith.constant 0 : i32
    %c0_i32_1 = arith.constant 0 : i32
    return %c0_i32, %c0_i32_0 : i32, i32
  }
  func.func @transform_3(%arg0: i32) -> (i32, i32) {
    %c0_i32 = arith.constant 0 : i32
    %c0_i32_0 = arith.constant 0 : i32
    %c0_i32_1 = arith.constant 0 : i32
    return %c0_i32, %c0_i32_0 : i32, i32
  }
  func.func @transform_4(%arg0: i32) -> (i32, i32) {
    %c0_i32 = arith.constant 0 : i32
    %c0_i32_0 = arith.constant 0 : i32
    %c0_i32_1 = arith.constant 0 : i32
    return %c0_i32, %c0_i32_0 : i32, i32
  }
  func.func @transform_5(%arg0: i32) -> (i32, i32) {
    %c0_i32 = arith.constant 0 : i32
    %c0_i32_0 = arith.constant 0 : i32
    %c0_i32_1 = arith.constant 0 : i32
    return %c0_i32, %c0_i32_0 : i32, i32
  }
  func.func @transform_6(%arg0: i32) -> (i32, i32) {
    %c0_i32 = arith.constant 0 : i32
    %c0_i32_0 = arith.constant 0 : i32
    %c0_i32_1 = arith.constant 0 : i32
    return %c0_i32, %c0_i32_0 : i32, i32
  }
  func.func @transform_7(%arg0: i32) -> (i32, i32) {
    %c0_i32 = arith.constant 0 : i32
    %c0_i32_0 = arith.constant 0 : i32
    return %arg0, %c0_i32 : i32, i32
  }
}

module attributes {stable_mosaic.version = 11 : i64} {
  func.func @_ffn_block_kernel(%arg0: i32, %arg1: memref<8x128xf32, #tpu.memory_space<vmem>>, %arg2: memref<128x256xbf16, #tpu.memory_space<vmem>>, %arg3: memref<1x256xf32, #tpu.memory_space<vmem>>, %arg4: memref<256x128xbf16, #tpu.memory_space<vmem>>, %arg5: memref<1x128xf32, #tpu.memory_space<vmem>>, %arg6: memref<1x128xf32, #tpu.memory_space<vmem>>, %arg7: memref<1x128xf32, #tpu.memory_space<vmem>>, %arg8: memref<8x128xf32, #tpu.memory_space<vmem>>) attributes {dimension_semantics = [#tpu.dimension_semantics<parallel>], iteration_bounds = array<i64: 2>, scalar_prefetch = 0 : i64, scratch_operands = 0 : i64, tpu.core_type = #tpu.core_type<tc>, window_params = [{transform_indices = @transform_0, window_bounds = array<i64: 8, 128>}, {pipeline_mode = #tpu.pipeline_mode<synchronous>, transform_indices = @transform_1, window_bounds = array<i64: 128, 256>}, {pipeline_mode = #tpu.pipeline_mode<synchronous>, transform_indices = @transform_2, window_bounds = array<i64: 1, 256>}, {pipeline_mode = #tpu.pipeline_mode<synchronous>, transform_indices = @transform_3, window_bounds = array<i64: 256, 128>}, {pipeline_mode = #tpu.pipeline_mode<synchronous>, transform_indices = @transform_4, window_bounds = array<i64: 1, 128>}, {pipeline_mode = #tpu.pipeline_mode<synchronous>, transform_indices = @transform_5, window_bounds = array<i64: 1, 128>}, {pipeline_mode = #tpu.pipeline_mode<synchronous>, transform_indices = @transform_6, window_bounds = array<i64: 1, 128>}, {transform_indices = @transform_7, window_bounds = array<i64: 8, 128>}]} {
    %c0 = arith.constant 0 : index
    %c0_0 = arith.constant 0 : index
    %0 = vector.load %arg1[%c0, %c0_0] : memref<8x128xf32, #tpu.memory_space<vmem>>, vector<8x128xf32>
    %1 = arith.truncf %0 : vector<8x128xf32> to vector<8x128xbf16>
    %c0_1 = arith.constant 0 : index
    %c0_2 = arith.constant 0 : index
    %2 = vector.load %arg2[%c0_1, %c0_2] : memref<128x256xbf16, #tpu.memory_space<vmem>>, vector<128x256xbf16>
    %cst = arith.constant dense<0.000000e+00> : vector<8x256xf32>
    %3 = tpu.matmul %1, %2, %cst {dimension_numbers = #tpu.dot_dimension_numbers<[1], [0], [0], [1], [0, 0, 1, 1], [], []>} : vector<8x128xbf16>, vector<128x256xbf16>, vector<8x256xf32> -> vector<8x256xf32>
    %c0_3 = arith.constant 0 : index
    %c0_4 = arith.constant 0 : index
    %4 = vector.load %arg3[%c0_3, %c0_4] : memref<1x256xf32, #tpu.memory_space<vmem>>, vector<1x256xf32>
    %5 = vector.broadcast %4 : vector<1x256xf32> to vector<8x256xf32>
    %6 = arith.addf %3, %5 : vector<8x256xf32>
    %cst_5 = arith.constant 0.000000e+00 : f32
    %7 = vector.broadcast %cst_5 : f32 to vector<8x256xf32>
    %8 = arith.maximumf %6, %7 : vector<8x256xf32>
    %9 = arith.truncf %8 : vector<8x256xf32> to vector<8x256xbf16>
    %c0_6 = arith.constant 0 : index
    %c0_7 = arith.constant 0 : index
    %10 = vector.load %arg4[%c0_6, %c0_7] : memref<256x128xbf16, #tpu.memory_space<vmem>>, vector<256x128xbf16>
    %cst_8 = arith.constant dense<0.000000e+00> : vector<8x128xf32>
    %11 = tpu.matmul %9, %10, %cst_8 {dimension_numbers = #tpu.dot_dimension_numbers<[1], [0], [0], [1], [0, 0, 1, 1], [], []>} : vector<8x256xbf16>, vector<256x128xbf16>, vector<8x128xf32> -> vector<8x128xf32>
    %c0_9 = arith.constant 0 : index
    %c0_10 = arith.constant 0 : index
    %12 = vector.load %arg5[%c0_9, %c0_10] : memref<1x128xf32, #tpu.memory_space<vmem>>, vector<1x128xf32>
    %13 = vector.broadcast %12 : vector<1x128xf32> to vector<8x128xf32>
    %14 = arith.addf %11, %13 : vector<8x128xf32>
    %15 = arith.addf %0, %14 : vector<8x128xf32>
    %c0_11 = arith.constant 0 : index
    %c0_12 = arith.constant 0 : index
    %16 = vector.load %arg6[%c0_11, %c0_12] : memref<1x128xf32, #tpu.memory_space<vmem>>, vector<1x128xf32>
    %c0_13 = arith.constant 0 : index
    %c0_14 = arith.constant 0 : index
    %17 = vector.load %arg7[%c0_13, %c0_14] : memref<1x128xf32, #tpu.memory_space<vmem>>, vector<1x128xf32>
    %cst_15 = arith.constant dense<0.000000e+00> : vector<8xf32>
    %18 = vector.multi_reduction <add>, %15, %cst_15 [1] : vector<8x128xf32> to vector<8xf32>
    %19 = vector.shape_cast %18 : vector<8xf32> to vector<8x1xf32>
    %cst_16 = arith.constant 1.280000e+02 : f32
    %20 = vector.broadcast %cst_16 : f32 to vector<8x1xf32>
    %21 = arith.divf %19, %20 : vector<8x1xf32>
    %22 = vector.broadcast %21 : vector<8x1xf32> to vector<8x128xf32>
    %23 = arith.subf %15, %22 : vector<8x128xf32>
    %24 = arith.mulf %23, %23 : vector<8x128xf32>
    %cst_17 = arith.constant dense<0.000000e+00> : vector<8xf32>
    %25 = vector.multi_reduction <add>, %24, %cst_17 [1] : vector<8x128xf32> to vector<8xf32>
    %26 = vector.shape_cast %25 : vector<8xf32> to vector<8x1xf32>
    %cst_18 = arith.constant 1.280000e+02 : f32
    %27 = vector.broadcast %cst_18 : f32 to vector<8x1xf32>
    %28 = arith.divf %26, %27 : vector<8x1xf32>
    %cst_19 = arith.constant 9.99999974E-6 : f32
    %29 = vector.broadcast %cst_19 : f32 to vector<8x1xf32>
    %30 = arith.addf %28, %29 : vector<8x1xf32>
    %31 = math.rsqrt %30 : vector<8x1xf32>
    %32 = vector.broadcast %31 : vector<8x1xf32> to vector<8x128xf32>
    %33 = arith.mulf %23, %32 : vector<8x128xf32>
    %34 = vector.broadcast %16 : vector<1x128xf32> to vector<8x128xf32>
    %35 = arith.mulf %33, %34 : vector<8x128xf32>
    %36 = vector.broadcast %17 : vector<1x128xf32> to vector<8x128xf32>
    %37 = arith.addf %35, %36 : vector<8x128xf32>
    %c0_20 = arith.constant 0 : index
    %c0_21 = arith.constant 0 : index
    %38 = vector.load %arg8[%c0_20, %c0_21] : memref<8x128xf32, #tpu.memory_space<vmem>>, vector<8x128xf32>
    tpu.vector_store %arg8[%c0_20, %c0_21], %37 {strides = array<i32>} : memref<8x128xf32, #tpu.memory_space<vmem>>, vector<8x128xf32>,
    return
  }
  func.func @transform_0(%arg0: i32) -> (i32, i32) {
    %c0_i32 = arith.constant 0 : i32
    %c0_i32_0 = arith.constant 0 : i32
    return %arg0, %c0_i32 : i32, i32
  }
  func.func @transform_1(%arg0: i32) -> (i32, i32) {
    %c0_i32 = arith.constant 0 : i32
    %c0_i32_0 = arith.constant 0 : i32
    %c0_i32_1 = arith.constant 0 : i32
    return %c0_i32, %c0_i32_0 : i32, i32
  }
  func.func @transform_2(%arg0: i32) -> (i32, i32) {
    %c0_i32 = arith.constant 0 : i32
    %c0_i32_0 = arith.constant 0 : i32
    %c0_i32_1 = arith.constant 0 : i32
    return %c0_i32, %c0_i32_0 : i32, i32
  }
  func.func @transform_3(%arg0: i32) -> (i32, i32) {
    %c0_i32 = arith.constant 0 : i32
    %c0_i32_0 = arith.constant 0 : i32
    %c0_i32_1 = arith.constant 0 : i32
    return %c0_i32, %c0_i32_0 : i32, i32
  }
  func.func @transform_4(%arg0: i32) -> (i32, i32) {
    %c0_i32 = arith.constant 0 : i32
    %c0_i32_0 = arith.constant 0 : i32
    %c0_i32_1 = arith.constant 0 : i32
    return %c0_i32, %c0_i32_0 : i32, i32
  }
  func.func @transform_5(%arg0: i32) -> (i32, i32) {
    %c0_i32 = arith.constant 0 : i32
    %c0_i32_0 = arith.constant 0 : i32
    %c0_i32_1 = arith.constant 0 : i32
    return %c0_i32, %c0_i32_0 : i32, i32
  }
  func.func @transform_6(%arg0: i32) -> (i32, i32) {
    %c0_i32 = arith.constant 0 : i32
    %c0_i32_0 = arith.constant 0 : i32
    %c0_i32_1 = arith.constant 0 : i32
    return %c0_i32, %c0_i32_0 : i32, i32
  }
  func.func @transform_7(%arg0: i32) -> (i32, i32) {
    %c0_i32 = arith.constant 0 : i32
    %c0_i32_0 = arith.constant 0 : i32
    return %arg0, %c0_i32 : i32, i32
  }
}

module attributes {stable_mosaic.version = 11 : i64} {
  func.func @_attn_block_kernel(%arg0: i32, %arg1: memref<1x8x128xf32, #tpu.memory_space<vmem>>, %arg2: memref<128x384xbf16, #tpu.memory_space<vmem>>, %arg3: memref<1x384xf32, #tpu.memory_space<vmem>>, %arg4: memref<128x128xbf16, #tpu.memory_space<vmem>>, %arg5: memref<1x128xf32, #tpu.memory_space<vmem>>, %arg6: memref<1x128xf32, #tpu.memory_space<vmem>>, %arg7: memref<1x128xf32, #tpu.memory_space<vmem>>, %arg8: memref<1x1x8xf32, #tpu.memory_space<vmem>>, %arg9: memref<1x8x128xf32, #tpu.memory_space<vmem>>) attributes {dimension_semantics = [#tpu.dimension_semantics<parallel>], iteration_bounds = array<i64: 2>, scalar_prefetch = 0 : i64, scratch_operands = 0 : i64, tpu.core_type = #tpu.core_type<tc>, window_params = [{transform_indices = @transform_0, window_bounds = array<i64: 1, 8, 128>}, {pipeline_mode = #tpu.pipeline_mode<synchronous>, transform_indices = @transform_1, window_bounds = array<i64: 128, 384>}, {pipeline_mode = #tpu.pipeline_mode<synchronous>, transform_indices = @transform_2, window_bounds = array<i64: 1, 384>}, {pipeline_mode = #tpu.pipeline_mode<synchronous>, transform_indices = @transform_3, window_bounds = array<i64: 128, 128>}, {pipeline_mode = #tpu.pipeline_mode<synchronous>, transform_indices = @transform_4, window_bounds = array<i64: 1, 128>}, {pipeline_mode = #tpu.pipeline_mode<synchronous>, transform_indices = @transform_5, window_bounds = array<i64: 1, 128>}, {pipeline_mode = #tpu.pipeline_mode<synchronous>, transform_indices = @transform_6, window_bounds = array<i64: 1, 128>}, {transform_indices = @transform_7, window_bounds = array<i64: 1, 1, 8>}, {transform_indices = @transform_8, window_bounds = array<i64: 1, 8, 128>}]} {
    %c0 = arith.constant 0 : index
    %c0_0 = arith.constant 0 : index
    %c0_1 = arith.constant 0 : index
    %0 = vector.load %arg1[%c0, %c0_0, %c0_1] : memref<1x8x128xf32, #tpu.memory_space<vmem>>, vector<1x8x128xf32>
    %1 = vector.shape_cast %0 : vector<1x8x128xf32> to vector<8x128xf32>
    %2 = arith.truncf %1 : vector<8x128xf32> to vector<8x128xbf16>
    %c0_2 = arith.constant 0 : index
    %c0_3 = arith.constant 0 : index
    %3 = vector.load %arg2[%c0_2, %c0_3] : memref<128x384xbf16, #tpu.memory_space<vmem>>, vector<128x384xbf16>
    %cst = arith.constant dense<0.000000e+00> : vector<8x384xf32>
    %4 = tpu.matmul %2, %3, %cst {dimension_numbers = #tpu.dot_dimension_numbers<[1], [0], [0], [1], [0, 0, 1, 1], [], []>} : vector<8x128xbf16>, vector<128x384xbf16>, vector<8x384xf32> -> vector<8x384xf32>
    %c0_4 = arith.constant 0 : index
    %c0_5 = arith.constant 0 : index
    %5 = vector.load %arg3[%c0_4, %c0_5] : memref<1x384xf32, #tpu.memory_space<vmem>>, vector<1x384xf32>
    %6 = vector.broadcast %5 : vector<1x384xf32> to vector<8x384xf32>
    %7 = arith.addf %4, %6 : vector<8x384xf32>
    %c0_6 = arith.constant 0 : index
    %c0_7 = arith.constant 0 : index
    %c0_8 = arith.constant 0 : index
    %8 = vector.load %arg8[%c0_6, %c0_7, %c0_8] : memref<1x1x8xf32, #tpu.memory_space<vmem>>, vector<1x1x8xf32>
    %9 = vector.shape_cast %8 : vector<1x1x8xf32> to vector<1x8xf32>
    %10 = vector.extract_strided_slice %7 {offsets = [0, 0], sizes = [8, 64], strides = [1, 1]} : vector<8x384xf32> to vector<8x64xf32>
    %11 = arith.truncf %10 : vector<8x64xf32> to vector<8x64xbf16>
    %12 = vector.extract_strided_slice %7 {offsets = [0, 128], sizes = [8, 64], strides = [1, 1]} : vector<8x384xf32> to vector<8x64xf32>
    %13 = arith.truncf %12 : vector<8x64xf32> to vector<8x64xbf16>
    %14 = vector.extract_strided_slice %7 {offsets = [0, 256], sizes = [8, 64], strides = [1, 1]} : vector<8x384xf32> to vector<8x64xf32>
    %15 = arith.truncf %14 : vector<8x64xf32> to vector<8x64xbf16>
    %cst_9 = arith.constant dense<0.000000e+00> : vector<8x8xf32>
    %16 = tpu.matmul %11, %13, %cst_9 {dimension_numbers = #tpu.dot_dimension_numbers<[1], [1], [0], [0], [0, 0, 1, 0], [], []>} : vector<8x64xbf16>, vector<8x64xbf16>, vector<8x8xf32> -> vector<8x8xf32>
    %cst_10 = arith.constant 1.250000e-01 : f32
    %17 = vector.broadcast %cst_10 : f32 to vector<8x8xf32>
    %18 = arith.mulf %16, %17 : vector<8x8xf32>
    %19 = vector.broadcast %9 : vector<1x8xf32> to vector<8x8xf32>
    %20 = arith.addf %18, %19 : vector<8x8xf32>
    %cst_11 = arith.constant dense<0xFF800000> : vector<8xf32>
    %21 = vector.multi_reduction <maximumf>, %20, %cst_11 [1] : vector<8x8xf32> to vector<8xf32>
    %22 = vector.shape_cast %21 : vector<8xf32> to vector<8x1xf32>
    %23 = vector.broadcast %22 : vector<8x1xf32> to vector<8x8xf32>
    %24 = arith.subf %20, %23 : vector<8x8xf32>
    %25 = math.exp %24 : vector<8x8xf32>
    %cst_12 = arith.constant dense<0.000000e+00> : vector<8xf32>
    %26 = vector.multi_reduction <add>, %25, %cst_12 [1] : vector<8x8xf32> to vector<8xf32>
    %27 = vector.shape_cast %26 : vector<8xf32> to vector<8x1xf32>
    %28 = tpu.reciprocal %27 {approx = true} : vector<8x1xf32> -> vector<8x1xf32>
    %29 = vector.broadcast %28 : vector<8x1xf32> to vector<8x8xf32>
    %30 = arith.mulf %25, %29 : vector<8x8xf32>
    %31 = arith.truncf %30 : vector<8x8xf32> to vector<8x8xbf16>
    %cst_13 = arith.constant dense<0.000000e+00> : vector<8x64xf32>
    %32 = tpu.matmul %31, %15, %cst_13 {dimension_numbers = #tpu.dot_dimension_numbers<[1], [0], [0], [1], [0, 0, 1, 1], [], []>} : vector<8x8xbf16>, vector<8x64xbf16>, vector<8x64xf32> -> vector<8x64xf32>
    %33 = vector.extract_strided_slice %7 {offsets = [0, 64], sizes = [8, 64], strides = [1, 1]} : vector<8x384xf32> to vector<8x64xf32>
    %34 = arith.truncf %33 : vector<8x64xf32> to vector<8x64xbf16>
    %35 = vector.extract_strided_slice %7 {offsets = [0, 192], sizes = [8, 64], strides = [1, 1]} : vector<8x384xf32> to vector<8x64xf32>
    %36 = arith.truncf %35 : vector<8x64xf32> to vector<8x64xbf16>
    %37 = vector.extract_strided_slice %7 {offsets = [0, 320], sizes = [8, 64], strides = [1, 1]} : vector<8x384xf32> to vector<8x64xf32>
    %38 = arith.truncf %37 : vector<8x64xf32> to vector<8x64xbf16>
    %cst_14 = arith.constant dense<0.000000e+00> : vector<8x8xf32>
    %39 = tpu.matmul %34, %36, %cst_14 {dimension_numbers = #tpu.dot_dimension_numbers<[1], [1], [0], [0], [0, 0, 1, 0], [], []>} : vector<8x64xbf16>, vector<8x64xbf16>, vector<8x8xf32> -> vector<8x8xf32>
    %cst_15 = arith.constant 1.250000e-01 : f32
    %40 = vector.broadcast %cst_15 : f32 to vector<8x8xf32>
    %41 = arith.mulf %39, %40 : vector<8x8xf32>
    %42 = vector.broadcast %9 : vector<1x8xf32> to vector<8x8xf32>
    %43 = arith.addf %41, %42 : vector<8x8xf32>
    %cst_16 = arith.constant dense<0xFF800000> : vector<8xf32>
    %44 = vector.multi_reduction <maximumf>, %43, %cst_16 [1] : vector<8x8xf32> to vector<8xf32>
    %45 = vector.shape_cast %44 : vector<8xf32> to vector<8x1xf32>
    %46 = vector.broadcast %45 : vector<8x1xf32> to vector<8x8xf32>
    %47 = arith.subf %43, %46 : vector<8x8xf32>
    %48 = math.exp %47 : vector<8x8xf32>
    %cst_17 = arith.constant dense<0.000000e+00> : vector<8xf32>
    %49 = vector.multi_reduction <add>, %48, %cst_17 [1] : vector<8x8xf32> to vector<8xf32>
    %50 = vector.shape_cast %49 : vector<8xf32> to vector<8x1xf32>
    %51 = tpu.reciprocal %50 {approx = true} : vector<8x1xf32> -> vector<8x1xf32>
    %52 = vector.broadcast %51 : vector<8x1xf32> to vector<8x8xf32>
    %53 = arith.mulf %48, %52 : vector<8x8xf32>
    %54 = arith.truncf %53 : vector<8x8xf32> to vector<8x8xbf16>
    %cst_18 = arith.constant dense<0.000000e+00> : vector<8x64xf32>
    %55 = tpu.matmul %54, %38, %cst_18 {dimension_numbers = #tpu.dot_dimension_numbers<[1], [0], [0], [1], [0, 0, 1, 1], [], []>} : vector<8x8xbf16>, vector<8x64xbf16>, vector<8x64xf32> -> vector<8x64xf32>
    %56 = tpu.concatenate %32, %55 in 1 : vector<8x64xf32>, vector<8x64xf32> -> vector<8x128xf32>
    %57 = arith.truncf %56 : vector<8x128xf32> to vector<8x128xbf16>
    %c0_19 = arith.constant 0 : index
    %c0_20 = arith.constant 0 : index
    %58 = vector.load %arg4[%c0_19, %c0_20] : memref<128x128xbf16, #tpu.memory_space<vmem>>, vector<128x128xbf16>
    %cst_21 = arith.constant dense<0.000000e+00> : vector<8x128xf32>
    %59 = tpu.matmul %57, %58, %cst_21 {dimension_numbers = #tpu.dot_dimension_numbers<[1], [0], [0], [1], [0, 0, 1, 1], [], []>} : vector<8x128xbf16>, vector<128x128xbf16>, vector<8x128xf32> -> vector<8x128xf32>
    %c0_22 = arith.constant 0 : index
    %c0_23 = arith.constant 0 : index
    %60 = vector.load %arg5[%c0_22, %c0_23] : memref<1x128xf32, #tpu.memory_space<vmem>>, vector<1x128xf32>
    %61 = vector.broadcast %60 : vector<1x128xf32> to vector<8x128xf32>
    %62 = arith.addf %59, %61 : vector<8x128xf32>
    %63 = arith.addf %1, %62 : vector<8x128xf32>
    %c0_24 = arith.constant 0 : index
    %c0_25 = arith.constant 0 : index
    %64 = vector.load %arg6[%c0_24, %c0_25] : memref<1x128xf32, #tpu.memory_space<vmem>>, vector<1x128xf32>
    %c0_26 = arith.constant 0 : index
    %c0_27 = arith.constant 0 : index
    %65 = vector.load %arg7[%c0_26, %c0_27] : memref<1x128xf32, #tpu.memory_space<vmem>>, vector<1x128xf32>
    %cst_28 = arith.constant dense<0.000000e+00> : vector<8xf32>
    %66 = vector.multi_reduction <add>, %63, %cst_28 [1] : vector<8x128xf32> to vector<8xf32>
    %67 = vector.shape_cast %66 : vector<8xf32> to vector<8x1xf32>
    %cst_29 = arith.constant 1.280000e+02 : f32
    %68 = vector.broadcast %cst_29 : f32 to vector<8x1xf32>
    %69 = arith.divf %67, %68 : vector<8x1xf32>
    %70 = vector.broadcast %69 : vector<8x1xf32> to vector<8x128xf32>
    %71 = arith.subf %63, %70 : vector<8x128xf32>
    %72 = arith.mulf %71, %71 : vector<8x128xf32>
    %cst_30 = arith.constant dense<0.000000e+00> : vector<8xf32>
    %73 = vector.multi_reduction <add>, %72, %cst_30 [1] : vector<8x128xf32> to vector<8xf32>
    %74 = vector.shape_cast %73 : vector<8xf32> to vector<8x1xf32>
    %cst_31 = arith.constant 1.280000e+02 : f32
    %75 = vector.broadcast %cst_31 : f32 to vector<8x1xf32>
    %76 = arith.divf %74, %75 : vector<8x1xf32>
    %cst_32 = arith.constant 9.99999974E-6 : f32
    %77 = vector.broadcast %cst_32 : f32 to vector<8x1xf32>
    %78 = arith.addf %76, %77 : vector<8x1xf32>
    %79 = math.rsqrt %78 : vector<8x1xf32>
    %80 = vector.broadcast %79 : vector<8x1xf32> to vector<8x128xf32>
    %81 = arith.mulf %71, %80 : vector<8x128xf32>
    %82 = vector.broadcast %64 : vector<1x128xf32> to vector<8x128xf32>
    %83 = arith.mulf %81, %82 : vector<8x128xf32>
    %84 = vector.broadcast %65 : vector<1x128xf32> to vector<8x128xf32>
    %85 = arith.addf %83, %84 : vector<8x128xf32>
    %c0_33 = arith.constant 0 : index
    %c0_34 = arith.constant 0 : index
    %c0_35 = arith.constant 0 : index
    %86 = vector.load %arg9[%c0_33, %c0_34, %c0_35] : memref<1x8x128xf32, #tpu.memory_space<vmem>>, vector<1x8x128xf32>
    %87 = vector.shape_cast %86 : vector<1x8x128xf32> to vector<8x128xf32>
    %88 = vector.shape_cast %85 : vector<8x128xf32> to vector<1x8x128xf32>
    tpu.vector_store %arg9[%c0_33, %c0_34, %c0_35], %88 {strides = array<i32>} : memref<1x8x128xf32, #tpu.memory_space<vmem>>, vector<1x8x128xf32>,
    return
  }
  func.func @transform_0(%arg0: i32) -> (i32, i32, i32) {
    %c0_i32 = arith.constant 0 : i32
    %c0_i32_0 = arith.constant 0 : i32
    %c0_i32_1 = arith.constant 0 : i32
    return %arg0, %c0_i32, %c0_i32_0 : i32, i32, i32
  }
  func.func @transform_1(%arg0: i32) -> (i32, i32) {
    %c0_i32 = arith.constant 0 : i32
    %c0_i32_0 = arith.constant 0 : i32
    %c0_i32_1 = arith.constant 0 : i32
    return %c0_i32, %c0_i32_0 : i32, i32
  }
  func.func @transform_2(%arg0: i32) -> (i32, i32) {
    %c0_i32 = arith.constant 0 : i32
    %c0_i32_0 = arith.constant 0 : i32
    %c0_i32_1 = arith.constant 0 : i32
    return %c0_i32, %c0_i32_0 : i32, i32
  }
  func.func @transform_3(%arg0: i32) -> (i32, i32) {
    %c0_i32 = arith.constant 0 : i32
    %c0_i32_0 = arith.constant 0 : i32
    %c0_i32_1 = arith.constant 0 : i32
    return %c0_i32, %c0_i32_0 : i32, i32
  }
  func.func @transform_4(%arg0: i32) -> (i32, i32) {
    %c0_i32 = arith.constant 0 : i32
    %c0_i32_0 = arith.constant 0 : i32
    %c0_i32_1 = arith.constant 0 : i32
    return %c0_i32, %c0_i32_0 : i32, i32
  }
  func.func @transform_5(%arg0: i32) -> (i32, i32) {
    %c0_i32 = arith.constant 0 : i32
    %c0_i32_0 = arith.constant 0 : i32
    %c0_i32_1 = arith.constant 0 : i32
    return %c0_i32, %c0_i32_0 : i32, i32
  }
  func.func @transform_6(%arg0: i32) -> (i32, i32) {
    %c0_i32 = arith.constant 0 : i32
    %c0_i32_0 = arith.constant 0 : i32
    %c0_i32_1 = arith.constant 0 : i32
    return %c0_i32, %c0_i32_0 : i32, i32
  }
  func.func @transform_7(%arg0: i32) -> (i32, i32, i32) {
    %c0_i32 = arith.constant 0 : i32
    %c0_i32_0 = arith.constant 0 : i32
    %c0_i32_1 = arith.constant 0 : i32
    return %arg0, %c0_i32, %c0_i32_0 : i32, i32, i32
  }
  func.func @transform_8(%arg0: i32) -> (i32, i32, i32) {
    %c0_i32 = arith.constant 0 : i32
    %c0_i32_0 = arith.constant 0 : i32
    %c0_i32_1 = arith.constant 0 : i32
    return %arg0, %c0_i32, %c0_i32_0 : i32, i32, i32
  }
}

</mosaic_0001>

<bundles_post_ra>
// kernel: middle_forward.5
= control target key start
LH: loop header
LB: loop body
LE: loop exit
PB: predicated region body
PF: predicated region fallthrough
CT: control target
= control target key end

     0   :  { %12 = vsyncpa [#allocation3], 0  ;;  %s1463_s0 = inlined_call_operand.vmem [shape: f32[16,128], index: 0, kind: input, shape index: {}]   ;;  %s1464_s1 = inlined_call_operand.hbm [shape: bf16[128,256], index: 1, kind: input, shape index: {}]   ;;  %s1465_s2 = inlined_call_operand.hbm [shape: f32[1,256], index: 2, kind: input, shape index: {}]   ;;  %s1466_s3 = inlined_call_operand.hbm [shape: bf16[256,128], index: 3, kind: input, shape index: {}]   ;;  %s1467_s4 = inlined_call_operand.hbm [shape: f32[1,128], index: 4, kind: input, shape index: {}]   ;;  %s1468_s5 = inlined_call_operand.hbm [shape: f32[1,128], index: 5, kind: input, shape index: {}]   ;;  %s1469_s6 = inlined_call_operand.hbm [shape: f32[1,128], index: 6, kind: input, shape index: {}]   ;;  %s1470_s7 = inlined_call_operand.vmem [shape: f32[16,128], index: 7, kind: output, shape index: {}]  }
   0x1   :  { %13 = vsyncpa [#allocation5], 0 }
   0x2   :  { %14 = vsyncpa [#allocation8], 0 }
   0x3   :  { %15 = vsyncpa [#allocation11], 0  ;;  %s1265_s24 = smov 0  }
   0x4 LB: > { %s1214_s25 = smov [#allocation4]   ;;  %s1271_s27 = sadd.s32 4294967295, %s1212_s24   ;;  %s1212_s24 = sphi %s1265_s24, %s21_s24  }
   0x5   : > { %s230_s26 = sshll.u32 %s1214_s25, 4  ;;  %p830_p0 = scmp.ge.s32.totalorder %s1212_s24, 1  ;;  %s1276_s26 = int_to_ptr.vmem [resolvable:$true] %s230_s26 }
   0x6   : > { %p204_p1 = scmp.lt.s32.totalorder %s1212_s24, 3  ;;  %p1471_p2 = scmp.eq.s32.totalorder %s1271_s27, 0 }
   0x7   : > { %s1215_s29 = smov [#allocation7]   ;;  %s1216_s8 = smov [#allocation2]  }
   0x8   : > { %p1278_p3 = pnand %p830_p0, %p204_p1  ;;  %s254_s30 = sshll.u32 %s1215_s29, 4  ;;  %s1284_s30 = int_to_ptr.vmem [resolvable:$true] %s254_s30 }
   0x9   : > { %s216_s9 = sshll.u32 %s1216_s8, 4  ;;  %s1217_s11 = smov [#allocation6]   ;;  %s1292_s9 = int_to_ptr.vmem [resolvable:$true] %s216_s9 }
   0xa   : > { %s1473_s28 = scalar_select %p1278_p3, 1, 0 }
   0xb   : > { %p930_p4 = pneg %p1278_p3  ;;  %s1294_s12 = sshll.u32 %s1217_s11, 4  ;;  %s241_s12 = int_to_ptr.vmem [resolvable:$true] %s1294_s12 }
   0xc   : > { %s1022_s15 = scalar_lea.hbm %s1465_s2, 32 }
   0xd   : > { %p1288_p5 = pnand %p1471_p2, %p930_p4  ;;  %p1023_p6 = scmp.ne.s32.totalorder %s1465_s2, %s1022_s15 }
   0xe   : > { %p1029_p10 = scmp.lt.u32.totalorder %s1022_s15, %s1465_s2 }
   0xf   : > { %p1304_p7 = pneg %p1288_p5 }
  0x11   : > { %p1025_p8 = pnand %p1304_p7, %p1023_p6 }
  0x13   : > { %p1026_p9 = pneg %p1025_p8 }
  0x15   : > { %p1031_p11 = pnand %p1029_p10, %p1026_p9 }
  0x17   : > { %1034 = shalt.err (!%p1031_p11)
}
  0x18   : > { %s1035_s21 = scalar_lea.vmem %s1276_s26, 32  ;;  %p1043_p1 = scmp.lt.s32.totalorder %s1276_s26, %s1276_s26 }
  0x19   : > { %p1036_p12 = scmp.ne.s32.totalorder %s1276_s26, %s1035_s21  ;;  %p1044_p4 = scmp.lt.s32.totalorder %s1035_s21, %s1035_s21 }
  0x1b   : > { %p1038_p13 = pnand %p1036_p12, %p1304_p7  ;;  %p1045_p6 = por %p1044_p4, %p1043_p1 }
  0x1d   : > { %p1039_p0 = pneg %p1038_p13 }
  0x1f   : > { %p1046_p8 = pnand %p1045_p6, %p1039_p0 }
  0x21   : > { %1049 = shalt.err (!%p1046_p8)
}
  0x22   : > { %936 = dma.hbm_to_vmem [thread:$0]  (!%p1288_p5), %s1465_s2, 32, %s1276_s26, [#allocation5]  }
  0x23   : > { %s1050_s8 = scalar_lea.hbm %s1467_s4, 16 }
  0x24   : > { %p1051_p9 = scmp.ne.s32.totalorder %s1467_s4, %s1050_s8  ;;  %p1057_p12 = scmp.lt.u32.totalorder %s1050_s8, %s1467_s4 }
  0x26   : > { %p1053_p10 = pnand %p1051_p9, %p1304_p7 }
  0x28   : > { %p1054_p11 = pneg %p1053_p10 }
  0x2a   : > { %p1059_p13 = pnand %p1057_p12, %p1054_p11 }
  0x2c   : > { %1062 = shalt.err (!%p1059_p13)
}
  0x2d   : > { %s1063_s26 = scalar_lea.vmem %s1284_s30, 16  ;;  %s1070_s16 = scalar_lea.vmem %s1284_s30, 32 }
  0x2e   : > { %p1064_p0 = scmp.ne.s32.totalorder %s1284_s30, %s1063_s26  ;;  %p1071_p6 = scmp.lt.s32.totalorder %s1284_s30, %s1284_s30 }
  0x2f   : > { %p1072_p8 = scmp.lt.s32.totalorder %s1070_s16, %s1063_s26 }
  0x30   : > { %p1066_p1 = pnand %p1064_p0, %p1304_p7 }
  0x31   : > { %p1073_p9 = por %p1072_p8, %p1071_p6 }
  0x32   : > { %p1067_p4 = pneg %p1066_p1 }
  0x34   : > { %p1074_p10 = pnand %p1073_p9, %p1067_p4 }
  0x36   : > { %1077 = shalt.err (!%p1074_p10)
}
  0x37   : > { %942 = dma.hbm_to_vmem [thread:$0]  (!%p1288_p5), %s1467_s4, 16, %s1284_s30, [#allocation8]  }
  0x38   : > { %s1078_s22 = scalar_lea.hbm %s1464_s1, 2048 }
  0x39   : > { %p1079_p11 = scmp.ne.s32.totalorder %s1464_s1, %s1078_s22  ;;  %p1085_p0 = scmp.lt.u32.totalorder %s1078_s22, %s1464_s1 }
  0x3b   : > { %p1081_p12 = pnand %p1079_p11, %p1304_p7 }
  0x3d   : > { %p1082_p13 = pneg %p1081_p12 }
  0x3f   : > { %p1087_p1 = pnand %p1085_p0, %p1082_p13 }
  0x41   : > { %1090 = shalt.err (!%p1087_p1)
}
  0x42   : > { %s1091_s30 = scalar_lea.vmem %s1292_s9, 2048  ;;  %p1099_p9 = scmp.lt.s32.totalorder %s1292_s9, %s1292_s9 }
  0x43   : > { %p1092_p4 = scmp.ne.s32.totalorder %s1292_s9, %s1091_s30  ;;  %p1100_p10 = scmp.lt.s32.totalorder %s1091_s30, %s1091_s30 }
  0x45   : > { %p1094_p6 = pnand %p1092_p4, %p1304_p7  ;;  %p1101_p11 = por %p1100_p10, %p1099_p9 }
  0x47   : > { %p1095_p8 = pneg %p1094_p6 }
  0x49   : > { %p1102_p12 = pnand %p1101_p11, %p1095_p8 }
  0x4b   : > { %1105 = shalt.err (!%p1102_p12)
}
  0x4c   : > { %s1218_s11 = smov 128   ;;  %s1219_s13 = smov 8  }
  0x4d   : > { %933 = dma.hbm_to_vmem [thread:$0]  (!%p1288_p5), %s1464_s1, 2048, %s1292_s9, [#allocation3], %s1218_s11, %s1218_s11, %s1219_s13  }
  0x4e   : > { %s1106_s17 = scalar_lea.hbm %s1466_s3, 2048 }
  0x4f   : > { %p1107_p13 = scmp.ne.s32.totalorder %s1466_s3, %s1106_s17  ;;  %p1113_p4 = scmp.lt.u32.totalorder %s1106_s17, %s1466_s3 }
  0x51   : > { %p1109_p0 = pnand %p1107_p13, %p1304_p7 }
  0x53   : > { %p1110_p1 = pneg %p1109_p0 }
  0x55   : > { %p1115_p6 = pnand %p1113_p4, %p1110_p1 }
  0x57   : > { %1118 = shalt.err (!%p1115_p6)
}
  0x58   : > { %s1119_s23 = scalar_lea.vmem %s241_s12, 2048  ;;  %p1127_p11 = scmp.lt.s32.totalorder %s241_s12, %s241_s12 }
  0x59   : > { %p1120_p8 = scmp.ne.s32.totalorder %s241_s12, %s1119_s23  ;;  %p1128_p12 = scmp.lt.s32.totalorder %s1119_s23, %s1119_s23 }
  0x5b   : > { %p1122_p9 = pnand %p1120_p8, %p1304_p7  ;;  %p1129_p2 = por %p1128_p12, %p1127_p11 }
  0x5d   : > { %p1123_p10 = pneg %p1122_p9 }
  0x5f   : > { %p1130_p3 = pnand %p1129_p2, %p1123_p10 }
  0x61   : > { %1133 = shalt.err (!%p1130_p3)
}
  0x62   : > { %s1220_s9 = smov 64   ;;  %s1221_s25 = smov 4  }
  0x63   : > { %939 = dma.hbm_to_vmem [thread:$0]  (!%p1288_p5), %s1466_s3, 2048, %s241_s12, [#allocation5], %s1220_s9, %s1220_s9, %s1221_s25  }
  0x64   : > { %s1222_s30 = smov [#allocation9]   ;;  %s1223_s13 = smov [#allocation10]  }
  0x65   : > { %s265_s11 = sshll.u32 %s1222_s30, 4  ;;  %s276_s14 = sshll.u32 %s1223_s13, 4  ;;  %s266_s11 = int_to_ptr.vmem [resolvable:$true] %s265_s11  ;;  %s277_s14 = int_to_ptr.vmem [resolvable:$true] %s276_s14 }
  0x66   : > { %s1134_s16 = scalar_lea.hbm %s1468_s5, 16 }
  0x67   : > { %p1135_p2 = scmp.ne.s32.totalorder %s1468_s5, %s1134_s16  ;;  %p1141_p0 = scmp.lt.u32.totalorder %s1134_s16, %s1468_s5 }
  0x69   : > { %p1137_p3 = pnand %p1135_p2, %p1304_p7 }
  0x6b   : > { %p1138_p13 = pneg %p1137_p3 }
  0x6d   : > { %p1143_p1 = pnand %p1141_p0, %p1138_p13 }
  0x6f   : > { %1146 = shalt.err (!%p1143_p1)
}
  0x70   : > { %s1147_s12 = scalar_lea.vmem %s266_s11, 16  ;;  %s1154_s22 = scalar_lea.vmem %s266_s11, 32 }
  0x71   : > { %p1148_p4 = scmp.ne.s32.totalorder %s266_s11, %s1147_s12  ;;  %p1155_p9 = scmp.lt.s32.totalorder %s266_s11, %s266_s11 }
  0x72   : > { %p1156_p10 = scmp.lt.s32.totalorder %s1154_s22, %s1147_s12 }
  0x73   : > { %p1150_p6 = pnand %p1148_p4, %p1304_p7 }
  0x74   : > { %p1157_p11 = por %p1156_p10, %p1155_p9 }
  0x75   : > { %p1151_p8 = pneg %p1150_p6 }
  0x77   : > { %p1158_p12 = pnand %p1157_p11, %p1151_p8 }
  0x79   : > { %1161 = shalt.err (!%p1158_p12)
}
  0x7a   : > { %945 = dma.hbm_to_vmem [thread:$0]  (!%p1288_p5), %s1468_s5, 16, %s266_s11, [#allocation8]  }
  0x7b   : > { %s1162_s8 = scalar_lea.hbm %s1469_s6, 16 }
  0x7c   : > { %p1163_p2 = scmp.ne.s32.totalorder %s1469_s6, %s1162_s8  ;;  %p1169_p0 = scmp.lt.u32.totalorder %s1162_s8, %s1469_s6 }
  0x7e   : > { %p1165_p3 = pnand %p1163_p2, %p1304_p7 }
  0x80   : > { %p1166_p13 = pneg %p1165_p3 }
  0x82   : > { %p1171_p1 = pnand %p1169_p0, %p1166_p13 }
  0x84   : > { %1174 = shalt.err (!%p1171_p1)
}
  0x85   : > { %s1175_s16 = scalar_lea.vmem %s277_s14, 16  ;;  %s1182_s11 = scalar_lea.vmem %s277_s14, 32 }
  0x86   : > { %p1176_p4 = scmp.ne.s32.totalorder %s277_s14, %s1175_s16  ;;  %p1183_p9 = scmp.lt.s32.totalorder %s277_s14, %s277_s14 }
  0x87   : > { %p1184_p10 = scmp.lt.s32.totalorder %s1182_s11, %s1175_s16 }
  0x88   : > { %p1178_p6 = pnand %p1176_p4, %p1304_p7 }
  0x89   : > { %p1185_p11 = por %p1184_p10, %p1183_p9 }
  0x8a   : > { %p1179_p8 = pneg %p1178_p6 }
  0x8c   : > { %p1186_p12 = pnand %p1185_p11, %p1179_p8 }
  0x8e   : > { %1189 = shalt.err (!%p1186_p12)
}
  0x8f   : > { %948 = dma.hbm_to_vmem [thread:$0]  (!%p1288_p5), %s1469_s6, 16, %s277_s14, [#allocation11]  }
  0x90   : > { %p1476_p2 = scmp.ne.s32.totalorder %s1473_s28, 0 }
  0x91   : > { %p1477_p3 = scmp.eq.s32.totalorder (!%p1476_p2), %s1271_s27, 0 }
  0x92   : > { %296 = sbr.rel (%p1476_p2) target bundleno = 948 (0x3b4), region = 48 }
  0x99   : > { %1195 = dma.done.wait (%p1477_p3), [#allocation3], 2048   ;;  %p1478_p7 = pmov %p1477_p3 }
  0x9a   : > { %p1479_p13 = pmov %p1477_p3 }
  0x9b   : > { %1197 = vsyncadd (%p1478_p7), [#allocation3], 4294965248 }
  0x9c   : > { %1199 = dma.done.wait (%p1479_p13), [#allocation5], 2080   ;;  %p1480_p0 = pmov %p1477_p3 }
  0x9e   : > { %1201 = vsyncadd (%p1480_p0), [#allocation5], 4294965216  ;;  %p1481_p1 = pmov %p1480_p0 }
  0x9f   : > { %p1482_p5 = pmov %p1480_p0 }
  0xa0   : > { %1203 = dma.done.wait (%p1481_p1), [#allocation8], 32  }
  0xa1   : > { %1205 = vsyncadd (%p1482_p5), [#allocation8], 4294967264  ;;  %p1483_p4 = pmov %p1480_p0 }
  0xa2   : > { %p1484_p6 = pmov %p1480_p0 }
  0xa3   : > { %1207 = dma.done.wait (%p1483_p4), [#allocation11], 16  }
  0xa4   : > { %1209 = vsyncadd (%p1484_p6), [#allocation11], 4294967280  ;;  %v1224_v0 = vmov 0   ;;  %v980_v1 = vld [vmem:[#allocation2 + $0x4] ss:$8 sps:$4 sm:$0xff]   ;;  %p346_p8 = scmp.lt.s32.totalorder %s1271_s27, 1  ;;  %v375_v35 = vlaneseq }
  0xa5   : > { %497 = vmatprep.mubr.bf16.mxu0 %v1224_v0  ;;  %v982_v2 = vld [vmem:[#allocation2] ss:$8 sps:$4 sm:$0xff]   ;;  %465 = vmatprep.subr.bf16.mxu0 %v980_v1  ;;  %v983_v3 = vld [vmem:[#allocation2 + $0x14] ss:$8 sps:$4 sm:$0xff]   ;;  %v985_v4 = vld [vmem:[#allocation2 + $0x10] ss:$8 sps:$4 sm:$0xff]  }
  0xa6   : > { %466 = vmatpush1.bf16.msra.mxu0 %v982_v2  ;;  %v986_v5 = vld [vmem:[#allocation2 + $0x24] ss:$8 sps:$4 sm:$0xff]   ;;  %v988_v6 = vld [vmem:[#allocation2 + $0x20] ss:$8 sps:$4 sm:$0xff]   ;;  %v989_v7 = vld [vmem:[#allocation2 + $0x34] ss:$8 sps:$4 sm:$0xff]  }
  0xa7   : > { %467 = vmatprep.subr.bf16.mxu0 %v983_v3  ;;  %v991_v8 = vld [vmem:[#allocation2 + $0x30] ss:$8 sps:$4 sm:$0xff]   ;;  %v992_v9 = vld [vmem:[#allocation2 + $0x44] ss:$8 sps:$4 sm:$0xff]   ;;  %v994_v12 = vld [vmem:[#allocation2 + $0x40] ss:$8 sps:$4 sm:$0xff]  }
  0xa8   : > { %v1004_v10 = vld [vmem:[#allocation6 + $0x40] sm:$0xff]   ;;  %v1006_v13 = vld [vmem:[#allocation6 + $0x48] sm:$0xff]   ;;  %s1486_s27 = smov (!%p346_p8, %s1271_s27), 1  ;;  %v1008_v15 = vld [vmem:[#allocation6 + $0x50] sm:$0xff]   ;;  %v376_v36 = vshrl.u32 %v375_v35, 7 }
  0xa9   : > { %v1005_v11 = vld [vmem:[#allocation6] sm:$0xff]   ;;  %884 = vmatprep.subr.bf16.mxu1 %v1004_v10  ;;  %v1007_v14 = vld [vmem:[#allocation6 + $0x8] sm:$0xff]   ;;  %v995_v16 = vld [vmem:[#allocation2 + $0x54] ss:$8 sps:$4 sm:$0xff]   ;;  %s845_s28 = sshll.u32 %s1486_s27, 3 }
  0xaa   : > { %468 = vmatpush1.bf16.msra.mxu0 %v985_v4  ;;  %885 = vmatpush3.bf16.msra.mxu1 %v1005_v11  ;;  %v997_v17 = vld [vmem:[#allocation2 + $0x50] ss:$8 sps:$4 sm:$0xff]   ;;  %v998_v20 = vld [vmem:[#allocation2 + $0x64] ss:$8 sps:$4 sm:$0xff]   ;;  %v1000_v21 = vld [vmem:[#allocation2 + $0x60] ss:$8 sps:$4 sm:$0xff]   ;;  %s349_s14 = scalar_lea.vmem %s1463_s0, %s845_s28  ;;  %s353_s12 = scalar_lea.vmem %s1470_s7, %s845_s28 }
  0xab   : > { %469 = vmatprep.subr.bf16.mxu0 %v986_v5  ;;  %886 = vmatprep.subr.bf16.mxu1 %v1006_v13  ;;  %v1009_v18 = vld [vmem:[#allocation6 + $0x10] sm:$0xff]   ;;  %v1010_v19 = vld [vmem:[#allocation6 + $0x58] sm:$0xff]   ;;  %v1012_v24 = vld [vmem:[#allocation6 + $0x60] sm:$0xff]   ;;  %v377_v37 = vsub.s32 0, %v376_v36  ;;  %v381_v39 = vsub.s32 1, %v376_v36 }
  0xac   : > { %v1001_v22 = vld [vmem:[#allocation2 + $0x74] ss:$8 sps:$4 sm:$0xff]   ;;  %v1013_v25 = vld [vmem:[#allocation6 + $0x20] sm:$0xff]   ;;  %v1003_v26 = vld [vmem:[#allocation2 + $0x70] ss:$8 sps:$4 sm:$0xff]  }
  0xad   : > { %v1011_v23 = vld [vmem:[#allocation6 + $0x18] sm:$0xff]   ;;  %v1014_v28 = vld [vmem:[#allocation6 + $0x68] sm:$0xff]   ;;  %v1016_v31 = vld [vmem:[#allocation6 + $0x70] sm:$0xff]  }
  0xae   : > { %470 = vmatpush1.bf16.msra.mxu0 %v988_v6  ;;  %887 = vmatpush3.bf16.msra.mxu1 %v1007_v14  ;;  %v355_v27 = vld [vmem:[%s349_s14] sm:$0xff]  ;;  %v1015_v30 = vld [vmem:[#allocation6 + $0x28] sm:$0xff]   ;;  %v1017_v32 = vld [vmem:[#allocation6 + $0x30] sm:$0xff]  }
  0xaf   : > { %471 = vmatprep.subr.bf16.mxu0 %v989_v7  ;;  %888 = vmatprep.subr.bf16.mxu1 %v1008_v15  ;;  %v356_v29 = vpack.c.bf16 %v355_v27, %v355_v27  ;;  %v1018_v33 = vld [vmem:[#allocation6 + $0x78] sm:$0xff]   ;;  %v863_v53 = vld [vmem:[#allocation7] ss:$0 sm:$0xff]  ;;  %v880_v4 = vld [vmem:[#allocation9] ss:$0 sm:$0xff] }
  0xb0   : > { %v1019_v34 = vld [vmem:[#allocation6 + $0x38] sm:$0xff]   ;;  %v881_v6 = vld [vmem:[#allocation10] ss:$0 sm:$0xff] }
  0xb1   : > { %v373_v38 = vld [vmem:[#allocation4] sm:$0x3] }
  0xb2   : > { %472 = vmatpush1.bf16.msra.mxu0 %v991_v8  ;;  %889 = vmatpush3.bf16.msra.mxu1 %v1009_v18  ;;  %v378_v40 = vrot.slane %v373_v38, %v377_v37  ;;  %v382_v41 = vrot.slane %v373_v38, %v381_v39 }
  0xb3   : > { %473 = vmatprep.subr.bf16.mxu0 %v992_v9  ;;  %890 = vmatprep.subr.bf16.mxu1 %v1010_v19 }
  0xb6   : > { %474 = vmatpush1.bf16.msra.mxu0 %v994_v12  ;;  %891 = vmatpush3.bf16.msra.mxu1 %v1011_v23 }
  0xb7   : > { %475 = vmatprep.subr.bf16.mxu0 %v995_v16  ;;  %892 = vmatprep.subr.bf16.mxu1 %v1012_v24 }
  0xba   : > { %476 = vmatpush1.bf16.msra.mxu0 %v997_v17  ;;  %893 = vmatpush3.bf16.msra.mxu1 %v1013_v25 }
  0xbb   : > { %477 = vmatprep.subr.bf16.mxu0 %v998_v20  ;;  %894 = vmatprep.subr.bf16.mxu1 %v1014_v28 }
  0xbe   : > { %478 = vmatpush1.bf16.msra.mxu0 %v1000_v21  ;;  %895 = vmatpush3.bf16.msra.mxu1 %v1015_v30 }
  0xbf   : > { %479 = vmatprep.subr.bf16.mxu0 %v1001_v22  ;;  %896 = vmatprep.subr.bf16.mxu1 %v1016_v31 }
  0xc2   : > { %480 = vmatpush1.bf16.msra.mxu0 %v1003_v26  ;;  %897 = vmatpush3.bf16.msra.mxu1 %v1017_v32 }
  0xc3   : > { %898 = vmatprep.subr.bf16.mxu1 %v1018_v33 }
  0xc5   : > { %498 = vmatmul.mubr.bf16.vlgmr.msra.gmra.mrb[0].mxu0 %v356_v29 }
  0xc6   : > { %899 = vmatpush3.bf16.msra.mxu1 %v1019_v34 }
 0x198   : > { %v499_v42 = vpop.f32.mrb[0].mxu0 }
 0x199   : > { %v500_v43 = vadd.f32 %v499_v42, %v378_v40  ;;  %v501_v44 = vpop.f32.mrb[1].mxu0 }
 0x19a   : > { %v502_v45 = vadd.f32 %v501_v44, %v382_v41  ;;  %v503_v46 = vpop.f32.mrb[2].mxu0 }
 0x19b   : > { %v506_v47 = vmax.f32 %v500_v43, 0.0  ;;  %v504_v48 = vpop.f32.mrb[3].mxu0 }
 0x19c   : > { %v507_v49 = vmax.f32 %v502_v45, 0.0 }
 0x19d   : > { %v508_v51 = vpack.c.bf16 %v506_v47, %v506_v47 }
 0x19e   : > { %v509_v50 = vpack.c.bf16 %v507_v49, %v507_v49 }
 0x1a0   : > { %677 = vmatprep.mubr.bf16.mxu1 %v509_v50 }
 0x1a1   : > { %678 = vmatmul.mubr.bf16.vlgmr.msra.gmra.mrb[0].mxu1 %v508_v51 }
 0x274   : > { %v900_v52 = vpop.f32.mrb[0].mxu1 }
 0x275   : > { %v901_v54 = vpop.f32.mrb[1].mxu1 }
 0x276   : > { %v902_v55 = vadd.f32 %v901_v54, %v900_v52  ;;  %v903_v56 = vpop.f32.mrb[2].mxu1 }
 0x277   : > { %v904_v57 = vpop.f32.mrb[3].mxu1 }
 0x278   : > { %v680_v58 = vadd.f32 %v902_v55, %v863_v53 }
 0x27a   : > { %v685_v59 = vadd.f32 %v680_v58, %v355_v27 }
 0x27c   : > { %688 = vadd.xlane.f32.xlu0 %v685_v59 }
 0x309   : > { %v689_v60 = vpop.xlane.xlu0 %688 }
 0x30a   : > { %v691_v61 = vmul.f32 0.0078125, %v689_v60 }
 0x30c   : > { %v692_v62 = vsub.f32 %v685_v59, %v691_v61 }
 0x30e   : > { %v693_v63 = vmul.f32 %v692_v62, %v692_v62 }
 0x310   : > { %694 = vadd.xlane.f32.xlu0 %v693_v63 }
 0x39d   : > { %v695_v0 = vpop.xlane.xlu0 %694 }
 0x39e   : > { %v696_v1 = vmul.f32 0.0078125, %v695_v0 }
 0x3a0   : > { %v697_v2 = vadd.f32 1e-05, %v696_v1 }
 0x3a2   : > { %1020 = vrsqrt.f32 %v697_v2 }
 0x3ac   : > { %v1021_v3 = vpop.eup %1020 }
 0x3ad   : > { %v699_v5 = vmul.f32 %v1021_v3, %v692_v62 }
 0x3af   : > { %v706_v7 = vmul.f32 %v880_v4, %v699_v5 }
 0x3b1   : > { %v713_v8 = vadd.f32 %v881_v6, %v706_v7 }
 0x3b3   : > { %714 = vst [vmem:[%s353_s12] sm:$0xff] %v713_v8 }
 0x3b4 PF: > { %s21_s24 = sadd.s32 1, %s1212_s24  }
 0x3b5   : > { %p18_p9 = scmp.ge.s32.totalorder %s21_s24, 4  }
 0x3b7   :  { %20 = sbr.rel (!%p18_p9) target bundleno = 4 (0x4), region = 103 }
 0x3be   :  { %734 = vsyncpa [#allocation3], 1 }
 0x3bf   :  { %736 = vsyncpa [#allocation3 + $0x1], 1 }
 0x3c0   :  { %737 = vsyncpa [#allocation5], 1 }
 0x3c1   :  { %738 = vsyncpa [#allocation8], 1 }
 0x3c2   :  { %739 = vsyncpa [#allocation11], 1 }

// kernel: middle_forward.4
= control target key start
LH: loop header
LB: loop body
LE: loop exit
PB: predicated region body
PF: predicated region fallthrough
CT: control target
= control target key end

     0   :  { %s2203_s0 = inlined_call_operand.hbm [shape: f32[2,8,128], index: 0, kind: input, shape index: {}]   ;;  %s2204_s1 = inlined_call_operand.vmem [shape: f32[2,1,128], index: 1, kind: input, shape index: {}]   ;;  %s2205_s2 = inlined_call_operand.hbm [shape: bf16[128,384], index: 2, kind: input, shape index: {}]   ;;  %s2206_s3 = inlined_call_operand.hbm [shape: f32[1,384], index: 3, kind: input, shape index: {}]   ;;  %s2207_s4 = inlined_call_operand.hbm [shape: bf16[128,128], index: 4, kind: input, shape index: {}]   ;;  %s2208_s5 = inlined_call_operand.hbm [shape: f32[1,128], index: 5, kind: input, shape index: {}]   ;;  %s2209_s6 = inlined_call_operand.hbm [shape: f32[1,128], index: 6, kind: input, shape index: {}]   ;;  %s2210_s7 = inlined_call_operand.hbm [shape: f32[1,128], index: 7, kind: input, shape index: {}]   ;;  %s2211_s8 = inlined_call_operand.vmem [shape: f32[2,1,8], index: 8, kind: input, shape index: {}]   ;;  %s2212_s9 = inlined_call_operand.vmem [shape: f32[2,8,128], index: 9, kind: output, shape index: {}]  }
   0x1   :  { %2215 = sst [smem:[#allocation17_spill]] %s2212_s9 }
   0x2   :  { %14 = vsyncpa [#allocation3], 0 }
   0x3   :  { %16 = vsyncpa [#allocation3 + $0x1], 0 }
   0x4   :  { %17 = vsyncpa [#allocation5], 0 }
   0x5   :  { %18 = vsyncpa [#allocation8], 0 }
   0x6   :  { %19 = vsyncpa [#allocation11], 0  ;;  %s1868_s30 = smov 0   ;;  %s1870_s10 = smov 0  }
   0x7   :  { %s1872_s11 = smov 0   ;;  %s1874_s12 = smov 0  }
   0x8 LB: > { %s1803_s13 = smov [#allocation4]   ;;  %s1889_s15 = sadd.s32 4294967295, %s1801_s12   ;;  %s1801_s12 = sphi %s1874_s12, %s2233_s12   ;;  %s1797_s11 = sphi %s1872_s11, %s2232_s11   ;;  %s1793_s10 = sphi %s1870_s10, %s2231_s10   ;;  %s1789_s30 = sphi %s1868_s30, %s2230_s30  }
   0x9   : > { %s272_s14 = sshll.u32 %s1803_s13, 4  ;;  %p1247_p0 = scmp.ge.s32.totalorder %s1801_s12, 1  ;;  %s1894_s14 = int_to_ptr.vmem [resolvable:$true] %s272_s14 }
   0xa   : > { %p2213_p1 = scmp.eq.s32.totalorder %s1889_s15, 0  ;;  %p260_p2 = scmp.lt.s32.totalorder %s1801_s12, 3 }
   0xb   : > { %s1804_s17 = smov [#allocation7]   ;;  %s1805_s20 = smov [#allocation10]  }
   0xc   : > { %p1896_p3 = pnand %p1247_p0, %p260_p2  ;;  %s296_s18 = sshll.u32 %s1804_s17, 4  ;;  %s1908_s18 = int_to_ptr.vmem [resolvable:$true] %s296_s18 }
   0xd   : > { %s1910_s21 = sshll.u32 %s1805_s20, 4  ;;  %s1557_s24 = scalar_lea.hbm %s2205_s2, 3072  ;;  %s322_s21 = int_to_ptr.vmem [resolvable:$true] %s1910_s21 }
   0xe   : > { %s2216_s16 = scalar_select %p1896_p3, 1, 0 }
   0xf   : > { %p1425_p4 = pneg %p1896_p3  ;;  %p1558_p6 = scmp.ne.s32.totalorder %s2205_s2, %s1557_s24 }
  0x10   : > { %p1564_p10 = scmp.lt.u32.totalorder %s1557_s24, %s2205_s2 }
  0x11   : > { %p1904_p5 = pnand %p1425_p4, %p2213_p1 }
  0x13   : > { %p1920_p7 = pneg %p1904_p5 }
  0x15   : > { %p1560_p8 = pnand %p1920_p7, %p1558_p6 }
  0x17   : > { %p1561_p9 = pneg %p1560_p8 }
  0x19   : > { %p1566_p11 = pnand %p1564_p10, %p1561_p9 }
  0x1b   : > { %1569 = shalt.err (!%p1566_p11)
}
  0x1c   : > { %s1570_s13 = scalar_lea.vmem %s1894_s14, 3072  ;;  %p1578_p2 = scmp.lt.s32.totalorder %s1894_s14, %s1894_s14 }
  0x1d   : > { %p1571_p12 = scmp.ne.s32.totalorder %s1894_s14, %s1570_s13  ;;  %p1579_p4 = scmp.lt.s32.totalorder %s1570_s13, %s1570_s13 }
  0x1f   : > { %p1573_p13 = pnand %p1571_p12, %p1920_p7  ;;  %p1580_p6 = por %p1579_p4, %p1578_p2 }
  0x21   : > { %p1574_p0 = pneg %p1573_p13 }
  0x23   : > { %p1581_p8 = pnand %p1580_p6, %p1574_p0 }
  0x25   : > { %1584 = shalt.err (!%p1581_p8)
}
  0x26   : > { %s1806_s17 = smov 192   ;;  %s1807_s20 = smov 12  }
  0x27   : > { %1428 = dma.hbm_to_vmem [thread:$0]  (!%p1904_p5), %s2205_s2, 3072, %s1894_s14, [#allocation5], %s1806_s17, %s1806_s17, %s1807_s20  }
  0x28   : > { %s1585_s26 = scalar_lea.hbm %s2207_s4, 1024 }
  0x29   : > { %p1586_p9 = scmp.ne.s32.totalorder %s2207_s4, %s1585_s26  ;;  %p1592_p12 = scmp.lt.u32.totalorder %s1585_s26, %s2207_s4 }
  0x2b   : > { %p1588_p10 = pnand %p1586_p9, %p1920_p7 }
  0x2d   : > { %p1589_p11 = pneg %p1588_p10 }
  0x2f   : > { %p1594_p13 = pnand %p1592_p12, %p1589_p11 }
  0x31   : > { %1597 = shalt.err (!%p1594_p13)
}
  0x32   : > { %s1598_s14 = scalar_lea.vmem %s1908_s18, 1024  ;;  %p1606_p6 = scmp.lt.s32.totalorder %s1908_s18, %s1908_s18 }
  0x33   : > { %p1599_p0 = scmp.ne.s32.totalorder %s1908_s18, %s1598_s14  ;;  %p1607_p8 = scmp.lt.s32.totalorder %s1598_s14, %s1598_s14 }
  0x35   : > { %p1601_p2 = pnand %p1599_p0, %p1920_p7  ;;  %p1608_p9 = por %p1607_p8, %p1606_p6 }
  0x37   : > { %p1602_p4 = pneg %p1601_p2 }
  0x39   : > { %p1609_p10 = pnand %p1608_p9, %p1602_p4 }
  0x3b   : > { %1612 = shalt.err (!%p1609_p10)
}
  0x3c   : > { %s1808_s17 = smov 64   ;;  %s1809_s9 = smov 4  }
  0x3d   : > { %1434 = dma.hbm_to_vmem [thread:$0]  (!%p1904_p5), %s2207_s4, 1024, %s1908_s18, [#allocation8], %s1808_s17, %s1808_s17, %s1809_s9  }
  0x3e   : > { %s1613_s25 = scalar_lea.hbm %s2209_s6, 16 }
  0x3f   : > { %p1614_p11 = scmp.ne.s32.totalorder %s2209_s6, %s1613_s25  ;;  %p1620_p0 = scmp.lt.u32.totalorder %s1613_s25, %s2209_s6 }
  0x41   : > { %p1616_p12 = pnand %p1614_p11, %p1920_p7 }
  0x43   : > { %p1617_p13 = pneg %p1616_p12 }
  0x45   : > { %p1622_p2 = pnand %p1620_p0, %p1617_p13 }
  0x47   : > { %1625 = shalt.err (!%p1622_p2)
}
  0x48   : > { %s1626_s14 = scalar_lea.vmem %s322_s21, 16  ;;  %s1633_s18 = scalar_lea.vmem %s322_s21, 32 }
  0x49   : > { %p1627_p4 = scmp.ne.s32.totalorder %s322_s21, %s1626_s14  ;;  %p1634_p9 = scmp.lt.s32.totalorder %s322_s21, %s322_s21 }
  0x4a   : > { %p1635_p10 = scmp.lt.s32.totalorder %s1633_s18, %s1626_s14 }
  0x4b   : > { %p1629_p6 = pnand %p1627_p4, %p1920_p7 }
  0x4c   : > { %p1636_p1 = por %p1635_p10, %p1634_p9 }
  0x4d   : > { %p1630_p8 = pneg %p1629_p6 }
  0x4f   : > { %p1637_p3 = pnand %p1636_p1, %p1630_p8 }
  0x51   : > { %1640 = shalt.err (!%p1637_p3)
}
  0x52   : > { %1440 = dma.hbm_to_vmem [thread:$0]  (!%p1904_p5), %s2209_s6, 16, %s322_s21, [#allocation11]  }
  0x53   : > { %s1810_s20 = smov [#allocation6]   ;;  %s1811_s23 = smov [#allocation9]  }
  0x54   : > { %s286_s22 = sshll.u32 %s1810_s20, 4  ;;  %s310_s24 = sshll.u32 %s1811_s23, 4  ;;  %s287_s22 = int_to_ptr.vmem [resolvable:$true] %s286_s22  ;;  %s311_s24 = int_to_ptr.vmem [resolvable:$true] %s310_s24 }
  0x55   : > { %s1641_s28 = scalar_lea.hbm %s2206_s3, 48 }
  0x56   : > { %p1642_p1 = scmp.ne.s32.totalorder %s2206_s3, %s1641_s28  ;;  %p1648_p12 = scmp.lt.u32.totalorder %s1641_s28, %s2206_s3 }
  0x58   : > { %p1644_p3 = pnand %p1642_p1, %p1920_p7 }
  0x5a   : > { %p1645_p11 = pneg %p1644_p3 }
  0x5c   : > { %p1650_p13 = pnand %p1648_p12, %p1645_p11 }
  0x5e   : > { %1653 = shalt.err (!%p1650_p13)
}
  0x5f   : > { %s1654_s21 = scalar_lea.vmem %s287_s22, 48  ;;  %s1661_s17 = scalar_lea.vmem %s287_s22, 64 }
  0x60   : > { %p1655_p0 = scmp.ne.s32.totalorder %s287_s22, %s1654_s21  ;;  %p1662_p6 = scmp.lt.s32.totalorder %s287_s22, %s287_s22 }
  0x61   : > { %p1663_p8 = scmp.lt.s32.totalorder %s1661_s17, %s1654_s21 }
  0x62   : > { %p1657_p2 = pnand %p1655_p0, %p1920_p7 }
  0x63   : > { %p1664_p9 = por %p1663_p8, %p1662_p6 }
  0x64   : > { %p1658_p4 = pneg %p1657_p2 }
  0x66   : > { %p1665_p10 = pnand %p1664_p9, %p1658_p4 }
  0x68   : > { %1668 = shalt.err (!%p1665_p10)
}
  0x69   : > { %1431 = dma.hbm_to_vmem [thread:$0]  (!%p1904_p5), %s2206_s3, 48, %s287_s22, [#allocation5]  }
  0x6a   : > { %s1669_s26 = scalar_lea.hbm %s2208_s5, 16 }
  0x6b   : > { %p1670_p1 = scmp.ne.s32.totalorder %s2208_s5, %s1669_s26  ;;  %p1676_p12 = scmp.lt.u32.totalorder %s1669_s26, %s2208_s5 }
  0x6d   : > { %p1672_p3 = pnand %p1670_p1, %p1920_p7 }
  0x6f   : > { %p1673_p11 = pneg %p1672_p3 }
  0x71   : > { %p1678_p13 = pnand %p1676_p12, %p1673_p11 }
  0x73   : > { %1681 = shalt.err (!%p1678_p13)
}
  0x74   : > { %s1682_s18 = scalar_lea.vmem %s311_s24, 16  ;;  %s1689_s22 = scalar_lea.vmem %s311_s24, 32 }
  0x75   : > { %p1683_p0 = scmp.ne.s32.totalorder %s311_s24, %s1682_s18  ;;  %p1690_p6 = scmp.lt.s32.totalorder %s311_s24, %s311_s24 }
  0x76   : > { %p1691_p8 = scmp.lt.s32.totalorder %s1689_s22, %s1682_s18 }
  0x77   : > { %p1685_p2 = pnand %p1683_p0, %p1920_p7 }
  0x78   : > { %p1692_p9 = por %p1691_p8, %p1690_p6 }
  0x79   : > { %p1686_p4 = pneg %p1685_p2 }
  0x7b   : > { %p1693_p10 = pnand %p1692_p9, %p1686_p4 }
  0x7d   : > { %1696 = shalt.err (!%p1693_p10)
}
  0x7e   : > { %1437 = dma.hbm_to_vmem [thread:$0]  (!%p1904_p5), %s2208_s5, 16, %s311_s24, [#allocation8]  }
  0x7f   : > { %s1812_s9 = smov [#allocation12]   ;;  %s1697_s26 = scalar_lea.hbm %s2210_s7, 16 }
  0x80   : > { %s332_s20 = sshll.u32 %s1812_s9, 4  ;;  %p1698_p1 = scmp.ne.s32.totalorder %s2210_s7, %s1697_s26  ;;  %s333_s20 = int_to_ptr.vmem [resolvable:$true] %s332_s20 }
  0x81   : > { %p1704_p12 = scmp.lt.u32.totalorder %s1697_s26, %s2210_s7 }
  0x82   : > { %p1700_p3 = pnand %p1698_p1, %p1920_p7 }
  0x84   : > { %p1701_p11 = pneg %p1700_p3 }
  0x86   : > { %p1706_p13 = pnand %p1704_p12, %p1701_p11 }
  0x88   : > { %1709 = shalt.err (!%p1706_p13)
}
  0x89   : > { %s1710_s24 = scalar_lea.vmem %s333_s20, 16  ;;  %s1717_s18 = scalar_lea.vmem %s333_s20, 32 }
  0x8a   : > { %p1711_p0 = scmp.ne.s32.totalorder %s333_s20, %s1710_s24  ;;  %p1718_p6 = scmp.lt.s32.totalorder %s333_s20, %s333_s20 }
  0x8b   : > { %p1719_p8 = scmp.lt.s32.totalorder %s1717_s18, %s1710_s24 }
  0x8c   : > { %p1713_p2 = pnand %p1711_p0, %p1920_p7 }
  0x8d   : > { %p1720_p9 = por %p1719_p8, %p1718_p6 }
  0x8e   : > { %p1714_p4 = pneg %p1713_p2 }
  0x90   : > { %p1721_p10 = pnand %p1720_p9, %p1714_p4 }
  0x92   : > { %1724 = shalt.err (!%p1721_p10)
}
  0x93   : > { %1443 = dma.hbm_to_vmem [thread:$0]  (!%p1904_p5), %s2210_s7, 16, %s333_s20, [#allocation11]  }
  0x94   : > { %s2038_s27 = sadd.s32 1, %s1801_s12   ;;  %s32_s19 = sadd.s32 1, %s1797_s11 }
  0x95   : > { %s29_s17 = ssub.s32 %s1801_s12, %s2038_s27  ;;  %p39_p7 = scmp.ne.s32.totalorder %s1797_s11, %s1793_s10 }
  0x96   : > { %p30_p1 = scmp.eq.s32.totalorder %s29_s17, 0  ;;  %p40_p3 = scmp.eq.s32.totalorder %s1801_s12, 0 }
  0x97   : > { %p45_p11 = scmp.ne.s32.totalorder %s1793_s10, %s1789_s30  ;;  %p1454_p12 = scmp.lt.s32.totalorder %s1801_s12, 2 }
  0x98   : > { %s2050_s9 = scalar_select %p30_p1, %s1797_s11, %s32_s19  }
  0x99   : > { %p41_p13 = por %p40_p3, %p39_p7  ;;  %p2219_p0 = scmp.eq.s32.totalorder %s1889_s15, 0 }
  0x9a   : > { %s343_s25 = sand.u32 1, %s1797_s11   ;;  %s1256_s20 = sshll.u32 %s1801_s12, 7 }
  0x9b   : > { %p2054_p2 = por %p2219_p0, %p45_p11  ;;  %s1255_s26 = sshll.u32 %s343_s25, 3 }
  0x9c   : > { %s2063_s13 = scalar_lea.hbm %s2203_s0, %s1256_s20  ;;  %s347_s30 = scalar_lea.vmem [#allocation2], %s1255_s26 }
  0x9d   : > { %s354_s14 = sshll.u32 %s347_s30, 4  ;;  %p2065_p5 = pnand %p1454_p12, %p41_p13  ;;  %s2069_s14 = int_to_ptr.vmem [resolvable:$true] %s354_s14 }
  0x9e   : > { %s344_s12 = scalar_lea.sflag [#allocation3], %s343_s25  ;;  %s1725_s18 = scalar_lea.hbm %s2063_s13, 128 }
  0x9f   : > { %p1726_p4 = scmp.ne.s32.totalorder %s2063_s13, %s1725_s18  ;;  %p1727_p6 = pneg %p2065_p5 }
  0xa0   : > { %s1730_s19 = scalar_lea.hbm %s2203_s0, 256  ;;  %p1731_p10 = scmp.lt.u32.totalorder %s2063_s13, %s2203_s0 }
  0xa1   : > { %p1728_p8 = pnand %p1727_p6, %p1726_p4  ;;  %p1732_p7 = scmp.lt.u32.totalorder %s1730_s19, %s1725_s18 }
  0xa2   : > { %p1734_p3 = scmp.lt.u32.totalorder %s1725_s18, %s2063_s13 }
  0xa3   : > { %p1729_p9 = pneg %p1728_p8  ;;  %p1733_p1 = por %p1732_p7, %p1731_p10 }
  0xa5   : > { %p1735_p11 = por %p1734_p3, %p1733_p1 }
  0xa7   : > { %p1736_p12 = pnand %p1735_p11, %p1729_p9 }
  0xa9   : > { %1739 = shalt.err (!%p1736_p12)
}
  0xaa   : > { %s1740_s25 = scalar_lea.vmem %s2069_s14, 128  ;;  %s1813_s26 = smov [#allocation2]  }
  0xab   : > { %p1741_p13 = scmp.ne.s32.totalorder %s2069_s14, %s1740_s25  ;;  %s1745_s28 = sshll.u32 %s1813_s26, 4  ;;  %s1746_s28 = int_to_ptr.vmem [resolvable:$false] %s1745_s28 }
  0xac   : > { %s1747_s29 = scalar_lea.vmem %s1746_s28, 256  ;;  %p1748_p8 = scmp.lt.s32.totalorder %s2069_s14, %s1746_s28 }
  0xad   : > { %p1743_p0 = pnand %p1741_p13, %p1727_p6  ;;  %p1749_p10 = scmp.lt.s32.totalorder %s1747_s29, %s1740_s25 }
  0xaf   : > { %p1744_p4 = pneg %p1743_p0  ;;  %p1750_p7 = por %p1749_p10, %p1748_p8 }
  0xb1   : > { %p1751_p1 = pnand %p1750_p7, %p1744_p4 }
  0xb3   : > { %1754 = shalt.err (!%p1751_p1)
}
  0xb4   : > { %1447 = dma.hbm_to_vmem [thread:$0]  (!%p2065_p5), %s2063_s13, 128, %s2069_s14, %s344_s12  }
  0xb5   : > { %p2222_p9 = scmp.ne.s32.totalorder %s2216_s16, 0 }
  0xb6   : > { %s377_s30 = sand.u32 (!%p2222_p9), 1, %s1793_s10  }
  0xb7   : > { %375 = sbr.rel (%p2222_p9) target bundleno = 2390 (0x956), region = 56  ;;  %s2099_s18 = sshll.u32 (!%p2222_p9), %s377_s30, 3 }
  0xb8   : > { %s378_s22 = scalar_lea.sflag (!%p2222_p9), [#allocation3], %s377_s30  ;;  %s381_s21 = scalar_lea.vmem (!%p2222_p9), [#allocation2], %s2099_s18 }
  0xbe   : > { %1772 = dma.done.wait (%p2054_p2), %s378_s22, 128  }
  0xbf   : > { %1774 = vsyncadd (%p2054_p2), %s378_s22, 4294967168  ;;  %p2223_p6 = scmp.eq.s32.totalorder %s1889_s15, 0 }
  0xc1   : > { %1776 = dma.done.wait (%p2223_p6), [#allocation5], 3120   ;;  %p2224_p5 = pmov %p2223_p6 }
  0xc3   : > { %1778 = vsyncadd (%p2224_p5), [#allocation5], 4294964176  ;;  %p2225_p3 = pmov %p2224_p5 }
  0xc5   : > { %1780 = dma.done.wait (%p2225_p3), [#allocation8], 1040   ;;  %p2226_p11 = pmov %p2225_p3 }
  0xc6   : > { %p2227_p12 = pmov %p2225_p3 }
  0xc7   : > { %1782 = vsyncadd (%p2226_p11), [#allocation8], 4294966256 }
  0xc8   : > { %1784 = dma.done.wait (%p2227_p12), [#allocation11], 32   ;;  %p2228_p13 = pmov %p2225_p3 }
  0xc9   : > { %v1814_v0 = vmov 0   ;;  %v1815_v1 = vmov 0.0   ;;  %v1507_v2 = vld [vmem:[#allocation4 + $0x4] ss:$12 sps:$4 sm:$0xff]   ;;  %v1509_v3 = vld [vmem:[#allocation4] ss:$12 sps:$4 sm:$0xff]   ;;  %v501_v31 = vlaneseq }
  0xca   : > { %1786 = vsyncadd (%p2228_p13), [#allocation11], 4294967264  ;;  %676 = vmatprep.mubr.bf16.mxu0 %v1814_v0  ;;  %1335 = vmatprep.subr.bf16.mxu1 %v1815_v1  ;;  %v1510_v4 = vld [vmem:[#allocation4 + $0x1c] ss:$12 sps:$4 sm:$0xff]   ;;  %v1512_v5 = vld [vmem:[#allocation4 + $0x18] ss:$12 sps:$4 sm:$0xff]  }
  0xcb   : > { %644 = vmatprep.subr.bf16.mxu0 %v1507_v2  ;;  %v1513_v6 = vld [vmem:[#allocation4 + $0x34] ss:$12 sps:$4 sm:$0xff]   ;;  %p445_p2 = scmp.lt.s32.totalorder %s1889_s15, 1  ;;  %v1515_v7 = vld [vmem:[#allocation4 + $0x30] ss:$12 sps:$4 sm:$0xff]   ;;  %vm1816_vm0 = vmmov 0  }
  0xcc   : > { %645 = vmatpush1.bf16.msra.mxu0 %v1509_v3  ;;  %v1516_v8 = vld [vmem:[#allocation4 + $0x4c] ss:$12 sps:$4 sm:$0xff]   ;;  %v1518_v9 = vld [vmem:[#allocation4 + $0x48] ss:$12 sps:$4 sm:$0xff]   ;;  %v1519_v10 = vld [vmem:[#allocation4 + $0x64] ss:$12 sps:$4 sm:$0xff]   ;;  %1351 = vmatprep.mubr.msk.bf16.mxu1 %vm1816_vm0, %v1815_v1 }
  0xcd   : > { %646 = vmatprep.subr.bf16.mxu0 %v1510_v4  ;;  %s2235_s15 = smov (!%p445_p2, %s1889_s15), 1  ;;  %v1531_v11 = vld [vmem:[#allocation4 + $0x8] ss:$12 sps:$4 sm:$0xff]   ;;  %v1521_v12 = vld [vmem:[#allocation4 + $0x60] ss:$12 sps:$4 sm:$0xff]   ;;  %v502_v32 = vshrl.u32 %v501_v31, 7 }
  0xce   : > { %1336 = vmatpush3.bf16.msra.mxu1 %v1531_v11  ;;  %v1532_v13 = vld [vmem:[#allocation4 + $0x20] ss:$12 sps:$4 sm:$0xff]   ;;  %v1522_v14 = vld [vmem:[#allocation4 + $0x7c] ss:$12 sps:$4 sm:$0xff]   ;;  %v1524_v16 = vld [vmem:[#allocation4 + $0x78] ss:$12 sps:$4 sm:$0xff]   ;;  %s447_s13 = scalar_lea.vmem %s2204_s1, %s2235_s15  ;;  %s450_s19 = scalar_lea.vmem %s2211_s8, %s2235_s15 }
  0xcf   : > { %1337 = vmatprep.subr.bf16.mxu1 %v1815_v1  ;;  %v456_v15 = vld [vmem:[%s381_s21] sm:$0xff]  ;;  %v1536_v28 = vld [vmem:[#allocation4 + $0x80] ss:$12 sps:$4 sm:$0xff]   ;;  %v507_v33 = vsub.s32 1, %v502_v32  ;;  %v503_v35 = vsub.s32 0, %v502_v32  ;;  %vm729_vm1 = vcmask 523264  }
  0xd0   : > { %647 = vmatpush1.bf16.msra.mxu0 %v1512_v5  ;;  %v1533_v17 = vld [vmem:[#allocation4 + $0x38] ss:$12 sps:$4 sm:$0xff]   ;;  %v1525_v18 = vld [vmem:[#allocation4 + $0x94] ss:$12 sps:$4 sm:$0xff]   ;;  %v457_v19 = vmul.f32 11.313708, %v456_v15 }
  0xd1   : > { %648 = vmatprep.subr.bf16.mxu0 %v1513_v6  ;;  %v1534_v20 = vld [vmem:[#allocation4 + $0x50] ss:$12 sps:$4 sm:$0xff]   ;;  %v1528_v23 = vld [vmem:[#allocation4 + $0xac] ss:$12 sps:$4 sm:$0xff]   ;;  %v1535_v25 = vld [vmem:[#allocation4 + $0x68] ss:$12 sps:$4 sm:$0xff]  }
  0xd2   : > { %1338 = vmatpush3.bf16.msra.mxu1 %v1532_v13  ;;  %v1527_v21 = vld [vmem:[#allocation4 + $0x90] ss:$12 sps:$4 sm:$0xff]   ;;  %v1530_v26 = vld [vmem:[#allocation4 + $0xa8] ss:$12 sps:$4 sm:$0xff]   ;;  %v1537_v29 = vld [vmem:[#allocation4 + $0x98] ss:$12 sps:$4 sm:$0xff]  }
  0xd3   : > { %1339 = vmatprep.subr.bf16.mxu1 %v1815_v1  ;;  %v1266_v22 = vld [vmem:[%s447_s13] ss:$0 sm:$0xff]  ;;  %v499_v34 = vld [vmem:[#allocation6] sm:$0x7]  ;;  %s1817_s14 = smov 64   ;;  %v511_v47 = vsub.s32 2, %v502_v32 }
  0xd4   : > { %649 = vmatpush1.bf16.msra.mxu0 %v1515_v7  ;;  %v2132_v24 = vadd.f32 %v1266_v22, %v457_v19  ;;  %v1538_v30 = vld [vmem:[#allocation4 + $0xb0] ss:$12 sps:$4 sm:$0xff]   ;;  %v508_v36 = vrot.slane %v499_v34, %v507_v33  ;;  %v504_v37 = vrot.slane %v499_v34, %v503_v35  ;;  %vm800_vm2 = vcmask 1043456   ;;  %s1265_s17 = sshll.u32 %s2235_s15, 3  ;;  %s2229_s26 = sld [smem:[#allocation17_spill]] }
  0xd5   : > { %650 = vmatprep.subr.bf16.mxu0 %v1516_v8  ;;  %v512_v48 = vrot.slane %v499_v34, %v511_v47  ;;  %v1292_v57 = vld [vmem:[%s450_s19] ss:$0 sm:$0xff]  ;;  %vm784_vm3 = vcmask 64512  }
  0xd6   : > { %1340 = vmatpush3.bf16.msra.mxu1 %v1533_v17  ;;  %v466_v27 = vpack.c.bf16 %v2132_v24, %v2132_v24 }
  0xd7   : > { %1341 = vmatprep.subr.bf16.mxu1 %v1815_v1 }
  0xd8   : > { %651 = vmatpush1.bf16.msra.mxu0 %v1518_v9 }
  0xd9   : > { %652 = vmatprep.subr.bf16.mxu0 %v1519_v10 }
  0xda   : > { %1342 = vmatpush3.bf16.msra.mxu1 %v1534_v20  ;;  %s454_s28 = scalar_lea.vmem %s2229_s26, %s1265_s17 }
  0xdb   : > { %1343 = vmatprep.subr.bf16.mxu1 %v1815_v1 }
  0xdc   : > { %653 = vmatpush1.bf16.msra.mxu0 %v1521_v12 }
  0xdd   : > { %654 = vmatprep.subr.bf16.mxu0 %v1522_v14 }
  0xde   : > { %1344 = vmatpush3.bf16.msra.mxu1 %v1535_v25 }
  0xdf   : > { %1345 = vmatprep.subr.bf16.mxu1 %v1815_v1 }
  0xe0   : > { %655 = vmatpush1.bf16.msra.mxu0 %v1524_v16 }
  0xe1   : > { %656 = vmatprep.subr.bf16.mxu0 %v1525_v18 }
  0xe2   : > { %1346 = vmatpush3.bf16.msra.mxu1 %v1536_v28 }
  0xe3   : > { %1347 = vmatprep.subr.bf16.mxu1 %v1815_v1 }
  0xe4   : > { %657 = vmatpush1.bf16.msra.mxu0 %v1527_v21 }
  0xe5   : > { %658 = vmatprep.subr.bf16.mxu0 %v1528_v23 }
  0xe6   : > { %1348 = vmatpush3.bf16.msra.mxu1 %v1537_v29 }
  0xe7   : > { %1349 = vmatprep.subr.bf16.mxu1 %v1815_v1 }
  0xe8   : > { %659 = vmatpush1.bf16.msra.mxu0 %v1530_v26 }
  0xe9   : > { %1379 = vmatprep.subr.bf16.mxu0 %v1815_v1 }
  0xea   : > { %1350 = vmatpush3.bf16.msra.mxu1 %v1538_v30 }
  0xeb   : > { %677 = vmatmul.mubr.bf16.vlgmr.msra.gmra.mrb[0].mxu0 %v466_v27  ;;  %1355 = vmatprep.subr.bf16.mxu1 %v1815_v1 }
  0xec   : > { %1395 = vmatprep.mubr.msk.bf16.mxu0 %vm1816_vm0, %v1815_v1 }
  0xed   : > { %1352 = vmatmul.mubr.bf16.vlgmr.msra.gmra.mrb[0].mxu1 %v466_v27 }
  0xee   : > { %1357 = vmatprep.mubr.msk.bf16.mxu1 %vm1816_vm0, %v1815_v1 }
 0x1be   : > { %v678_v38 = vpop.f32.mrb[0].mxu0 }
 0x1bf   : > { %v680_v39 = vpop.f32.mrb[1].mxu0  ;;  %v679_v43 = vadd.f32 %v678_v38, %v504_v37  ;;  %v1540_v37 = vld [vmem:[#allocation7 + $0x8] sm:$0xff]   ;;  %v1541_v38 = vld [vmem:[#allocation7 + $0x10] sm:$0xff]  }
 0x1c0   : > { %v681_v40 = vadd.f32 %v680_v39, %v508_v36  ;;  %v682_v41 = vpop.f32.mrb[2].mxu0  ;;  %v719_v49 = vpop.f32.mrb[0].mxu1  ;;  %v1539_v36 = vld [vmem:[#allocation7] sm:$0xff]   ;;  %v1542_v39 = vld [vmem:[#allocation7 + $0x18] sm:$0xff]  }
 0x1c1   : > { %v683_v42 = vpop.f32.mrb[3].mxu0  ;;  %v726_v46 = vpack.c.bf16 %v679_v43, %v679_v43  ;;  %v720_v50 = vadd.f32 %v719_v49, %v512_v48  ;;  %v1353_v51 = vpop.f32.mrb[1].mxu1  ;;  %1380 = vmatpush3.bf16.msra.mxu0 %v1539_v36  ;;  %v1544_v41 = vld [vmem:[#allocation7 + $0x28] sm:$0xff]   ;;  %v1546_v43 = vld [vmem:[#allocation7 + $0x38] sm:$0xff]  }
 0x1c2   : > { %v727_v44 = vpack.c.bf16 %v681_v40, %v681_v40  ;;  %v722_v52 = vpop.f32.mrb[2].mxu1  ;;  %1381 = vmatprep.subr.bf16.mxu0 %v1815_v1  ;;  %v1543_v40 = vld [vmem:[#allocation7 + $0x20] sm:$0xff]   ;;  %v1545_v42 = vld [vmem:[#allocation7 + $0x30] sm:$0xff]  }
 0x1c3   : > { %v728_v53 = vpack.c.bf16 %v720_v50, %v720_v50  ;;  %v1354_v54 = vpop.f32.mrb[3].mxu1  ;;  %v1296_v51 = vld [vmem:[#allocation9] ss:$0 sm:$0xff] }
 0x1c4   : > { %v734_v45 = vsel %vm729_vm1, %v727_v44, 0  ;;  %848 = vrot.lane.b32.xlu1 %v727_v44, %s1817_s14 }
 0x1c5   : > { %1356 = vmatpush3.bf16.xpose.msra.mxu1 %v734_v45  ;;  %v802_v55 = vsel %vm800_vm2, %v728_v53, 0  ;;  %1382 = vmatpush3.bf16.msra.mxu0 %v1540_v37 }
 0x1c6   : > { %1361 = vmatprep.subr.bf16.mxu1 %v1815_v1  ;;  %1383 = vmatprep.subr.bf16.mxu0 %v1815_v1 }
 0x1c8   : > { %845 = vrot.lane.b32.xlu1 %v726_v46, %s1817_s14 }
 0x1c9   : > { %1384 = vmatpush3.bf16.msra.mxu0 %v1541_v38 }
 0x1ca   : > { %1385 = vmatprep.subr.bf16.mxu0 %v1815_v1 }
 0x1cc   : > { %1358 = vmatmul.mubr.msk.bf16.vlgmr.msra.gmra.mrb[4].mxu1 %vm729_vm1, %v726_v46 }
 0x1cd   : > { %1363 = vmatprep.mubr.msk.bf16.mxu1 %vm1816_vm0, %v1815_v1  ;;  %1362 = vmatpush3.bf16.msra.mxu1 %v802_v55 }
 0x1ce   : > { %1367 = vmatprep.subr.bf16.mxu1 %v1815_v1  ;;  %1386 = vmatpush3.bf16.msra.mxu0 %v1542_v39 }
 0x1cf   : > { %1387 = vmatprep.subr.bf16.mxu0 %v1815_v1 }
 0x1d2   : > { %1388 = vmatpush3.bf16.msra.mxu0 %v1543_v40 }
 0x1d3   : > { %1389 = vmatprep.subr.bf16.mxu0 %v1815_v1 }
 0x1d6   : > { %1390 = vmatpush3.bf16.msra.mxu0 %v1544_v41 }
 0x1d7   : > { %1391 = vmatprep.subr.bf16.mxu0 %v1815_v1 }
 0x1da   : > { %1392 = vmatpush3.bf16.msra.mxu0 %v1545_v42 }
 0x1db   : > { %1393 = vmatprep.subr.bf16.mxu0 %v1815_v1 }
 0x1de   : > { %1394 = vmatpush3.bf16.msra.mxu0 %v1546_v43 }
 0x236   : > { %v849_v9 = vpop.permute.xlu1 %848 }
 0x237   : > { %v854_v11 = vsel %vm729_vm1, %v849_v9, 0 }
 0x23a   : > { %v846_v12 = vpop.permute.xlu1 %845 }
 0x29f   : > { %v770_v56 = vpop.f32.mrb[4].mxu1 }
 0x2a0   : > { %v776_v58 = vmul.f32 0.125, %v770_v56  ;;  %v1359_v59 = vpop.f32.mrb[5].mxu1 }
 0x2a1   : > { %v773_v60 = vpop.f32.mrb[6].mxu1 }
 0x2a2   : > { %v1360_v61 = vpop.f32.mrb[7].mxu1  ;;  %v783_v62 = vadd.f32 %v1292_v57, %v776_v58 }
 0x2a4   : > { %v785_v63 = vsel %vm784_vm3, %v783_v62, -inf }
 0x2a5   : > { %786 = vmax.xlane.f32.xlu0 %v785_v63 }
 0x332   : > { %v787_v0 = vpop.xlane.xlu0 %786 }
 0x333   : > { %v788_v2 = vsub.f32 %v783_v62, %v787_v0 }
 0x335   : > { %v789_v3 = vmul.f32 1.442695, %v788_v2  ;;  %v1305_v2 = vld [vmem:[#allocation10] ss:$0 sm:$0xff] }
 0x337   : > { %1547 = vpow2.f32 %v789_v3 }
 0x341   : > { %v1548_v4 = vpop.eup %1547 }
 0x342   : > { %v791_v5 = vsel %vm784_vm3, %v1548_v4, 0.0 }
 0x343   : > { %792 = vadd.xlane.f32.xlu0 %v791_v5 }
 0x3d0   : > { %v793_v6 = vpop.xlane.xlu0 %792 }
 0x3d1   : > { %1549 = vrcp.f32 %v793_v6 }
 0x3db   : > { %v1550_v7 = vpop.eup %1549 }
 0x3dc   : > { %v795_v8 = vmul.f32 %v1550_v7, %v1548_v4  ;;  %v1306_v4 = vld [vmem:[#allocation12] ss:$0 sm:$0xff] }
 0x3de   : > { %v796_v10 = vpack.c.bf16 %v795_v8, %v795_v8 }
 0x3e0   : > { %1364 = vmatmul.mubr.msk.bf16.vlgmr.msra.gmra.mrb[8].mxu1 %vm784_vm3, %v796_v10 }
 0x3e1   : > { %1368 = vmatpush3.bf16.xpose.msra.mxu1 %v854_v11  ;;  %1369 = vmatprep.mubr.msk.bf16.mxu1 %vm1816_vm0, %v1815_v1 }
 0x3e2   : > { %1373 = vmatprep.subr.bf16.mxu1 %v1815_v1 }
 0x3e8   : > { %1370 = vmatmul.mubr.msk.bf16.vlgmr.msra.gmra.mrb[12].mxu1 %vm729_vm1, %v846_v12 }
 0x3e9   : > { %1375 = vmatprep.mubr.msk.bf16.mxu1 %vm1816_vm0, %v1815_v1 }
 0x4b3   : > { %v838_v13 = vpop.f32.mrb[8].mxu1 }
 0x4b4   : > { %v1365_v14 = vpop.f32.mrb[9].mxu1 }
 0x4b5   : > { %v841_v15 = vpop.f32.mrb[10].mxu1 }
 0x4b6   : > { %v1366_v16 = vpop.f32.mrb[11].mxu1 }
 0x4bb   : > { %v890_v17 = vpop.f32.mrb[12].mxu1 }
 0x4bc   : > { %v896_v18 = vmul.f32 0.125, %v890_v17  ;;  %v1371_v19 = vpop.f32.mrb[13].mxu1 }
 0x4bd   : > { %v893_v20 = vpop.f32.mrb[14].mxu1 }
 0x4be   : > { %v1372_v21 = vpop.f32.mrb[15].mxu1  ;;  %v897_v22 = vadd.f32 %v1292_v57, %v896_v18 }
 0x4c0   : > { %v898_v23 = vsel %vm784_vm3, %v897_v22, -inf }
 0x4c1   : > { %899 = vmax.xlane.f32.xlu0 %v898_v23 }
 0x4d7   : > { %911 = vrot.lane.b32.xlu0 %v728_v53, %s1817_s14 }
 0x54e   : > { %v900_v25 = vpop.xlane.xlu0 %899 }
 0x54f   : > { %v901_v26 = vsub.f32 %v897_v22, %v900_v25 }
 0x551   : > { %v902_v27 = vmul.f32 1.442695, %v901_v26 }
 0x552   : > { %v912_v28 = vpop.permute.xlu0 %911 }
 0x553   : > { %1551 = vpow2.f32 %v902_v27  ;;  %v917_v29 = vsel %vm800_vm2, %v912_v28, 0 }
 0x554   : > { %1374 = vmatpush3.bf16.msra.mxu1 %v917_v29 }
 0x55d   : > { %v1552_v30 = vpop.eup %1551 }
 0x55e   : > { %v904_v31 = vsel %vm784_vm3, %v1552_v30, 0.0 }
 0x55f   : > { %905 = vadd.xlane.f32.xlu1 %v904_v31 }
 0x5ec   : > { %v906_v32 = vpop.xlane.xlu1 %905 }
 0x5ed   : > { %1553 = vrcp.f32 %v906_v32 }
 0x5f7   : > { %v1554_v33 = vpop.eup %1553 }
 0x5f8   : > { %v908_v34 = vmul.f32 %v1554_v33, %v1552_v30 }
 0x5fa   : > { %v909_v35 = vpack.c.bf16 %v908_v34, %v908_v34 }
 0x5fc   : > { %1376 = vmatmul.mubr.msk.bf16.vlgmr.msra.gmra.mrb[16].mxu1 %vm784_vm3, %v909_v35 }
 0x6cf   : > { %v953_v44 = vpop.f32.mrb[16].mxu1 }
 0x6d0   : > { %960 = vrot.lane.b32.xlu0 %v953_v44, %s1817_s14  ;;  %v1377_v45 = vpop.f32.mrb[17].mxu1 }
 0x6d1   : > { %v956_v46 = vpop.f32.mrb[18].mxu1 }
 0x6d2   : > { %v1378_v47 = vpop.f32.mrb[19].mxu1 }
 0x742   : > { %v961_v48 = vpop.permute.xlu0 %960 }
 0x743   : > { %v963_v49 = vsel %vm729_vm1, %v838_v13, %v961_v48 }
 0x744   : > { %v964_v50 = vpack.c.bf16 %v963_v49, %v963_v49 }
 0x746   : > { %1396 = vmatmul.mubr.bf16.vlgmr.msra.gmra.mrb[4].mxu0 %v964_v50 }
 0x819   : > { %v1070_v52 = vpop.f32.mrb[4].mxu0 }
 0x81a   : > { %v1071_v53 = vadd.f32 %v1296_v51, %v1070_v52  ;;  %v1397_v54 = vpop.f32.mrb[5].mxu0 }
 0x81b   : > { %v1073_v55 = vpop.f32.mrb[6].mxu0 }
 0x81c   : > { %v1398_v1 = vpop.f32.mrb[7].mxu0  ;;  %v1076_v56 = vadd.f32 %v1071_v53, %v2132_v24 }
 0x81e   : > { %1079 = vadd.xlane.f32.xlu0 %v1076_v56 }
 0x8ab   : > { %v1080_v57 = vpop.xlane.xlu0 %1079 }
 0x8ac   : > { %v1082_v58 = vmul.f32 0.0078125, %v1080_v57 }
 0x8ae   : > { %v1083_v59 = vsub.f32 %v1076_v56, %v1082_v58 }
 0x8b0   : > { %v1084_v60 = vmul.f32 %v1083_v59, %v1083_v59 }
 0x8b2   : > { %1085 = vadd.xlane.f32.xlu1 %v1084_v60 }
 0x93f   : > { %v1086_v61 = vpop.xlane.xlu1 %1085 }
 0x940   : > { %v1087_v62 = vmul.f32 0.0078125, %v1086_v61 }
 0x942   : > { %v1088_v63 = vadd.f32 1e-05, %v1087_v62 }
 0x944   : > { %1555 = vrsqrt.f32 %v1088_v63 }
 0x94e   : > { %v1556_v0 = vpop.eup %1555 }
 0x94f   : > { %v1090_v3 = vmul.f32 %v1556_v0, %v1083_v59 }
 0x951   : > { %v1097_v5 = vmul.f32 %v1305_v2, %v1090_v3 }
 0x953   : > { %v1104_v24 = vadd.f32 %v1306_v4, %v1097_v5 }
 0x955   : > { %1105 = vst [vmem:[%s454_s28] sm:$0xff] %v1104_v24 }
 0x956 PF: > { %p22_p0 = scmp.ge.s32.totalorder %s2038_s27, 4   ;;  %s2230_s30 = smov %s1793_s10 }
 0x957   : > { %s2231_s10 = smov %s1797_s11  ;;  %s2232_s11 = smov %s2050_s9 }
 0x958   : > { %s2233_s12 = smov %s2038_s27  ;;  %24 = sbr.rel (!%p22_p0) target bundleno = 8 (0x8), region = 126 }
 0x95f   :  { %1125 = vsyncpa [#allocation3], 1 }
 0x960   :  { %1127 = vsyncpa [#allocation3 + $0x1], 1 }
 0x961   :  { %1128 = vsyncpa [#allocation5], 1 }
 0x962   :  { %1129 = vsyncpa [#allocation8], 1 }
 0x963   :  { %1130 = vsyncpa [#allocation11], 1 }

// kernel: middle_forward.7
= control target key start
LH: loop header
LB: loop body
LE: loop exit
PB: predicated region body
PF: predicated region fallthrough
CT: control target
= control target key end

     0   :  { %s1642_s0 = inlined_call_operand.vmem [shape: f32[16,128], index: 0, kind: input, shape index: {}]   ;;  %s1643_s1 = inlined_call_operand.hbm [shape: bf16[128,256], index: 1, kind: input, shape index: {}]   ;;  %s1644_s2 = inlined_call_operand.hbm [shape: f32[1,256], index: 2, kind: input, shape index: {}]   ;;  %s1645_s3 = inlined_call_operand.hbm [shape: bf16[256,128], index: 3, kind: input, shape index: {}]   ;;  %s1646_s4 = inlined_call_operand.hbm [shape: f32[1,128], index: 4, kind: input, shape index: {}]   ;;  %s1647_s5 = inlined_call_operand.hbm [shape: f32[1,128], index: 5, kind: input, shape index: {}]   ;;  %s1648_s6 = inlined_call_operand.hbm [shape: f32[1,128], index: 6, kind: input, shape index: {}]   ;;  %s1649_s7 = inlined_call_operand.hbm [shape: f32[16,128], index: 7, kind: output, shape index: {}]  }
   0x1   :  { %1653 = sst [smem:[#allocation20_spill]] %s1644_s2 }
   0x2   :  { %1654 = sst [smem:[#allocation21_spill]] %s1646_s4 }
   0x3   :  { %12 = vsyncpa [#allocation3], 0 }
   0x4   :  { %13 = vsyncpa [#allocation6], 0 }
   0x5   :  { %14 = vsyncpa [#allocation9], 0 }
   0x6   :  { %15 = vsyncpa [#allocation12], 0 }
   0x7   :  { %16 = vsyncpa [#allocation4], 0 }
   0x8   :  { %18 = vsyncpa [#allocation4 + $0x1], 0  ;;  %s1374_s24 = smov 0   ;;  %s1376_s25 = smov 0  }
   0x9   :  { %s1378_s26 = smov 0   ;;  %s1380_s27 = smov 0  }
   0xa LB: > { %s1395_s28 = sadd.s32 4294967295, %s1320_s27   ;;  %s848_s29 = sadd.s32 4294967294, %s1320_s27   ;;  %s1320_s27 = sphi %s1380_s27, %s1678_s27   ;;  %s1316_s26 = sphi %s1378_s26, %s1677_s26   ;;  %s1312_s25 = sphi %s1376_s25, %s1676_s25   ;;  %s1308_s24 = sphi %s1374_s24, %s1675_s24  }
   0xb   : > { %s1399_s30 = sadd.s32 1, %s1320_s27   ;;  %s183_s8 = sadd.s32 1, %s1316_s26 }
   0xc   : > { %s180_s9 = ssub.s32 %s1320_s27, %s1399_s30  ;;  %p193_p0 = scmp.ne.s32.totalorder %s1316_s26, %s1312_s25 }
   0xd   : > { %p181_p1 = scmp.eq.s32.totalorder %s180_s9, 0  ;;  %p194_p2 = scmp.eq.s32.totalorder %s1395_s28, 1 }
   0xe   : > { %p199_p3 = scmp.ne.s32.totalorder %s1312_s25, %s1308_s24  ;;  %p200_p4 = scmp.eq.s32.totalorder %s848_s29, 1 }
   0xf   : > { %s1410_s10 = scalar_select %p181_p1, %s1316_s26, %s183_s8  }
  0x10   : > { %p1412_p5 = por %p194_p2, %p193_p0  ;;  %p1416_p6 = por %p200_p4, %p199_p3 }
  0x11   : > { %1655 = sst [smem:[#allocation19_spill]] %s1410_s10  ;;  %p849_p7 = scmp.ge.s32.totalorder %s1320_s27, 1 }
  0x12   : > { %s1656_s11 = scalar_select %p1412_p5, 1, 0 }
  0x13   : > { %s1657_s12 = scalar_select %p1416_p6, 1, 0 }
  0x14   : > { %p207_p8 = scmp.lt.s32.totalorder %s1320_s27, 3  ;;  %p1650_p9 = scmp.eq.s32.totalorder %s1395_s28, 0 }
  0x15   : > { %s1322_s14 = smov [#allocation5]   ;;  %s1323_s16 = smov [#allocation8]  }
  0x16   : > { %p1423_p10 = pnand %p849_p7, %p207_p8  ;;  %s233_s15 = sshll.u32 %s1322_s14, 4  ;;  %s234_s15 = int_to_ptr.vmem [resolvable:$true] %s233_s15 }
  0x17   : > { %s257_s17 = sshll.u32 %s1323_s16, 4  ;;  %s1324_s19 = smov [#allocation2]   ;;  %s1435_s17 = int_to_ptr.vmem [resolvable:$true] %s257_s17 }
  0x18   : > { %s1658_s13 = scalar_select %p1423_p10, 1, 0 }
  0x19   : > { %p953_p11 = pneg %p1423_p10  ;;  %s219_s20 = sshll.u32 %s1324_s19, 4  ;;  %s1437_s20 = int_to_ptr.vmem [resolvable:$true] %s219_s20 }
  0x1a   : > { %s1660_s2 = sld [smem:[#allocation20_spill]] }
  0x1b   : > { %p1431_p12 = pnand %p1650_p9, %p953_p11 }
  0x1d   : > { %p1447_p0 = pneg %p1431_p12 }
  0x20   : > { %s1074_s23 = scalar_lea.hbm %s1660_s2, 32 }
  0x21   : > { %p1075_p13 = scmp.ne.s32.totalorder %s1660_s2, %s1074_s23  ;;  %p1081_p3 = scmp.lt.u32.totalorder %s1074_s23, %s1660_s2 }
  0x23   : > { %p1077_p1 = pnand %p1447_p0, %p1075_p13 }
  0x25   : > { %p1078_p2 = pneg %p1077_p1 }
  0x27   : > { %p1083_p4 = pnand %p1081_p3, %p1078_p2 }
  0x29   : > { %1086 = shalt.err (!%p1083_p4)
}
  0x2a   : > { %s1087_s19 = scalar_lea.vmem %s234_s15, 32  ;;  %p1095_p9 = scmp.lt.s32.totalorder %s234_s15, %s234_s15 }
  0x2b   : > { %p1088_p7 = scmp.ne.s32.totalorder %s234_s15, %s1087_s19  ;;  %p1096_p6 = scmp.lt.s32.totalorder %s1087_s19, %s1087_s19 }
  0x2d   : > { %p1090_p8 = pnand %p1088_p7, %p1447_p0  ;;  %p1097_p5 = por %p1096_p6, %p1095_p9 }
  0x2f   : > { %p1091_p11 = pneg %p1090_p8 }
  0x31   : > { %p1098_p10 = pnand %p1097_p5, %p1091_p11 }
  0x33   : > { %1101 = shalt.err (!%p1098_p10)
}
  0x34   : > { %959 = dma.hbm_to_vmem [thread:$0]  (!%p1431_p12), %s1660_s2, 32, %s234_s15, [#allocation6]  }
  0x35   : > { %s1662_s4 = sld [smem:[#allocation21_spill]] }
  0x3b   : > { %s1102_s8 = scalar_lea.hbm %s1662_s4, 16 }
  0x3c   : > { %p1103_p13 = scmp.ne.s32.totalorder %s1662_s4, %s1102_s8  ;;  %p1109_p5 = scmp.lt.u32.totalorder %s1102_s8, %s1662_s4 }
  0x3e   : > { %p1105_p1 = pnand %p1103_p13, %p1447_p0 }
  0x40   : > { %p1106_p6 = pneg %p1105_p1 }
  0x42   : > { %p1111_p9 = pnand %p1109_p5, %p1106_p6 }
  0x44   : > { %1114 = shalt.err (!%p1111_p9)
}
  0x45   : > { %s1115_s15 = scalar_lea.vmem %s1435_s17, 16  ;;  %s1122_s21 = scalar_lea.vmem %s1435_s17, 32 }
  0x46   : > { %p1116_p10 = scmp.ne.s32.totalorder %s1435_s17, %s1115_s15  ;;  %p1123_p4 = scmp.lt.s32.totalorder %s1435_s17, %s1435_s17 }
  0x47   : > { %p1124_p7 = scmp.lt.s32.totalorder %s1122_s21, %s1115_s15 }
  0x48   : > { %p1118_p2 = pnand %p1116_p10, %p1447_p0 }
  0x49   : > { %p1125_p8 = por %p1124_p7, %p1123_p4 }
  0x4a   : > { %p1119_p3 = pneg %p1118_p2 }
  0x4c   : > { %p1126_p11 = pnand %p1125_p8, %p1119_p3 }
  0x4e   : > { %1129 = shalt.err (!%p1126_p11)
}
  0x4f   : > { %965 = dma.hbm_to_vmem [thread:$0]  (!%p1431_p12), %s1662_s4, 16, %s1435_s17, [#allocation9]  }
  0x50   : > { %s1130_s8 = scalar_lea.hbm %s1643_s1, 2048 }
  0x51   : > { %p1131_p13 = scmp.ne.s32.totalorder %s1643_s1, %s1130_s8  ;;  %p1137_p5 = scmp.lt.u32.totalorder %s1130_s8, %s1643_s1 }
  0x53   : > { %p1133_p1 = pnand %p1131_p13, %p1447_p0 }
  0x55   : > { %p1134_p6 = pneg %p1133_p1 }
  0x57   : > { %p1139_p9 = pnand %p1137_p5, %p1134_p6 }
  0x59   : > { %1142 = shalt.err (!%p1139_p9)
}
  0x5a   : > { %s1143_s17 = scalar_lea.vmem %s1437_s20, 2048  ;;  %p1151_p4 = scmp.lt.s32.totalorder %s1437_s20, %s1437_s20 }
  0x5b   : > { %p1144_p10 = scmp.ne.s32.totalorder %s1437_s20, %s1143_s17  ;;  %p1152_p7 = scmp.lt.s32.totalorder %s1143_s17, %s1143_s17 }
  0x5d   : > { %p1146_p2 = pnand %p1144_p10, %p1447_p0  ;;  %p1153_p8 = por %p1152_p7, %p1151_p4 }
  0x5f   : > { %p1147_p3 = pneg %p1146_p2 }
  0x61   : > { %p1154_p11 = pnand %p1153_p8, %p1147_p3 }
  0x63   : > { %1157 = shalt.err (!%p1154_p11)
}
  0x64   : > { %s1325_s21 = smov 128   ;;  %s1326_s10 = smov 8  }
  0x65   : > { %956 = dma.hbm_to_vmem [thread:$0]  (!%p1431_p12), %s1643_s1, 2048, %s1437_s20, [#allocation3], %s1325_s21, %s1325_s21, %s1326_s10  }
  0x66   : > { %s1327_s29 = smov [#allocation7]   ;;  %s1158_s19 = scalar_lea.hbm %s1645_s3, 2048 }
  0x67   : > { %s243_s8 = sshll.u32 %s1327_s29, 4  ;;  %p1159_p13 = scmp.ne.s32.totalorder %s1645_s3, %s1158_s19  ;;  %s244_s8 = int_to_ptr.vmem [resolvable:$true] %s243_s8 }
  0x68   : > { %p1165_p5 = scmp.lt.u32.totalorder %s1158_s19, %s1645_s3 }
  0x69   : > { %p1161_p1 = pnand %p1159_p13, %p1447_p0 }
  0x6b   : > { %p1162_p6 = pneg %p1161_p1 }
  0x6d   : > { %p1167_p9 = pnand %p1165_p5, %p1162_p6 }
  0x6f   : > { %1170 = shalt.err (!%p1167_p9)
}
  0x70   : > { %s1171_s20 = scalar_lea.vmem %s244_s8, 2048  ;;  %p1179_p4 = scmp.lt.s32.totalorder %s244_s8, %s244_s8 }
  0x71   : > { %p1172_p10 = scmp.ne.s32.totalorder %s244_s8, %s1171_s20  ;;  %p1180_p7 = scmp.lt.s32.totalorder %s1171_s20, %s1171_s20 }
  0x73   : > { %p1174_p2 = pnand %p1172_p10, %p1447_p0  ;;  %p1181_p8 = por %p1180_p7, %p1179_p4 }
  0x75   : > { %p1175_p3 = pneg %p1174_p2 }
  0x77   : > { %p1182_p11 = pnand %p1181_p8, %p1175_p3 }
  0x79   : > { %1185 = shalt.err (!%p1182_p11)
}
  0x7a   : > { %s1328_s21 = smov 64   ;;  %s1329_s10 = smov 4  }
  0x7b   : > { %962 = dma.hbm_to_vmem [thread:$0]  (!%p1431_p12), %s1645_s3, 2048, %s244_s8, [#allocation6], %s1328_s21, %s1328_s21, %s1329_s10  }
  0x7c   : > { %s1330_s22 = smov [#allocation10]   ;;  %s1331_s29 = smov [#allocation11]  }
  0x7d   : > { %s268_s23 = sshll.u32 %s1330_s22, 4  ;;  %s279_s14 = sshll.u32 %s1331_s29, 4  ;;  %s269_s23 = int_to_ptr.vmem [resolvable:$true] %s268_s23  ;;  %s1528_s14 = int_to_ptr.vmem [resolvable:$true] %s279_s14 }
  0x7e   : > { %s1186_s15 = scalar_lea.hbm %s1647_s5, 16 }
  0x7f   : > { %p1187_p13 = scmp.ne.s32.totalorder %s1647_s5, %s1186_s15  ;;  %p1193_p5 = scmp.lt.u32.totalorder %s1186_s15, %s1647_s5 }
  0x81   : > { %p1189_p1 = pnand %p1187_p13, %p1447_p0 }
  0x83   : > { %p1190_p6 = pneg %p1189_p1 }
  0x85   : > { %p1195_p9 = pnand %p1193_p5, %p1190_p6 }
  0x87   : > { %1198 = shalt.err (!%p1195_p9)
}
  0x88   : > { %s1199_s21 = scalar_lea.vmem %s269_s23, 16  ;;  %s1206_s10 = scalar_lea.vmem %s269_s23, 32 }
  0x89   : > { %p1200_p10 = scmp.ne.s32.totalorder %s269_s23, %s1199_s21  ;;  %p1207_p4 = scmp.lt.s32.totalorder %s269_s23, %s269_s23 }
  0x8a   : > { %p1208_p7 = scmp.lt.s32.totalorder %s1206_s10, %s1199_s21 }
  0x8b   : > { %p1202_p2 = pnand %p1200_p10, %p1447_p0 }
  0x8c   : > { %p1209_p8 = por %p1208_p7, %p1207_p4 }
  0x8d   : > { %p1203_p3 = pneg %p1202_p2 }
  0x8f   : > { %p1210_p11 = pnand %p1209_p8, %p1203_p3 }
  0x91   : > { %1213 = shalt.err (!%p1210_p11)
}
  0x92   : > { %968 = dma.hbm_to_vmem [thread:$0]  (!%p1431_p12), %s1647_s5, 16, %s269_s23, [#allocation9]  }
  0x93   : > { %s1214_s19 = scalar_lea.hbm %s1648_s6, 16 }
  0x94   : > { %p1215_p13 = scmp.ne.s32.totalorder %s1648_s6, %s1214_s19  ;;  %p1221_p5 = scmp.lt.u32.totalorder %s1214_s19, %s1648_s6 }
  0x96   : > { %p1217_p1 = pnand %p1215_p13, %p1447_p0 }
  0x98   : > { %p1218_p6 = pneg %p1217_p1 }
  0x9a   : > { %p1223_p9 = pnand %p1221_p5, %p1218_p6 }
  0x9c   : > { %1226 = shalt.err (!%p1223_p9)
}
  0x9d   : > { %s1227_s23 = scalar_lea.vmem %s1528_s14, 16  ;;  %s1234_s8 = scalar_lea.vmem %s1528_s14, 32 }
  0x9e   : > { %p1228_p10 = scmp.ne.s32.totalorder %s1528_s14, %s1227_s23  ;;  %p1235_p4 = scmp.lt.s32.totalorder %s1528_s14, %s1528_s14 }
  0x9f   : > { %p1236_p7 = scmp.lt.s32.totalorder %s1234_s8, %s1227_s23 }
  0xa0   : > { %p1230_p2 = pnand %p1228_p10, %p1447_p0 }
  0xa1   : > { %p1237_p8 = por %p1236_p7, %p1235_p4 }
  0xa2   : > { %p1231_p3 = pneg %p1230_p2 }
  0xa4   : > { %p1238_p11 = pnand %p1237_p8, %p1231_p3 }
  0xa6   : > { %1241 = shalt.err (!%p1238_p11)
}
  0xa7   : > { %971 = dma.hbm_to_vmem [thread:$0]  (!%p1431_p12), %s1648_s6, 16, %s1528_s14, [#allocation12]  }
  0xa8   : > { %p1663_p13 = scmp.ne.s32.totalorder %s1658_s13, 0 }
  0xa9   : > { %p1664_p0 = scmp.eq.s32.totalorder (!%p1663_p13), %s1395_s28, 0 }
  0xaa   : > { %299 = sbr.rel (%p1663_p13) target bundleno = 984 (0x3d8), region = 48 }
  0xb1   : > { %1287 = dma.done.wait (%p1664_p0), [#allocation3], 2048   ;;  %p1665_p1 = pmov %p1664_p0 }
  0xb2   : > { %p1666_p6 = pmov %p1664_p0 }
  0xb3   : > { %1289 = vsyncadd (%p1665_p1), [#allocation3], 4294965248 }
  0xb4   : > { %1291 = dma.done.wait (%p1666_p6), [#allocation6], 2080   ;;  %p1667_p5 = pmov %p1664_p0 }
  0xb5   : > { %p1668_p9 = pmov %p1664_p0 }
  0xb6   : > { %1293 = vsyncadd (%p1667_p5), [#allocation6], 4294965216 }
  0xb7   : > { %1295 = dma.done.wait (%p1668_p9), [#allocation9], 32   ;;  %p1669_p12 = pmov %p1664_p0 }
  0xb8   : > { %p1670_p10 = pmov %p1664_p0 }
  0xb9   : > { %1297 = vsyncadd (%p1669_p12), [#allocation9], 4294967264 }
  0xba   : > { %1299 = dma.done.wait (%p1670_p10), [#allocation12], 16   ;;  %p1671_p2 = pmov %p1664_p0 }
  0xbb   : > { %v1332_v0 = vmov 0   ;;  %v1032_v1 = vld [vmem:[#allocation2 + $0x4] ss:$8 sps:$4 sm:$0xff]   ;;  %v1034_v2 = vld [vmem:[#allocation2] ss:$8 sps:$4 sm:$0xff]   ;;  %p350_p3 = scmp.lt.s32.totalorder %s1395_s28, 1  ;;  %v375_v35 = vlaneseq }
  0xbc   : > { %1301 = vsyncadd (%p1671_p2), [#allocation12], 4294967280  ;;  %497 = vmatprep.mubr.bf16.mxu0 %v1332_v0  ;;  %465 = vmatprep.subr.bf16.mxu0 %v1032_v1  ;;  %v1035_v3 = vld [vmem:[#allocation2 + $0x14] ss:$8 sps:$4 sm:$0xff]   ;;  %v1037_v4 = vld [vmem:[#allocation2 + $0x10] ss:$8 sps:$4 sm:$0xff]  }
  0xbd   : > { %466 = vmatpush1.bf16.msra.mxu0 %v1034_v2  ;;  %v1038_v5 = vld [vmem:[#allocation2 + $0x24] ss:$8 sps:$4 sm:$0xff]   ;;  %v1040_v6 = vld [vmem:[#allocation2 + $0x20] ss:$8 sps:$4 sm:$0xff]   ;;  %v1041_v7 = vld [vmem:[#allocation2 + $0x34] ss:$8 sps:$4 sm:$0xff]  }
  0xbe   : > { %467 = vmatprep.subr.bf16.mxu0 %v1035_v3  ;;  %v1043_v8 = vld [vmem:[#allocation2 + $0x30] ss:$8 sps:$4 sm:$0xff]   ;;  %v1044_v9 = vld [vmem:[#allocation2 + $0x44] ss:$8 sps:$4 sm:$0xff]   ;;  %v1046_v12 = vld [vmem:[#allocation2 + $0x40] ss:$8 sps:$4 sm:$0xff]  }
  0xbf   : > { %v1056_v10 = vld [vmem:[#allocation7 + $0x40] sm:$0xff]   ;;  %v1058_v13 = vld [vmem:[#allocation7 + $0x48] sm:$0xff]   ;;  %s351_s13 = scalar_select %p350_p3, %s1395_s28, 1  ;;  %v1060_v15 = vld [vmem:[#allocation7 + $0x50] sm:$0xff]   ;;  %v376_v36 = vshrl.u32 %v375_v35, 7 }
  0xc0   : > { %v1057_v11 = vld [vmem:[#allocation7] sm:$0xff]   ;;  %905 = vmatprep.subr.bf16.mxu1 %v1056_v10  ;;  %v1059_v14 = vld [vmem:[#allocation7 + $0x8] sm:$0xff]   ;;  %v1047_v16 = vld [vmem:[#allocation2 + $0x54] ss:$8 sps:$4 sm:$0xff]   ;;  %s347_s22 = sand.u32 1, %s1312_s25   ;;  %s902_s16 = sshll.u32 %s1395_s28, 7 }
  0xc1   : > { %468 = vmatpush1.bf16.msra.mxu0 %v1037_v4  ;;  %906 = vmatpush3.bf16.msra.mxu1 %v1057_v11  ;;  %v1049_v17 = vld [vmem:[#allocation2 + $0x50] ss:$8 sps:$4 sm:$0xff]   ;;  %s865_s18 = sshll.u32 %s351_s13, 3  ;;  %v1050_v20 = vld [vmem:[#allocation2 + $0x64] ss:$8 sps:$4 sm:$0xff]   ;;  %v377_v37 = vsub.s32 0, %v376_v36  ;;  %s1600_s2 = scalar_lea.hbm %s1649_s7, %s902_s16 }
  0xc2   : > { %469 = vmatprep.subr.bf16.mxu0 %v1038_v5  ;;  %907 = vmatprep.subr.bf16.mxu1 %v1058_v13  ;;  %v1061_v18 = vld [vmem:[#allocation7 + $0x10] sm:$0xff]   ;;  %v1062_v19 = vld [vmem:[#allocation7 + $0x58] sm:$0xff]   ;;  %v1064_v24 = vld [vmem:[#allocation7 + $0x60] sm:$0xff]   ;;  %s353_s4 = scalar_lea.vmem %s1642_s0, %s865_s18  ;;  %v381_v39 = vsub.s32 1, %v376_v36  ;;  %s864_s29 = sshll.u32 %s347_s22, 3 }
  0xc3   : > { %v1052_v21 = vld [vmem:[#allocation2 + $0x60] ss:$8 sps:$4 sm:$0xff]   ;;  %v1053_v22 = vld [vmem:[#allocation2 + $0x74] ss:$8 sps:$4 sm:$0xff]   ;;  %v1055_v26 = vld [vmem:[#allocation2 + $0x70] ss:$8 sps:$4 sm:$0xff]  }
  0xc4   : > { %v1063_v23 = vld [vmem:[#allocation7 + $0x18] sm:$0xff]   ;;  %v1065_v25 = vld [vmem:[#allocation7 + $0x20] sm:$0xff]   ;;  %v1066_v28 = vld [vmem:[#allocation7 + $0x68] sm:$0xff]   ;;  %s349_s19 = scalar_lea.vmem [#allocation13], %s864_s29  ;;  %s716_s23 = scalar_lea.sflag [#allocation4], %s347_s22 }
  0xc5   : > { %470 = vmatpush1.bf16.msra.mxu0 %v1040_v6  ;;  %908 = vmatpush3.bf16.msra.mxu1 %v1059_v14  ;;  %v355_v27 = vld [vmem:[%s353_s4] sm:$0xff]  ;;  %v1067_v30 = vld [vmem:[#allocation7 + $0x28] sm:$0xff]   ;;  %v1068_v31 = vld [vmem:[#allocation7 + $0x70] sm:$0xff]   ;;  %s729_s15 = sshll.u32 %s349_s19, 4  ;;  %p1672_p7 = scmp.ne.s32.totalorder %s1656_s11, 0  ;;  %s1602_s15 = int_to_ptr.vmem [resolvable:$true] %s729_s15 }
  0xc6   : > { %471 = vmatprep.subr.bf16.mxu0 %v1041_v7  ;;  %909 = vmatprep.subr.bf16.mxu1 %v1060_v15  ;;  %v356_v29 = vpack.c.bf16 %v355_v27, %v355_v27  ;;  %v1069_v32 = vld [vmem:[#allocation7 + $0x30] sm:$0xff]   ;;  %v1070_v33 = vld [vmem:[#allocation7 + $0x78] sm:$0xff]   ;;  %v882_v53 = vld [vmem:[#allocation8] ss:$0 sm:$0xff]  ;;  %s1242_s8 = scalar_lea.vmem %s1602_s15, 128  ;;  %s1333_s28 = smov [#allocation13]  }
  0xc7   : > { %v1071_v34 = vld [vmem:[#allocation7 + $0x38] sm:$0xff]   ;;  %v899_v4 = vld [vmem:[#allocation10] ss:$0 sm:$0xff]  ;;  %v900_v6 = vld [vmem:[#allocation11] ss:$0 sm:$0xff]  ;;  %p1243_p4 = scmp.ne.s32.totalorder %s1602_s15, %s1242_s8  ;;  %s1246_s21 = sshll.u32 %s1333_s28, 4  ;;  %s1247_s21 = int_to_ptr.vmem [resolvable:$false] %s1246_s21 }
  0xc8   : > { %v373_v38 = vld [vmem:[#allocation5] sm:$0x3]  ;;  %s1248_s10 = scalar_lea.vmem %s1247_s21, 256  ;;  %p1249_p13 = scmp.lt.s32.totalorder %s1602_s15, %s1247_s21 }
  0xc9   : > { %472 = vmatpush1.bf16.msra.mxu0 %v1043_v8  ;;  %910 = vmatpush3.bf16.msra.mxu1 %v1061_v18  ;;  %v378_v40 = vrot.slane %v373_v38, %v377_v37  ;;  %v382_v41 = vrot.slane %v373_v38, %v381_v39  ;;  %p1244_p8 = pnand %p1243_p4, %p1672_p7  ;;  %p1250_p0 = scmp.lt.s32.totalorder %s1248_s10, %s1242_s8 }
  0xca   : > { %473 = vmatprep.subr.bf16.mxu0 %v1044_v9  ;;  %911 = vmatprep.subr.bf16.mxu1 %v1062_v19 }
  0xcb   : > { %p1245_p11 = pneg %p1244_p8  ;;  %p1251_p1 = por %p1250_p0, %p1249_p13 }
  0xcd   : > { %474 = vmatpush1.bf16.msra.mxu0 %v1046_v12  ;;  %912 = vmatpush3.bf16.msra.mxu1 %v1063_v23  ;;  %p1252_p6 = pnand %p1251_p1, %p1245_p11 }
  0xce   : > { %475 = vmatprep.subr.bf16.mxu0 %v1047_v16  ;;  %913 = vmatprep.subr.bf16.mxu1 %v1064_v24 }
  0xd1   : > { %476 = vmatpush1.bf16.msra.mxu0 %v1049_v17  ;;  %914 = vmatpush3.bf16.msra.mxu1 %v1065_v25 }
  0xd2   : > { %477 = vmatprep.subr.bf16.mxu0 %v1050_v20  ;;  %915 = vmatprep.subr.bf16.mxu1 %v1066_v28 }
  0xd5   : > { %478 = vmatpush1.bf16.msra.mxu0 %v1052_v21  ;;  %916 = vmatpush3.bf16.msra.mxu1 %v1067_v30 }
  0xd6   : > { %479 = vmatprep.subr.bf16.mxu0 %v1053_v22  ;;  %917 = vmatprep.subr.bf16.mxu1 %v1068_v31 }
  0xd9   : > { %480 = vmatpush1.bf16.msra.mxu0 %v1055_v26  ;;  %918 = vmatpush3.bf16.msra.mxu1 %v1069_v32 }
  0xda   : > { %919 = vmatprep.subr.bf16.mxu1 %v1070_v33 }
  0xdc   : > { %498 = vmatmul.mubr.bf16.vlgmr.msra.gmra.mrb[0].mxu0 %v356_v29 }
  0xdd   : > { %920 = vmatpush3.bf16.msra.mxu1 %v1071_v34 }
 0x1af   : > { %v499_v42 = vpop.f32.mrb[0].mxu0 }
 0x1b0   : > { %v500_v43 = vadd.f32 %v499_v42, %v378_v40  ;;  %v501_v44 = vpop.f32.mrb[1].mxu0 }
 0x1b1   : > { %v502_v45 = vadd.f32 %v501_v44, %v382_v41  ;;  %v503_v46 = vpop.f32.mrb[2].mxu0 }
 0x1b2   : > { %v506_v47 = vmax.f32 %v500_v43, 0.0  ;;  %v504_v48 = vpop.f32.mrb[3].mxu0 }
 0x1b3   : > { %v507_v49 = vmax.f32 %v502_v45, 0.0 }
 0x1b4   : > { %v508_v51 = vpack.c.bf16 %v506_v47, %v506_v47 }
 0x1b5   : > { %v509_v50 = vpack.c.bf16 %v507_v49, %v507_v49 }
 0x1b7   : > { %677 = vmatprep.mubr.bf16.mxu1 %v509_v50 }
 0x1b8   : > { %678 = vmatmul.mubr.bf16.vlgmr.msra.gmra.mrb[0].mxu1 %v508_v51 }
 0x28b   : > { %v921_v52 = vpop.f32.mrb[0].mxu1 }
 0x28c   : > { %v922_v54 = vpop.f32.mrb[1].mxu1 }
 0x28d   : > { %v923_v55 = vadd.f32 %v922_v54, %v921_v52  ;;  %v924_v56 = vpop.f32.mrb[2].mxu1 }
 0x28e   : > { %v925_v57 = vpop.f32.mrb[3].mxu1 }
 0x28f   : > { %v680_v58 = vadd.f32 %v923_v55, %v882_v53 }
 0x291   : > { %v685_v59 = vadd.f32 %v680_v58, %v355_v27 }
 0x293   : > { %688 = vadd.xlane.f32.xlu0 %v685_v59 }
 0x320   : > { %v689_v60 = vpop.xlane.xlu0 %688 }
 0x321   : > { %v691_v61 = vmul.f32 0.0078125, %v689_v60 }
 0x323   : > { %v692_v62 = vsub.f32 %v685_v59, %v691_v61 }
 0x325   : > { %v693_v63 = vmul.f32 %v692_v62, %v692_v62 }
 0x327   : > { %694 = vadd.xlane.f32.xlu0 %v693_v63 }
 0x3b4   : > { %v695_v0 = vpop.xlane.xlu0 %694 }
 0x3b5   : > { %v696_v1 = vmul.f32 0.0078125, %v695_v0 }
 0x3b7   : > { %v697_v2 = vadd.f32 1e-05, %v696_v1 }
 0x3b9   : > { %1072 = vrsqrt.f32 %v697_v2 }
 0x3c3   : > { %v1073_v3 = vpop.eup %1072 }
 0x3c4   : > { %v699_v5 = vmul.f32 %v1073_v3, %v692_v62 }
 0x3c6   : > { %v706_v7 = vmul.f32 %v899_v4, %v699_v5 }
 0x3c8   : > { %v713_v8 = vadd.f32 %v900_v6, %v706_v7 }
 0x3ca   : > { %714 = vst [vmem:[%s349_s19] sm:$0xff] %v713_v8 }
 0x3cb   : > { %1255 = shalt.err (!%p1252_p6)
}
 0x3cc   : > { %s1256_s13 = scalar_lea.hbm %s1600_s2, 128  ;;  %s1260_s14 = scalar_lea.hbm %s1649_s7, 256 }
 0x3cd   : > { %p1257_p5 = scmp.ne.s32.totalorder %s1600_s2, %s1256_s13  ;;  %p1261_p10 = scmp.lt.u32.totalorder %s1600_s2, %s1649_s7 }
 0x3ce   : > { %p1262_p2 = scmp.lt.u32.totalorder %s1260_s14, %s1256_s13  ;;  %p1264_p4 = scmp.lt.u32.totalorder %s1256_s13, %s1600_s2 }
 0x3cf   : > { %p1258_p9 = pnand %p1257_p5, %p1672_p7 }
 0x3d0   : > { %p1263_p3 = por %p1262_p2, %p1261_p10 }
 0x3d1   : > { %p1259_p12 = pneg %p1258_p9 }
 0x3d2   : > { %p1265_p8 = por %p1264_p4, %p1263_p3 }
 0x3d4   : > { %p1266_p11 = pnand %p1265_p8, %p1259_p12 }
 0x3d6   : > { %1269 = shalt.err (!%p1266_p11)
}
 0x3d7   : > { %951 = dma.vmem_to_hbm [thread:$0]  (%p1672_p7), %s1602_s15, 128, %s1600_s2, %s716_s23  }
 0x3d8 PF: > { %p988_p13 = scmp.ge.s32.totalorder %s1320_s27, 2  ;;  %s741_s29 = sand.u32 1, %s1308_s24  }
 0x3d9   : > { %p1673_p0 = scmp.ne.s32.totalorder %s1657_s12, 0  ;;  %s742_s16 = scalar_lea.sflag [#allocation4], %s741_s29 }
 0x3db   : > { %p973_p1 = pnand %p988_p13, %p1673_p0 }
 0x3dd   : > { %1303 = dma.done.wait (!%p973_p1), %s742_s16, 128  }
 0x3de   : > { %1305 = vsyncadd (!%p973_p1), %s742_s16, 4294967168  ;;  %s1674_s19 = sld [smem:[#allocation19_spill]]  ;;  %p21_p6 = scmp.ge.s32.totalorder %s1399_s30, 4  }
 0x3df   : > { %s1675_s24 = smov %s1312_s25  ;;  %s1676_s25 = smov %s1316_s26 }
 0x3e0   : > { %s1678_s27 = smov %s1399_s30  ;;  %23 = sbr.rel (!%p21_p6) target bundleno = 10 (0xa), region = 108 }
 0x3e4   : > { %s1677_s26 = smov %s1674_s19 }
 0x3e7   :  { %747 = vsyncpa [#allocation3], 1 }
 0x3e8   :  { %749 = vsyncpa [#allocation3 + $0x1], 1 }
 0x3e9   :  { %750 = vsyncpa [#allocation6], 1 }
 0x3ea   :  { %751 = vsyncpa [#allocation9], 1 }
 0x3eb   :  { %752 = vsyncpa [#allocation12], 1 }
 0x3ec   :  { %753 = vsyncpa [#allocation4], 1 }
 0x3ed   :  { %755 = vsyncpa [#allocation4 + $0x1], 1 }

// kernel: middle_forward.6
= control target key start
LH: loop header
LB: loop body
LE: loop exit
PB: predicated region body
PF: predicated region fallthrough
CT: control target
= control target key end

     0   :  { %13 = vsyncpa [#allocation3], 0  ;;  %s1945_s0 = inlined_call_operand.vmem [shape: f32[2,8,128], index: 0, kind: input, shape index: {}]   ;;  %s1946_s1 = inlined_call_operand.hbm [shape: bf16[128,384], index: 1, kind: input, shape index: {}]   ;;  %s1947_s2 = inlined_call_operand.hbm [shape: f32[1,384], index: 2, kind: input, shape index: {}]   ;;  %s1948_s3 = inlined_call_operand.hbm [shape: bf16[128,128], index: 3, kind: input, shape index: {}]   ;;  %s1949_s4 = inlined_call_operand.hbm [shape: f32[1,128], index: 4, kind: input, shape index: {}]   ;;  %s1950_s5 = inlined_call_operand.hbm [shape: f32[1,128], index: 5, kind: input, shape index: {}]   ;;  %s1951_s6 = inlined_call_operand.hbm [shape: f32[1,128], index: 6, kind: input, shape index: {}]   ;;  %s1952_s7 = inlined_call_operand.vmem [shape: f32[2,1,8], index: 7, kind: input, shape index: {}]   ;;  %s1953_s8 = inlined_call_operand.vmem [shape: f32[2,8,128], index: 8, kind: output, shape index: {}]  }
   0x1   :  { %14 = vsyncpa [#allocation5], 0 }
   0x2   :  { %15 = vsyncpa [#allocation8], 0 }
   0x3   :  { %16 = vsyncpa [#allocation11], 0  ;;  %s1688_s27 = smov 0  }
   0x4 LB: > { %s1629_s28 = smov [#allocation4]   ;;  %s1694_s30 = sadd.s32 4294967295, %s1627_s27   ;;  %s1627_s27 = sphi %s1688_s27, %s22_s27  }
   0x5   : > { %s257_s29 = sshll.u32 %s1629_s28, 4  ;;  %p1161_p0 = scmp.ge.s32.totalorder %s1627_s27, 1  ;;  %s1699_s29 = int_to_ptr.vmem [resolvable:$true] %s257_s29 }
   0x6   : > { %p231_p1 = scmp.lt.s32.totalorder %s1627_s27, 3  ;;  %p1954_p2 = scmp.eq.s32.totalorder %s1694_s30, 0 }
   0x7   : > { %s1630_s10 = smov [#allocation7]   ;;  %s1631_s12 = smov [#allocation2]  }
   0x8   : > { %p1701_p3 = pnand %p1161_p0, %p231_p1  ;;  %s281_s11 = sshll.u32 %s1630_s10, 4  ;;  %s1707_s11 = int_to_ptr.vmem [resolvable:$true] %s281_s11 }
   0x9   : > { %s243_s13 = sshll.u32 %s1631_s12, 4  ;;  %s1632_s15 = smov [#allocation6]   ;;  %s1715_s13 = int_to_ptr.vmem [resolvable:$true] %s243_s13 }
   0xa   : > { %s1956_s9 = scalar_select %p1701_p3, 1, 0 }
   0xb   : > { %p1334_p4 = pneg %p1701_p3  ;;  %s1717_s16 = sshll.u32 %s1632_s15, 4  ;;  %s268_s16 = int_to_ptr.vmem [resolvable:$true] %s1717_s16 }
   0xc   : > { %s1437_s19 = scalar_lea.hbm %s1947_s2, 48 }
   0xd   : > { %p1711_p5 = pnand %p1954_p2, %p1334_p4  ;;  %p1438_p6 = scmp.ne.s32.totalorder %s1947_s2, %s1437_s19 }
   0xe   : > { %p1444_p10 = scmp.lt.u32.totalorder %s1437_s19, %s1947_s2 }
   0xf   : > { %p1727_p7 = pneg %p1711_p5 }
  0x11   : > { %p1440_p8 = pnand %p1727_p7, %p1438_p6 }
  0x13   : > { %p1441_p9 = pneg %p1440_p8 }
  0x15   : > { %p1446_p11 = pnand %p1444_p10, %p1441_p9 }
  0x17   : > { %1449 = shalt.err (!%p1446_p11)
}
  0x18   : > { %s1450_s25 = scalar_lea.vmem %s1699_s29, 48  ;;  %s1457_s26 = scalar_lea.vmem %s1699_s29, 64 }
  0x19   : > { %p1451_p12 = scmp.ne.s32.totalorder %s1699_s29, %s1450_s25  ;;  %p1458_p1 = scmp.lt.s32.totalorder %s1699_s29, %s1699_s29 }
  0x1a   : > { %p1459_p4 = scmp.lt.s32.totalorder %s1457_s26, %s1450_s25 }
  0x1b   : > { %p1453_p13 = pnand %p1451_p12, %p1727_p7 }
  0x1c   : > { %p1460_p6 = por %p1459_p4, %p1458_p1 }
  0x1d   : > { %p1454_p0 = pneg %p1453_p13 }
  0x1f   : > { %p1461_p8 = pnand %p1460_p6, %p1454_p0 }
  0x21   : > { %1464 = shalt.err (!%p1461_p8)
}
  0x22   : > { %1340 = dma.hbm_to_vmem [thread:$0]  (!%p1711_p5), %s1947_s2, 48, %s1699_s29, [#allocation5]  }
  0x23   : > { %s1465_s17 = scalar_lea.hbm %s1949_s4, 16 }
  0x24   : > { %p1466_p9 = scmp.ne.s32.totalorder %s1949_s4, %s1465_s17  ;;  %p1472_p12 = scmp.lt.u32.totalorder %s1465_s17, %s1949_s4 }
  0x26   : > { %p1468_p10 = pnand %p1466_p9, %p1727_p7 }
  0x28   : > { %p1469_p11 = pneg %p1468_p10 }
  0x2a   : > { %p1474_p13 = pnand %p1472_p12, %p1469_p11 }
  0x2c   : > { %1477 = shalt.err (!%p1474_p13)
}
  0x2d   : > { %s1478_s29 = scalar_lea.vmem %s1707_s11, 16  ;;  %s1485_s23 = scalar_lea.vmem %s1707_s11, 32 }
  0x2e   : > { %p1479_p0 = scmp.ne.s32.totalorder %s1707_s11, %s1478_s29  ;;  %p1486_p6 = scmp.lt.s32.totalorder %s1707_s11, %s1707_s11 }
  0x2f   : > { %p1487_p8 = scmp.lt.s32.totalorder %s1485_s23, %s1478_s29 }
  0x30   : > { %p1481_p1 = pnand %p1479_p0, %p1727_p7 }
  0x31   : > { %p1488_p9 = por %p1487_p8, %p1486_p6 }
  0x32   : > { %p1482_p4 = pneg %p1481_p1 }
  0x34   : > { %p1489_p10 = pnand %p1488_p9, %p1482_p4 }
  0x36   : > { %1492 = shalt.err (!%p1489_p10)
}
  0x37   : > { %1346 = dma.hbm_to_vmem [thread:$0]  (!%p1711_p5), %s1949_s4, 16, %s1707_s11, [#allocation8]  }
  0x38   : > { %s1493_s10 = scalar_lea.hbm %s1946_s1, 3072 }
  0x39   : > { %p1494_p11 = scmp.ne.s32.totalorder %s1946_s1, %s1493_s10  ;;  %p1500_p0 = scmp.lt.u32.totalorder %s1493_s10, %s1946_s1 }
  0x3b   : > { %p1496_p12 = pnand %p1494_p11, %p1727_p7 }
  0x3d   : > { %p1497_p13 = pneg %p1496_p12 }
  0x3f   : > { %p1502_p1 = pnand %p1500_p0, %p1497_p13 }
  0x41   : > { %1505 = shalt.err (!%p1502_p1)
}
  0x42   : > { %s1506_s11 = scalar_lea.vmem %s1715_s13, 3072  ;;  %p1514_p9 = scmp.lt.s32.totalorder %s1715_s13, %s1715_s13 }
  0x43   : > { %p1507_p4 = scmp.ne.s32.totalorder %s1715_s13, %s1506_s11  ;;  %p1515_p10 = scmp.lt.s32.totalorder %s1506_s11, %s1506_s11 }
  0x45   : > { %p1509_p6 = pnand %p1507_p4, %p1727_p7  ;;  %p1516_p11 = por %p1515_p10, %p1514_p9 }
  0x47   : > { %p1510_p8 = pneg %p1509_p6 }
  0x49   : > { %p1517_p12 = pnand %p1516_p11, %p1510_p8 }
  0x4b   : > { %1520 = shalt.err (!%p1517_p12)
}
  0x4c   : > { %s1633_s19 = smov 192   ;;  %s1634_s20 = smov 12  }
  0x4d   : > { %1337 = dma.hbm_to_vmem [thread:$0]  (!%p1711_p5), %s1946_s1, 3072, %s1715_s13, [#allocation3], %s1633_s19, %s1633_s19, %s1634_s20  }
  0x4e   : > { %s1521_s25 = scalar_lea.hbm %s1948_s3, 1024 }
  0x4f   : > { %p1522_p13 = scmp.ne.s32.totalorder %s1948_s3, %s1521_s25  ;;  %p1528_p4 = scmp.lt.u32.totalorder %s1521_s25, %s1948_s3 }
  0x51   : > { %p1524_p0 = pnand %p1522_p13, %p1727_p7 }
  0x53   : > { %p1525_p1 = pneg %p1524_p0 }
  0x55   : > { %p1530_p6 = pnand %p1528_p4, %p1525_p1 }
  0x57   : > { %1533 = shalt.err (!%p1530_p6)
}
  0x58   : > { %s1534_s15 = scalar_lea.vmem %s268_s16, 1024  ;;  %p1542_p11 = scmp.lt.s32.totalorder %s268_s16, %s268_s16 }
  0x59   : > { %p1535_p8 = scmp.ne.s32.totalorder %s268_s16, %s1534_s15  ;;  %p1543_p12 = scmp.lt.s32.totalorder %s1534_s15, %s1534_s15 }
  0x5b   : > { %p1537_p9 = pnand %p1535_p8, %p1727_p7  ;;  %p1544_p2 = por %p1543_p12, %p1542_p11 }
  0x5d   : > { %p1538_p10 = pneg %p1537_p9 }
  0x5f   : > { %p1545_p3 = pnand %p1544_p2, %p1538_p10 }
  0x61   : > { %1548 = shalt.err (!%p1545_p3)
}
  0x62   : > { %s1635_s13 = smov 64   ;;  %s1636_s17 = smov 4  }
  0x63   : > { %1343 = dma.hbm_to_vmem [thread:$0]  (!%p1711_p5), %s1948_s3, 1024, %s268_s16, [#allocation5], %s1635_s13, %s1635_s13, %s1636_s17  }
  0x64   : > { %s1637_s19 = smov [#allocation9]   ;;  %s1638_s21 = smov [#allocation10]  }
  0x65   : > { %s292_s20 = sshll.u32 %s1637_s19, 4  ;;  %s303_s29 = sshll.u32 %s1638_s21, 4  ;;  %s293_s20 = int_to_ptr.vmem [resolvable:$true] %s292_s20  ;;  %s304_s29 = int_to_ptr.vmem [resolvable:$true] %s303_s29 }
  0x66   : > { %s1549_s25 = scalar_lea.hbm %s1950_s5, 16 }
  0x67   : > { %p1550_p2 = scmp.ne.s32.totalorder %s1950_s5, %s1549_s25  ;;  %p1556_p0 = scmp.lt.u32.totalorder %s1549_s25, %s1950_s5 }
  0x69   : > { %p1552_p3 = pnand %p1550_p2, %p1727_p7 }
  0x6b   : > { %p1553_p13 = pneg %p1552_p3 }
  0x6d   : > { %p1558_p1 = pnand %p1556_p0, %p1553_p13 }
  0x6f   : > { %1561 = shalt.err (!%p1558_p1)
}
  0x70   : > { %s1562_s16 = scalar_lea.vmem %s293_s20, 16  ;;  %s1569_s15 = scalar_lea.vmem %s293_s20, 32 }
  0x71   : > { %p1563_p4 = scmp.ne.s32.totalorder %s293_s20, %s1562_s16  ;;  %p1570_p9 = scmp.lt.s32.totalorder %s293_s20, %s293_s20 }
  0x72   : > { %p1571_p10 = scmp.lt.s32.totalorder %s1569_s15, %s1562_s16 }
  0x73   : > { %p1565_p6 = pnand %p1563_p4, %p1727_p7 }
  0x74   : > { %p1572_p11 = por %p1571_p10, %p1570_p9 }
  0x75   : > { %p1566_p8 = pneg %p1565_p6 }
  0x77   : > { %p1573_p12 = pnand %p1572_p11, %p1566_p8 }
  0x79   : > { %1576 = shalt.err (!%p1573_p12)
}
  0x7a   : > { %1349 = dma.hbm_to_vmem [thread:$0]  (!%p1711_p5), %s1950_s5, 16, %s293_s20, [#allocation8]  }
  0x7b   : > { %s1577_s19 = scalar_lea.hbm %s1951_s6, 16 }
  0x7c   : > { %p1578_p2 = scmp.ne.s32.totalorder %s1951_s6, %s1577_s19  ;;  %p1584_p0 = scmp.lt.u32.totalorder %s1577_s19, %s1951_s6 }
  0x7e   : > { %p1580_p3 = pnand %p1578_p2, %p1727_p7 }
  0x80   : > { %p1581_p13 = pneg %p1580_p3 }
  0x82   : > { %p1586_p1 = pnand %p1584_p0, %p1581_p13 }
  0x84   : > { %1589 = shalt.err (!%p1586_p1)
}
  0x85   : > { %s1590_s26 = scalar_lea.vmem %s304_s29, 16  ;;  %s1597_s20 = scalar_lea.vmem %s304_s29, 32 }
  0x86   : > { %p1591_p4 = scmp.ne.s32.totalorder %s304_s29, %s1590_s26  ;;  %p1598_p9 = scmp.lt.s32.totalorder %s304_s29, %s304_s29 }
  0x87   : > { %p1599_p10 = scmp.lt.s32.totalorder %s1597_s20, %s1590_s26 }
  0x88   : > { %p1593_p6 = pnand %p1591_p4, %p1727_p7 }
  0x89   : > { %p1600_p11 = por %p1599_p10, %p1598_p9 }
  0x8a   : > { %p1594_p8 = pneg %p1593_p6 }
  0x8c   : > { %p1601_p12 = pnand %p1600_p11, %p1594_p8 }
  0x8e   : > { %1604 = shalt.err (!%p1601_p12)
}
  0x8f   : > { %1352 = dma.hbm_to_vmem [thread:$0]  (!%p1711_p5), %s1951_s6, 16, %s304_s29, [#allocation11]  }
  0x90   : > { %p1959_p2 = scmp.ne.s32.totalorder %s1956_s9, 0 }
  0x91   : > { %p1960_p3 = scmp.eq.s32.totalorder (!%p1959_p2), %s1694_s30, 0 }
  0x92   : > { %329 = sbr.rel (%p1959_p2) target bundleno = 2353 (0x931), region = 52 }
  0x99   : > { %1610 = dma.done.wait (%p1960_p3), [#allocation3], 3072   ;;  %p1961_p7 = pmov %p1960_p3 }
  0x9a   : > { %p1962_p13 = pmov %p1960_p3 }
  0x9b   : > { %1612 = vsyncadd (%p1961_p7), [#allocation3], 4294964224 }
  0x9c   : > { %1614 = dma.done.wait (%p1962_p13), [#allocation5], 1072   ;;  %p1963_p0 = pmov %p1960_p3 }
  0x9e   : > { %1616 = vsyncadd (%p1963_p0), [#allocation5], 4294966224  ;;  %p1964_p1 = pmov %p1963_p0 }
  0x9f   : > { %p1965_p5 = pmov %p1963_p0 }
  0xa0   : > { %1618 = dma.done.wait (%p1964_p1), [#allocation8], 32  }
  0xa1   : > { %1620 = vsyncadd (%p1965_p5), [#allocation8], 4294967264  ;;  %p1966_p4 = pmov %p1963_p0 }
  0xa2   : > { %p1967_p6 = pmov %p1963_p0 }
  0xa3   : > { %1622 = dma.done.wait (%p1966_p4), [#allocation11], 16  }
  0xa4   : > { %1624 = vsyncadd (%p1967_p6), [#allocation11], 4294967280  ;;  %v1639_v0 = vmov 0   ;;  %v1640_v1 = vmov 0.0   ;;  %v1387_v2 = vld [vmem:[#allocation2 + $0x4] ss:$12 sps:$4 sm:$0xff]   ;;  %v432_v28 = vlaneseq }
  0xa5   : > { %607 = vmatprep.mubr.bf16.mxu0 %v1639_v0  ;;  %1246 = vmatprep.subr.bf16.mxu1 %v1640_v1  ;;  %v1389_v3 = vld [vmem:[#allocation2] ss:$12 sps:$4 sm:$0xff]   ;;  %v1390_v4 = vld [vmem:[#allocation2 + $0x1c] ss:$12 sps:$4 sm:$0xff]   ;;  %v1392_v5 = vld [vmem:[#allocation2 + $0x18] ss:$12 sps:$4 sm:$0xff]  }
  0xa6   : > { %575 = vmatprep.subr.bf16.mxu0 %v1387_v2  ;;  %v1393_v6 = vld [vmem:[#allocation2 + $0x34] ss:$12 sps:$4 sm:$0xff]   ;;  %p384_p8 = scmp.lt.s32.totalorder %s1694_s30, 1  ;;  %v1395_v7 = vld [vmem:[#allocation2 + $0x30] ss:$12 sps:$4 sm:$0xff]   ;;  %vm1641_vm0 = vmmov 0  }
  0xa7   : > { %576 = vmatpush1.bf16.msra.mxu0 %v1389_v3  ;;  %v1396_v8 = vld [vmem:[#allocation2 + $0x4c] ss:$12 sps:$4 sm:$0xff]   ;;  %v1398_v9 = vld [vmem:[#allocation2 + $0x48] ss:$12 sps:$4 sm:$0xff]   ;;  %v1399_v11 = vld [vmem:[#allocation2 + $0x64] ss:$12 sps:$4 sm:$0xff]   ;;  %1262 = vmatprep.mubr.msk.bf16.mxu1 %vm1641_vm0, %v1640_v1 }
  0xa8   : > { %577 = vmatprep.subr.bf16.mxu0 %v1390_v4  ;;  %s1969_s30 = smov (!%p384_p8, %s1694_s30), 1  ;;  %v1411_v10 = vld [vmem:[#allocation2 + $0x8] ss:$12 sps:$4 sm:$0xff]   ;;  %v1412_v12 = vld [vmem:[#allocation2 + $0x20] ss:$12 sps:$4 sm:$0xff]   ;;  %v433_v29 = vshrl.u32 %v432_v28, 7 }
  0xa9   : > { %1247 = vmatpush3.bf16.msra.mxu1 %v1411_v10  ;;  %s1176_s9 = sshll.u32 %s1969_s30, 3  ;;  %v1401_v13 = vld [vmem:[#allocation2 + $0x60] ss:$12 sps:$4 sm:$0xff]   ;;  %v1402_v14 = vld [vmem:[#allocation2 + $0x7c] ss:$12 sps:$4 sm:$0xff]   ;;  %vm660_vm1 = vcmask 523264   ;;  %s390_s13 = scalar_lea.vmem %s1952_s7, %s1969_s30 }
  0xaa   : > { %1248 = vmatprep.subr.bf16.mxu1 %v1640_v1  ;;  %v1404_v15 = vld [vmem:[#allocation2 + $0x78] ss:$12 sps:$4 sm:$0xff]   ;;  %v1405_v17 = vld [vmem:[#allocation2 + $0x94] ss:$12 sps:$4 sm:$0xff]   ;;  %v1414_v18 = vld [vmem:[#allocation2 + $0x50] ss:$12 sps:$4 sm:$0xff]   ;;  %s387_s29 = scalar_lea.vmem %s1945_s0, %s1176_s9  ;;  %s394_s11 = scalar_lea.vmem %s1953_s8, %s1176_s9 }
  0xab   : > { %578 = vmatpush1.bf16.msra.mxu0 %v1392_v5  ;;  %v1413_v16 = vld [vmem:[#allocation2 + $0x38] ss:$12 sps:$4 sm:$0xff]   ;;  %v1407_v19 = vld [vmem:[#allocation2 + $0x90] ss:$12 sps:$4 sm:$0xff]   ;;  %v1415_v21 = vld [vmem:[#allocation2 + $0x68] ss:$12 sps:$4 sm:$0xff]  }
  0xac   : > { %579 = vmatprep.subr.bf16.mxu0 %v1393_v6  ;;  %v1408_v20 = vld [vmem:[#allocation2 + $0xac] ss:$12 sps:$4 sm:$0xff]   ;;  %v1410_v22 = vld [vmem:[#allocation2 + $0xa8] ss:$12 sps:$4 sm:$0xff]   ;;  %v1884_v23 = vld [vmem:[%s387_s29] sm:$0xff]  ;;  %v438_v30 = vsub.s32 1, %v433_v29 }
  0xad   : > { %1249 = vmatpush3.bf16.msra.mxu1 %v1412_v12  ;;  %v1416_v24 = vld [vmem:[#allocation2 + $0x80] ss:$12 sps:$4 sm:$0xff]   ;;  %v397_v25 = vpack.c.bf16 %v1884_v23, %v1884_v23  ;;  %v1417_v26 = vld [vmem:[#allocation2 + $0x98] ss:$12 sps:$4 sm:$0xff]   ;;  %v1418_v27 = vld [vmem:[#allocation2 + $0xb0] ss:$12 sps:$4 sm:$0xff]  }
  0xae   : > { %1250 = vmatprep.subr.bf16.mxu1 %v1640_v1  ;;  %v430_v31 = vld [vmem:[#allocation4] sm:$0x7]  ;;  %v434_v32 = vsub.s32 0, %v433_v29  ;;  %s1642_s12 = smov 64   ;;  %v442_v44 = vsub.s32 2, %v433_v29  ;;  %vm731_vm2 = vcmask 1043456  }
  0xaf   : > { %580 = vmatpush1.bf16.msra.mxu0 %v1395_v7  ;;  %v439_v33 = vrot.slane %v430_v31, %v438_v30  ;;  %v1203_v54 = vld [vmem:[%s390_s13] ss:$0 sm:$0xff]  ;;  %vm715_vm3 = vcmask 64512  }
  0xb0   : > { %581 = vmatprep.subr.bf16.mxu0 %v1396_v8  ;;  %v435_v34 = vrot.slane %v430_v31, %v434_v32  ;;  %v443_v45 = vrot.slane %v430_v31, %v442_v44 }
  0xb1   : > { %1251 = vmatpush3.bf16.msra.mxu1 %v1413_v16 }
  0xb2   : > { %1252 = vmatprep.subr.bf16.mxu1 %v1640_v1 }
  0xb3   : > { %582 = vmatpush1.bf16.msra.mxu0 %v1398_v9 }
  0xb4   : > { %583 = vmatprep.subr.bf16.mxu0 %v1399_v11 }
  0xb5   : > { %1253 = vmatpush3.bf16.msra.mxu1 %v1414_v18 }
  0xb6   : > { %1254 = vmatprep.subr.bf16.mxu1 %v1640_v1 }
  0xb7   : > { %584 = vmatpush1.bf16.msra.mxu0 %v1401_v13 }
  0xb8   : > { %585 = vmatprep.subr.bf16.mxu0 %v1402_v14 }
  0xb9   : > { %1255 = vmatpush3.bf16.msra.mxu1 %v1415_v21 }
  0xba   : > { %1256 = vmatprep.subr.bf16.mxu1 %v1640_v1 }
  0xbb   : > { %586 = vmatpush1.bf16.msra.mxu0 %v1404_v15 }
  0xbc   : > { %587 = vmatprep.subr.bf16.mxu0 %v1405_v17 }
  0xbd   : > { %1257 = vmatpush3.bf16.msra.mxu1 %v1416_v24 }
  0xbe   : > { %1258 = vmatprep.subr.bf16.mxu1 %v1640_v1 }
  0xbf   : > { %588 = vmatpush1.bf16.msra.mxu0 %v1407_v19 }
  0xc0   : > { %589 = vmatprep.subr.bf16.mxu0 %v1408_v20 }
  0xc1   : > { %1259 = vmatpush3.bf16.msra.mxu1 %v1417_v26 }
  0xc2   : > { %1260 = vmatprep.subr.bf16.mxu1 %v1640_v1 }
  0xc3   : > { %590 = vmatpush1.bf16.msra.mxu0 %v1410_v22 }
  0xc4   : > { %1290 = vmatprep.subr.bf16.mxu0 %v1640_v1 }
  0xc5   : > { %1261 = vmatpush3.bf16.msra.mxu1 %v1418_v27 }
  0xc6   : > { %608 = vmatmul.mubr.bf16.vlgmr.msra.gmra.mrb[0].mxu0 %v397_v25  ;;  %1266 = vmatprep.subr.bf16.mxu1 %v1640_v1 }
  0xc7   : > { %1306 = vmatprep.mubr.msk.bf16.mxu0 %vm1641_vm0, %v1640_v1 }
  0xc8   : > { %1263 = vmatmul.mubr.bf16.vlgmr.msra.gmra.mrb[0].mxu1 %v397_v25 }
  0xc9   : > { %1268 = vmatprep.mubr.msk.bf16.mxu1 %vm1641_vm0, %v1640_v1 }
 0x199   : > { %v609_v35 = vpop.f32.mrb[0].mxu0 }
 0x19a   : > { %v611_v36 = vpop.f32.mrb[1].mxu0  ;;  %v610_v40 = vadd.f32 %v609_v35, %v435_v34  ;;  %v1420_v34 = vld [vmem:[#allocation6 + $0x8] sm:$0xff]   ;;  %v1421_v35 = vld [vmem:[#allocation6 + $0x10] sm:$0xff]  }
 0x19b   : > { %v612_v37 = vadd.f32 %v611_v36, %v439_v33  ;;  %v613_v38 = vpop.f32.mrb[2].mxu0  ;;  %v650_v46 = vpop.f32.mrb[0].mxu1  ;;  %v1419_v33 = vld [vmem:[#allocation6] sm:$0xff]   ;;  %v1422_v36 = vld [vmem:[#allocation6 + $0x18] sm:$0xff]  }
 0x19c   : > { %v614_v39 = vpop.f32.mrb[3].mxu0  ;;  %v657_v43 = vpack.c.bf16 %v610_v40, %v610_v40  ;;  %v651_v47 = vadd.f32 %v650_v46, %v443_v45  ;;  %v1264_v48 = vpop.f32.mrb[1].mxu1  ;;  %1291 = vmatpush3.bf16.msra.mxu0 %v1419_v33  ;;  %v1424_v38 = vld [vmem:[#allocation6 + $0x28] sm:$0xff]   ;;  %v1426_v40 = vld [vmem:[#allocation6 + $0x38] sm:$0xff]  }
 0x19d   : > { %v658_v41 = vpack.c.bf16 %v612_v37, %v612_v37  ;;  %v653_v49 = vpop.f32.mrb[2].mxu1  ;;  %1292 = vmatprep.subr.bf16.mxu0 %v1640_v1  ;;  %v1423_v37 = vld [vmem:[#allocation6 + $0x20] sm:$0xff]   ;;  %v1425_v39 = vld [vmem:[#allocation6 + $0x30] sm:$0xff]  }
 0x19e   : > { %v659_v50 = vpack.c.bf16 %v651_v47, %v651_v47  ;;  %v1265_v51 = vpop.f32.mrb[3].mxu1  ;;  %v1207_v48 = vld [vmem:[#allocation7] ss:$0 sm:$0xff] }
 0x19f   : > { %v665_v42 = vsel %vm660_vm1, %v658_v41, 0  ;;  %779 = vrot.lane.b32.xlu1 %v658_v41, %s1642_s12 }
 0x1a0   : > { %1267 = vmatpush3.bf16.xpose.msra.mxu1 %v665_v42  ;;  %v733_v52 = vsel %vm731_vm2, %v659_v50, 0  ;;  %1293 = vmatpush3.bf16.msra.mxu0 %v1420_v34 }
 0x1a1   : > { %1272 = vmatprep.subr.bf16.mxu1 %v1640_v1  ;;  %1294 = vmatprep.subr.bf16.mxu0 %v1640_v1 }
 0x1a3   : > { %776 = vrot.lane.b32.xlu1 %v657_v43, %s1642_s12 }
 0x1a4   : > { %1295 = vmatpush3.bf16.msra.mxu0 %v1421_v35 }
 0x1a5   : > { %1296 = vmatprep.subr.bf16.mxu0 %v1640_v1 }
 0x1a7   : > { %1269 = vmatmul.mubr.msk.bf16.vlgmr.msra.gmra.mrb[4].mxu1 %vm660_vm1, %v657_v43 }
 0x1a8   : > { %1274 = vmatprep.mubr.msk.bf16.mxu1 %vm1641_vm0, %v1640_v1  ;;  %1273 = vmatpush3.bf16.msra.mxu1 %v733_v52 }
 0x1a9   : > { %1278 = vmatprep.subr.bf16.mxu1 %v1640_v1  ;;  %1297 = vmatpush3.bf16.msra.mxu0 %v1422_v36 }
 0x1aa   : > { %1298 = vmatprep.subr.bf16.mxu0 %v1640_v1 }
 0x1ad   : > { %1299 = vmatpush3.bf16.msra.mxu0 %v1423_v37 }
 0x1ae   : > { %1300 = vmatprep.subr.bf16.mxu0 %v1640_v1 }
 0x1b1   : > { %1301 = vmatpush3.bf16.msra.mxu0 %v1424_v38 }
 0x1b2   : > { %1302 = vmatprep.subr.bf16.mxu0 %v1640_v1 }
 0x1b5   : > { %1303 = vmatpush3.bf16.msra.mxu0 %v1425_v39 }
 0x1b6   : > { %1304 = vmatprep.subr.bf16.mxu0 %v1640_v1 }
 0x1b9   : > { %1305 = vmatpush3.bf16.msra.mxu0 %v1426_v40 }
 0x211   : > { %v780_v6 = vpop.permute.xlu1 %779 }
 0x212   : > { %v785_v8 = vsel %vm660_vm1, %v780_v6, 0 }
 0x215   : > { %v777_v9 = vpop.permute.xlu1 %776 }
 0x27a   : > { %v701_v53 = vpop.f32.mrb[4].mxu1 }
 0x27b   : > { %v707_v55 = vmul.f32 0.125, %v701_v53  ;;  %v1270_v56 = vpop.f32.mrb[5].mxu1 }
 0x27c   : > { %v704_v57 = vpop.f32.mrb[6].mxu1 }
 0x27d   : > { %v1271_v58 = vpop.f32.mrb[7].mxu1  ;;  %v714_v59 = vadd.f32 %v1203_v54, %v707_v55 }
 0x27f   : > { %v716_v60 = vsel %vm715_vm3, %v714_v59, -inf }
 0x280   : > { %717 = vmax.xlane.f32.xlu0 %v716_v60 }
 0x30d   : > { %v718_v61 = vpop.xlane.xlu0 %717 }
 0x30e   : > { %v719_v62 = vsub.f32 %v714_v59, %v718_v61 }
 0x310   : > { %v720_v63 = vmul.f32 1.442695, %v719_v62  ;;  %v1216_v62 = vld [vmem:[#allocation9] ss:$0 sm:$0xff] }
 0x312   : > { %1427 = vpow2.f32 %v720_v63 }
 0x31c   : > { %v1428_v0 = vpop.eup %1427 }
 0x31d   : > { %v722_v2 = vsel %vm715_vm3, %v1428_v0, 0.0 }
 0x31e   : > { %723 = vadd.xlane.f32.xlu0 %v722_v2 }
 0x3ab   : > { %v724_v3 = vpop.xlane.xlu0 %723 }
 0x3ac   : > { %1429 = vrcp.f32 %v724_v3 }
 0x3b6   : > { %v1430_v4 = vpop.eup %1429 }
 0x3b7   : > { %v726_v5 = vmul.f32 %v1430_v4, %v1428_v0  ;;  %v1217_v0 = vld [vmem:[#allocation10] ss:$0 sm:$0xff] }
 0x3b9   : > { %v727_v7 = vpack.c.bf16 %v726_v5, %v726_v5 }
 0x3bb   : > { %1275 = vmatmul.mubr.msk.bf16.vlgmr.msra.gmra.mrb[8].mxu1 %vm715_vm3, %v727_v7 }
 0x3bc   : > { %1279 = vmatpush3.bf16.xpose.msra.mxu1 %v785_v8  ;;  %1280 = vmatprep.mubr.msk.bf16.mxu1 %vm1641_vm0, %v1640_v1 }
 0x3bd   : > { %1284 = vmatprep.subr.bf16.mxu1 %v1640_v1 }
 0x3c3   : > { %1281 = vmatmul.mubr.msk.bf16.vlgmr.msra.gmra.mrb[12].mxu1 %vm660_vm1, %v777_v9 }
 0x3c4   : > { %1286 = vmatprep.mubr.msk.bf16.mxu1 %vm1641_vm0, %v1640_v1 }
 0x48e   : > { %v769_v10 = vpop.f32.mrb[8].mxu1 }
 0x48f   : > { %v1276_v11 = vpop.f32.mrb[9].mxu1 }
 0x490   : > { %v772_v12 = vpop.f32.mrb[10].mxu1 }
 0x491   : > { %v1277_v13 = vpop.f32.mrb[11].mxu1 }
 0x496   : > { %v821_v14 = vpop.f32.mrb[12].mxu1 }
 0x497   : > { %v827_v15 = vmul.f32 0.125, %v821_v14  ;;  %v1282_v16 = vpop.f32.mrb[13].mxu1 }
 0x498   : > { %v824_v17 = vpop.f32.mrb[14].mxu1 }
 0x499   : > { %v1283_v18 = vpop.f32.mrb[15].mxu1  ;;  %v828_v19 = vadd.f32 %v1203_v54, %v827_v15 }
 0x49b   : > { %v829_v20 = vsel %vm715_vm3, %v828_v19, -inf }
 0x49c   : > { %830 = vmax.xlane.f32.xlu0 %v829_v20 }
 0x4b2   : > { %842 = vrot.lane.b32.xlu0 %v659_v50, %s1642_s12 }
 0x529   : > { %v831_v21 = vpop.xlane.xlu0 %830 }
 0x52a   : > { %v832_v22 = vsub.f32 %v828_v19, %v831_v21 }
 0x52c   : > { %v833_v24 = vmul.f32 1.442695, %v832_v22 }
 0x52d   : > { %v843_v25 = vpop.permute.xlu0 %842 }
 0x52e   : > { %1431 = vpow2.f32 %v833_v24  ;;  %v848_v26 = vsel %vm731_vm2, %v843_v25, 0 }
 0x52f   : > { %1285 = vmatpush3.bf16.msra.mxu1 %v848_v26 }
 0x538   : > { %v1432_v27 = vpop.eup %1431 }
 0x539   : > { %v835_v28 = vsel %vm715_vm3, %v1432_v27, 0.0 }
 0x53a   : > { %836 = vadd.xlane.f32.xlu1 %v835_v28 }
 0x5c7   : > { %v837_v29 = vpop.xlane.xlu1 %836 }
 0x5c8   : > { %1433 = vrcp.f32 %v837_v29 }
 0x5d2   : > { %v1434_v30 = vpop.eup %1433 }
 0x5d3   : > { %v839_v31 = vmul.f32 %v1434_v30, %v1432_v27 }
 0x5d5   : > { %v840_v32 = vpack.c.bf16 %v839_v31, %v839_v31 }
 0x5d7   : > { %1287 = vmatmul.mubr.msk.bf16.vlgmr.msra.gmra.mrb[16].mxu1 %vm715_vm3, %v840_v32 }
 0x6aa   : > { %v884_v41 = vpop.f32.mrb[16].mxu1 }
 0x6ab   : > { %891 = vrot.lane.b32.xlu0 %v884_v41, %s1642_s12  ;;  %v1288_v42 = vpop.f32.mrb[17].mxu1 }
 0x6ac   : > { %v887_v43 = vpop.f32.mrb[18].mxu1 }
 0x6ad   : > { %v1289_v44 = vpop.f32.mrb[19].mxu1 }
 0x71d   : > { %v892_v45 = vpop.permute.xlu0 %891 }
 0x71e   : > { %v894_v46 = vsel %vm660_vm1, %v769_v10, %v892_v45 }
 0x71f   : > { %v895_v47 = vpack.c.bf16 %v894_v46, %v894_v46 }
 0x721   : > { %1307 = vmatmul.mubr.bf16.vlgmr.msra.gmra.mrb[4].mxu0 %v895_v47 }
 0x7f4   : > { %v1001_v49 = vpop.f32.mrb[4].mxu0 }
 0x7f5   : > { %v1002_v50 = vadd.f32 %v1207_v48, %v1001_v49  ;;  %v1308_v51 = vpop.f32.mrb[5].mxu0 }
 0x7f6   : > { %v1004_v52 = vpop.f32.mrb[6].mxu0 }
 0x7f7   : > { %v1309_v53 = vpop.f32.mrb[7].mxu0  ;;  %v1007_v1 = vadd.f32 %v1002_v50, %v1884_v23 }
 0x7f9   : > { %1010 = vadd.xlane.f32.xlu0 %v1007_v1 }
 0x886   : > { %v1011_v54 = vpop.xlane.xlu0 %1010 }
 0x887   : > { %v1013_v55 = vmul.f32 0.0078125, %v1011_v54 }
 0x889   : > { %v1014_v56 = vsub.f32 %v1007_v1, %v1013_v55 }
 0x88b   : > { %v1015_v57 = vmul.f32 %v1014_v56, %v1014_v56 }
 0x88d   : > { %1016 = vadd.xlane.f32.xlu1 %v1015_v57 }
 0x91a   : > { %v1017_v58 = vpop.xlane.xlu1 %1016 }
 0x91b   : > { %v1018_v59 = vmul.f32 0.0078125, %v1017_v58 }
 0x91d   : > { %v1019_v60 = vadd.f32 1e-05, %v1018_v59 }
 0x91f   : > { %1435 = vrsqrt.f32 %v1019_v60 }
 0x929   : > { %v1436_v61 = vpop.eup %1435 }
 0x92a   : > { %v1021_v63 = vmul.f32 %v1436_v61, %v1014_v56 }
 0x92c   : > { %v1028_v2 = vmul.f32 %v1216_v62, %v1021_v63 }
 0x92e   : > { %v1035_v23 = vadd.f32 %v1217_v0, %v1028_v2 }
 0x930   : > { %1036 = vst [vmem:[%s394_s11] sm:$0xff] %v1035_v23 }
 0x931 PF: > { %s22_s27 = sadd.s32 1, %s1627_s27  }
 0x932   : > { %p19_p9 = scmp.ge.s32.totalorder %s22_s27, 4  }
 0x934   :  { %21 = sbr.rel (!%p19_p9) target bundleno = 4 (0x4), region = 110 }
 0x93b   :  { %1056 = vsyncpa [#allocation3], 1 }
 0x93c   :  { %1058 = vsyncpa [#allocation3 + $0x1], 1 }
 0x93d   :  { %1059 = vsyncpa [#allocation5], 1 }
 0x93e   :  { %1060 = vsyncpa [#allocation8], 1 }
 0x93f   :  { %1061 = vsyncpa [#allocation11], 1 }

</bundles_post_ra>
